<compile_context>
chip_gen: v6e
topology: v6e:2x2x1
jax: 0.10.0
libtpu: 0.0.40
codegen_flags: <defaults>
</compile_context>

<pallas_src>
import functools

import numpy as np

import jax
import jax.numpy as jnp
from jax.experimental import pallas as pl
from jax.experimental.pallas import tpu as pltpu

BN_EPS = 1e-5
LEAKY_SLOPE = 0.2


def generator_kernel(
    x_ref,
    w1_ref, b1_ref, g1_ref, be1_ref,
    w2_ref, b2_ref, g2_ref, be2_ref,
    w3_ref, b3_ref, g3_ref, be3_ref,
    w4_ref, b4_ref,
    o_ref,
):
    batch = x_ref.shape[0]
    inv_b = jnp.float32(1.0 / batch)

    def linear(h_f32, w_ref, b_ref):
        # bf16 operands into the MXU, f32 accumulation, f32 bias add.
        return (
            jnp.dot(h_f32.astype(jnp.bfloat16), w_ref[...],
                    preferred_element_type=jnp.float32)
            + b_ref[...]
        )

    def block(h_f32, w_ref, b_ref, g_ref, be_ref):
        h = linear(h_f32, w_ref, b_ref)
        # LeakyReLU(0.2): identical to where(x>0, x, 0.2x) for slope in (0,1).
        h = jnp.maximum(h, LEAKY_SLOPE * h)
        # BatchNorm1d training-mode batch stats, single pass, all in f32.
        mean = jnp.sum(h, axis=0, keepdims=True) * inv_b
        mean_sq = jnp.sum(h * h, axis=0, keepdims=True) * inv_b
        var = jnp.maximum(mean_sq - mean * mean, 0.0)
        # Fold BN into one per-feature affine: h * scale + shift.
        scale = g_ref[...] * jax.lax.rsqrt(var + BN_EPS)
        shift = be_ref[...] - mean * scale
        return h * scale + shift

    h = block(x_ref[...], w1_ref, b1_ref, g1_ref, be1_ref)   # latent -> 256
    h = block(h, w2_ref, b2_ref, g2_ref, be2_ref)             # 256 -> 512
    h = block(h, w3_ref, b3_ref, g3_ref, be3_ref)             # 512 -> 1024

    out = linear(h, w4_ref, b4_ref)                           # 1024 -> out_pad
    o_ref[...] = jnp.tanh(out)


def _round_up(x, m):
    return (x + m - 1) // m * m


@functools.partial(jax.jit, static_argnames=("img_shape",))
def generator_forward(noise, params, img_shape):
    B = noise.shape[0]
    latent = noise.shape[1]
    out_dim = int(np.prod(img_shape))
    out_pad = _round_up(out_dim, 128)

    w4 = params["w4"]
    b4 = params["b4"]
    if w4.shape[1] != out_pad:
        # Pad the output head so stores are lane-dense (unmasked vst).
        w4 = jnp.pad(w4, ((0, 0), (0, out_pad - out_dim)))
        b4 = jnp.pad(b4, ((0, 0), (0, out_pad - out_dim)))

    args = (
        noise,
        params["w1"], params["b1"], params["g1"], params["be1"],
        params["w2"], params["b2"], params["g2"], params["be2"],
        params["w3"], params["b3"], params["g3"], params["be3"],
        w4, b4,
    )

    # Advisory cost estimate: this call is weight-DMA-bound at these shapes.
    flops = 2 * B * (latent * 256 + 256 * 512 + 512 * 1024 + 1024 * out_pad)
    transcendentals = B * out_pad + 3 * (256 + 512 + 1024)  # tanh + rsqrt
    arg_bytes = sum(int(a.size) * a.dtype.itemsize for a in args)
    out_bytes = B * out_pad * 4
    cost = pl.CostEstimate(
        flops=flops,
        transcendentals=transcendentals,
        bytes_accessed=arg_bytes + out_bytes,
    )

    # Explicit scoped-VMEM budget (important on v7x: 64 MiB physical).
    vmem_needed = 3 * (arg_bytes + out_bytes) + (4 << 20)
    vmem_limit = int(min(60 << 20, max(32 << 20, vmem_needed)))

    vmem_spec = pl.BlockSpec(memory_space=pltpu.MemorySpace.VMEM)

    flat = pl.pallas_call(
        generator_kernel,
        out_shape=jax.ShapeDtypeStruct((B, out_pad), jnp.float32),
        in_specs=[vmem_spec] * len(args),
        out_specs=vmem_spec,
        compiler_params=pltpu.CompilerParams(vmem_limit_bytes=vmem_limit),
        cost_estimate=cost,
    )(*args)

    if out_pad != out_dim:
        flat = flat[:, :out_dim]
    return flat.reshape((B,) + tuple(img_shape))


def init_params(key, latent_dim, img_shape):
    """Init mirroring PyTorch nn.Linear defaults (uniform +-1/sqrt(fan_in)) and
    BatchNorm1d defaults (gamma=1, beta=0). Weights are stored as [in, out]
    in bfloat16 (streamed to the MXU); biases / BN params stay float32."""
    out_dim = int(np.prod(img_shape))
    dims = [(latent_dim, 256), (256, 512), (512, 1024), (1024, out_dim)]
    params = {}
    keys = jax.random.split(key, 2 * len(dims))
    for i, (fan_in, fan_out) in enumerate(dims):
        bound = 1.0 / float(np.sqrt(fan_in))
        w = jax.random.uniform(keys[2 * i], (fan_in, fan_out), jnp.float32,
                               minval=-bound, maxval=bound)
        b = jax.random.uniform(keys[2 * i + 1], (1, fan_out), jnp.float32,
                               minval=-bound, maxval=bound)
        params[f"w{i + 1}"] = w.astype(jnp.bfloat16)  # bf16 weight streaming
        params[f"b{i + 1}"] = b                       # f32 bias
        if i < 3:  # BN only after the first three Linear+LeakyReLU blocks
            params[f"g{i + 1}"] = jnp.ones((1, fan_out), jnp.float32)
            params[f"be{i + 1}"] = jnp.zeros((1, fan_out), jnp.float32)
    return params


if __name__ == "__main__":
    latent_dim = 32
    img_shape = (1, 16, 16)  # prod = 256 (already a lane multiple)
    batch = 8

    key = jax.random.PRNGKey(0)
    k_noise, k_params = jax.random.split(key)

    noise = jax.random.normal(k_noise, (batch, latent_dim), jnp.float32)
    params = init_params(k_params, latent_dim, img_shape)

    img = generator_forward(noise, params, img_shape)
    jax.block_until_ready(img)

    assert img.shape == (batch,) + img_shape
    assert img.dtype == jnp.float32
    assert bool(jnp.all(jnp.isfinite(img)))
    assert bool(jnp.all(jnp.abs(img) <= 1.0))  # tanh output range

    print("KERNEL_OK")
</pallas_src>

<mosaic_0001>
module attributes {stable_mosaic.version = 11 : i64} {
  func.func @generator_kernel(%arg0: memref<8x32xf32, #tpu.memory_space<vmem>>, %arg1: memref<32x256xbf16, #tpu.memory_space<vmem>>, %arg2: memref<1x256xf32, #tpu.memory_space<vmem>>, %arg3: memref<1x256xf32, #tpu.memory_space<vmem>>, %arg4: memref<1x256xf32, #tpu.memory_space<vmem>>, %arg5: memref<256x512xbf16, #tpu.memory_space<vmem>>, %arg6: memref<1x512xf32, #tpu.memory_space<vmem>>, %arg7: memref<1x512xf32, #tpu.memory_space<vmem>>, %arg8: memref<1x512xf32, #tpu.memory_space<vmem>>, %arg9: memref<512x1024xbf16, #tpu.memory_space<vmem>>, %arg10: memref<1x1024xf32, #tpu.memory_space<vmem>>, %arg11: memref<1x1024xf32, #tpu.memory_space<vmem>>, %arg12: memref<1x1024xf32, #tpu.memory_space<vmem>>, %arg13: memref<1024x256xbf16, #tpu.memory_space<vmem>>, %arg14: memref<1x256xf32, #tpu.memory_space<vmem>>, %arg15: memref<8x256xf32, #tpu.memory_space<vmem>>) attributes {dimension_semantics = [], scalar_prefetch = 0 : i64, scratch_operands = 0 : i64, tpu.core_type = #tpu.core_type<tc>} {
    %c0 = arith.constant 0 : index
    %c0_0 = arith.constant 0 : index
    %0 = vector.load %arg0[%c0, %c0_0] : memref<8x32xf32, #tpu.memory_space<vmem>>, vector<8x32xf32>
    %1 = arith.truncf %0 : vector<8x32xf32> to vector<8x32xbf16>
    %c0_1 = arith.constant 0 : index
    %c0_2 = arith.constant 0 : index
    %2 = vector.load %arg1[%c0_1, %c0_2] : memref<32x256xbf16, #tpu.memory_space<vmem>>, vector<32x256xbf16>
    %cst = arith.constant dense<0.000000e+00> : vector<8x256xf32>
    %3 = tpu.matmul %1, %2, %cst {dimension_numbers = #tpu.dot_dimension_numbers<[1], [0], [0], [1], [0, 0, 1, 1], [], []>} : vector<8x32xbf16>, vector<32x256xbf16>, vector<8x256xf32> -> vector<8x256xf32>
    %c0_3 = arith.constant 0 : index
    %c0_4 = arith.constant 0 : index
    %4 = vector.load %arg2[%c0_3, %c0_4] : memref<1x256xf32, #tpu.memory_space<vmem>>, vector<1x256xf32>
    %5 = vector.broadcast %4 : vector<1x256xf32> to vector<8x256xf32>
    %6 = arith.addf %3, %5 : vector<8x256xf32>
    %cst_5 = arith.constant 2.000000e-01 : f32
    %7 = vector.broadcast %cst_5 : f32 to vector<8x256xf32>
    %8 = arith.mulf %7, %6 : vector<8x256xf32>
    %9 = arith.maximumf %6, %8 : vector<8x256xf32>
    %cst_6 = arith.constant dense<0.000000e+00> : vector<256xf32>
    %10 = vector.multi_reduction <add>, %9, %cst_6 [0] : vector<8x256xf32> to vector<256xf32>
    %11 = vector.shape_cast %10 : vector<256xf32> to vector<1x256xf32>
    %cst_7 = arith.constant 1.250000e-01 : f32
    %12 = vector.broadcast %cst_7 : f32 to vector<1x256xf32>
    %13 = arith.mulf %11, %12 : vector<1x256xf32>
    %14 = arith.mulf %9, %9 : vector<8x256xf32>
    %cst_8 = arith.constant dense<0.000000e+00> : vector<256xf32>
    %15 = vector.multi_reduction <add>, %14, %cst_8 [0] : vector<8x256xf32> to vector<256xf32>
    %16 = vector.shape_cast %15 : vector<256xf32> to vector<1x256xf32>
    %cst_9 = arith.constant 1.250000e-01 : f32
    %17 = vector.broadcast %cst_9 : f32 to vector<1x256xf32>
    %18 = arith.mulf %16, %17 : vector<1x256xf32>
    %19 = arith.mulf %13, %13 : vector<1x256xf32>
    %20 = arith.subf %18, %19 : vector<1x256xf32>
    %cst_10 = arith.constant 0.000000e+00 : f32
    %21 = vector.broadcast %cst_10 : f32 to vector<1x256xf32>
    %22 = arith.maximumf %20, %21 : vector<1x256xf32>
    %c0_11 = arith.constant 0 : index
    %c0_12 = arith.constant 0 : index
    %23 = vector.load %arg3[%c0_11, %c0_12] : memref<1x256xf32, #tpu.memory_space<vmem>>, vector<1x256xf32>
    %cst_13 = arith.constant 9.99999974E-6 : f32
    %24 = vector.broadcast %cst_13 : f32 to vector<1x256xf32>
    %25 = arith.addf %22, %24 : vector<1x256xf32>
    %26 = math.rsqrt %25 : vector<1x256xf32>
    %27 = arith.mulf %23, %26 : vector<1x256xf32>
    %c0_14 = arith.constant 0 : index
    %c0_15 = arith.constant 0 : index
    %28 = vector.load %arg4[%c0_14, %c0_15] : memref<1x256xf32, #tpu.memory_space<vmem>>, vector<1x256xf32>
    %29 = arith.mulf %13, %27 : vector<1x256xf32>
    %30 = arith.subf %28, %29 : vector<1x256xf32>
    %31 = vector.broadcast %27 : vector<1x256xf32> to vector<8x256xf32>
    %32 = arith.mulf %9, %31 : vector<8x256xf32>
    %33 = vector.broadcast %30 : vector<1x256xf32> to vector<8x256xf32>
    %34 = arith.addf %32, %33 : vector<8x256xf32>
    %35 = arith.truncf %34 : vector<8x256xf32> to vector<8x256xbf16>
    %c0_16 = arith.constant 0 : index
    %c0_17 = arith.constant 0 : index
    %36 = vector.load %arg5[%c0_16, %c0_17] : memref<256x512xbf16, #tpu.memory_space<vmem>>, vector<256x512xbf16>
    %cst_18 = arith.constant dense<0.000000e+00> : vector<8x512xf32>
    %37 = tpu.matmul %35, %36, %cst_18 {dimension_numbers = #tpu.dot_dimension_numbers<[1], [0], [0], [1], [0, 0, 1, 1], [], []>} : vector<8x256xbf16>, vector<256x512xbf16>, vector<8x512xf32> -> vector<8x512xf32>
    %c0_19 = arith.constant 0 : index
    %c0_20 = arith.constant 0 : index
    %38 = vector.load %arg6[%c0_19, %c0_20] : memref<1x512xf32, #tpu.memory_space<vmem>>, vector<1x512xf32>
    %39 = vector.broadcast %38 : vector<1x512xf32> to vector<8x512xf32>
    %40 = arith.addf %37, %39 : vector<8x512xf32>
    %cst_21 = arith.constant 2.000000e-01 : f32
    %41 = vector.broadcast %cst_21 : f32 to vector<8x512xf32>
    %42 = arith.mulf %41, %40 : vector<8x512xf32>
    %43 = arith.maximumf %40, %42 : vector<8x512xf32>
    %cst_22 = arith.constant dense<0.000000e+00> : vector<512xf32>
    %44 = vector.multi_reduction <add>, %43, %cst_22 [0] : vector<8x512xf32> to vector<512xf32>
    %45 = vector.shape_cast %44 : vector<512xf32> to vector<1x512xf32>
    %cst_23 = arith.constant 1.250000e-01 : f32
    %46 = vector.broadcast %cst_23 : f32 to vector<1x512xf32>
    %47 = arith.mulf %45, %46 : vector<1x512xf32>
    %48 = arith.mulf %43, %43 : vector<8x512xf32>
    %cst_24 = arith.constant dense<0.000000e+00> : vector<512xf32>
    %49 = vector.multi_reduction <add>, %48, %cst_24 [0] : vector<8x512xf32> to vector<512xf32>
    %50 = vector.shape_cast %49 : vector<512xf32> to vector<1x512xf32>
    %cst_25 = arith.constant 1.250000e-01 : f32
    %51 = vector.broadcast %cst_25 : f32 to vector<1x512xf32>
    %52 = arith.mulf %50, %51 : vector<1x512xf32>
    %53 = arith.mulf %47, %47 : vector<1x512xf32>
    %54 = arith.subf %52, %53 : vector<1x512xf32>
    %cst_26 = arith.constant 0.000000e+00 : f32
    %55 = vector.broadcast %cst_26 : f32 to vector<1x512xf32>
    %56 = arith.maximumf %54, %55 : vector<1x512xf32>
    %c0_27 = arith.constant 0 : index
    %c0_28 = arith.constant 0 : index
    %57 = vector.load %arg7[%c0_27, %c0_28] : memref<1x512xf32, #tpu.memory_space<vmem>>, vector<1x512xf32>
    %cst_29 = arith.constant 9.99999974E-6 : f32
    %58 = vector.broadcast %cst_29 : f32 to vector<1x512xf32>
    %59 = arith.addf %56, %58 : vector<1x512xf32>
    %60 = math.rsqrt %59 : vector<1x512xf32>
    %61 = arith.mulf %57, %60 : vector<1x512xf32>
    %c0_30 = arith.constant 0 : index
    %c0_31 = arith.constant 0 : index
    %62 = vector.load %arg8[%c0_30, %c0_31] : memref<1x512xf32, #tpu.memory_space<vmem>>, vector<1x512xf32>
    %63 = arith.mulf %47, %61 : vector<1x512xf32>
    %64 = arith.subf %62, %63 : vector<1x512xf32>
    %65 = vector.broadcast %61 : vector<1x512xf32> to vector<8x512xf32>
    %66 = arith.mulf %43, %65 : vector<8x512xf32>
    %67 = vector.broadcast %64 : vector<1x512xf32> to vector<8x512xf32>
    %68 = arith.addf %66, %67 : vector<8x512xf32>
    %69 = arith.truncf %68 : vector<8x512xf32> to vector<8x512xbf16>
    %c0_32 = arith.constant 0 : index
    %c0_33 = arith.constant 0 : index
    %70 = vector.load %arg9[%c0_32, %c0_33] : memref<512x1024xbf16, #tpu.memory_space<vmem>>, vector<512x1024xbf16>
    %cst_34 = arith.constant dense<0.000000e+00> : vector<8x1024xf32>
    %71 = tpu.matmul %69, %70, %cst_34 {dimension_numbers = #tpu.dot_dimension_numbers<[1], [0], [0], [1], [0, 0, 1, 1], [], []>} : vector<8x512xbf16>, vector<512x1024xbf16>, vector<8x1024xf32> -> vector<8x1024xf32>
    %c0_35 = arith.constant 0 : index
    %c0_36 = arith.constant 0 : index
    %72 = vector.load %arg10[%c0_35, %c0_36] : memref<1x1024xf32, #tpu.memory_space<vmem>>, vector<1x1024xf32>
    %73 = vector.broadcast %72 : vector<1x1024xf32> to vector<8x1024xf32>
    %74 = arith.addf %71, %73 : vector<8x1024xf32>
    %cst_37 = arith.constant 2.000000e-01 : f32
    %75 = vector.broadcast %cst_37 : f32 to vector<8x1024xf32>
    %76 = arith.mulf %75, %74 : vector<8x1024xf32>
    %77 = arith.maximumf %74, %76 : vector<8x1024xf32>
    %cst_38 = arith.constant dense<0.000000e+00> : vector<1024xf32>
    %78 = vector.multi_reduction <add>, %77, %cst_38 [0] : vector<8x1024xf32> to vector<1024xf32>
    %79 = vector.shape_cast %78 : vector<1024xf32> to vector<1x1024xf32>
    %cst_39 = arith.constant 1.250000e-01 : f32
    %80 = vector.broadcast %cst_39 : f32 to vector<1x1024xf32>
    %81 = arith.mulf %79, %80 : vector<1x1024xf32>
    %82 = arith.mulf %77, %77 : vector<8x1024xf32>
    %cst_40 = arith.constant dense<0.000000e+00> : vector<1024xf32>
    %83 = vector.multi_reduction <add>, %82, %cst_40 [0] : vector<8x1024xf32> to vector<1024xf32>
    %84 = vector.shape_cast %83 : vector<1024xf32> to vector<1x1024xf32>
    %cst_41 = arith.constant 1.250000e-01 : f32
    %85 = vector.broadcast %cst_41 : f32 to vector<1x1024xf32>
    %86 = arith.mulf %84, %85 : vector<1x1024xf32>
    %87 = arith.mulf %81, %81 : vector<1x1024xf32>
    %88 = arith.subf %86, %87 : vector<1x1024xf32>
    %cst_42 = arith.constant 0.000000e+00 : f32
    %89 = vector.broadcast %cst_42 : f32 to vector<1x1024xf32>
    %90 = arith.maximumf %88, %89 : vector<1x1024xf32>
    %c0_43 = arith.constant 0 : index
    %c0_44 = arith.constant 0 : index
    %91 = vector.load %arg11[%c0_43, %c0_44] : memref<1x1024xf32, #tpu.memory_space<vmem>>, vector<1x1024xf32>
    %cst_45 = arith.constant 9.99999974E-6 : f32
    %92 = vector.broadcast %cst_45 : f32 to vector<1x1024xf32>
    %93 = arith.addf %90, %92 : vector<1x1024xf32>
    %94 = math.rsqrt %93 : vector<1x1024xf32>
    %95 = arith.mulf %91, %94 : vector<1x1024xf32>
    %c0_46 = arith.constant 0 : index
    %c0_47 = arith.constant 0 : index
    %96 = vector.load %arg12[%c0_46, %c0_47] : memref<1x1024xf32, #tpu.memory_space<vmem>>, vector<1x1024xf32>
    %97 = arith.mulf %81, %95 : vector<1x1024xf32>
    %98 = arith.subf %96, %97 : vector<1x1024xf32>
    %99 = vector.broadcast %95 : vector<1x1024xf32> to vector<8x1024xf32>
    %100 = arith.mulf %77, %99 : vector<8x1024xf32>
    %101 = vector.broadcast %98 : vector<1x1024xf32> to vector<8x1024xf32>
    %102 = arith.addf %100, %101 : vector<8x1024xf32>
    %103 = arith.truncf %102 : vector<8x1024xf32> to vector<8x1024xbf16>
    %c0_48 = arith.constant 0 : index
    %c0_49 = arith.constant 0 : index
    %104 = vector.load %arg13[%c0_48, %c0_49] : memref<1024x256xbf16, #tpu.memory_space<vmem>>, vector<1024x256xbf16>
    %cst_50 = arith.constant dense<0.000000e+00> : vector<8x256xf32>
    %105 = tpu.matmul %103, %104, %cst_50 {dimension_numbers = #tpu.dot_dimension_numbers<[1], [0], [0], [1], [0, 0, 1, 1], [], []>} : vector<8x1024xbf16>, vector<1024x256xbf16>, vector<8x256xf32> -> vector<8x256xf32>
    %c0_51 = arith.constant 0 : index
    %c0_52 = arith.constant 0 : index
    %106 = vector.load %arg14[%c0_51, %c0_52] : memref<1x256xf32, #tpu.memory_space<vmem>>, vector<1x256xf32>
    %107 = vector.broadcast %106 : vector<1x256xf32> to vector<8x256xf32>
    %108 = arith.addf %105, %107 : vector<8x256xf32>
    %109 = math.tanh %108 : vector<8x256xf32>
    %c0_53 = arith.constant 0 : index
    %c0_54 = arith.constant 0 : index
    %110 = vector.load %arg15[%c0_53, %c0_54] : memref<8x256xf32, #tpu.memory_space<vmem>>, vector<8x256xf32>
    tpu.vector_store %arg15[%c0_53, %c0_54], %109 {strides = array<i32>} : memref<8x256xf32, #tpu.memory_space<vmem>>, vector<8x256xf32>,
    return
  }
}

</mosaic_0001>

<bundles_post_ra>
// kernel: generator_forward.1
= control target key start
LH: loop header
LB: loop body
LE: loop exit
PB: predicated region body
PF: predicated region fallthrough
CT: control target
= control target key end

     0   :  { %20 = vsyncpa [#allocation3], 0  ;;  %s5898_s0 = inlined_call_operand.hbm [shape: f32[8,32], index: 0, kind: input, shape index: {}]   ;;  %s5899_s1 = inlined_call_operand.hbm [shape: bf16[32,256], index: 1, kind: input, shape index: {}]   ;;  %s5900_s2 = inlined_call_operand.hbm [shape: f32[1,256], index: 2, kind: input, shape index: {}]   ;;  %s5901_s3 = inlined_call_operand.hbm [shape: f32[1,256], index: 3, kind: input, shape index: {}]   ;;  %s5902_s4 = inlined_call_operand.hbm [shape: f32[1,256], index: 4, kind: input, shape index: {}]   ;;  %s5903_s5 = inlined_call_operand.hbm [shape: bf16[256,512], index: 5, kind: input, shape index: {}]   ;;  %s5904_s6 = inlined_call_operand.hbm [shape: f32[1,512], index: 6, kind: input, shape index: {}]   ;;  %s5905_s7 = inlined_call_operand.hbm [shape: f32[1,512], index: 7, kind: input, shape index: {}]   ;;  %s5906_s8 = inlined_call_operand.hbm [shape: f32[1,512], index: 8, kind: input, shape index: {}]   ;;  %s5907_s9 = inlined_call_operand.hbm [shape: bf16[512,1024], index: 9, kind: input, shape index: {}]   ;;  %s5908_s10 = inlined_call_operand.hbm [shape: f32[1,1024], index: 10, kind: input, shape index: {}]   ;;  %s5909_s11 = inlined_call_operand.vmem [shape: f32[1,1024], index: 11, kind: input, shape index: {}]   ;;  %s5910_s12 = inlined_call_operand.vmem [shape: f32[1,1024], index: 12, kind: input, shape index: {}]   ;;  %s5911_s13 = inlined_call_operand.hbm [shape: bf16[1024,256], index: 13, kind: input, shape index: {}]   ;;  %s5912_s14 = inlined_call_operand.hbm [shape: f32[1,256], index: 14, kind: input, shape index: {}]   ;;  %s5913_s15 = inlined_call_operand.vmem [shape: f32[8,256], index: 15, kind: output, shape index: {}]  }
   0x1   :  { %21 = vsyncpa [#allocation5], 0 }
   0x2   :  { %22 = vsyncpa [#allocation8], 0 }
   0x3   :  { %23 = vsyncpa [#allocation11], 0 }
   0x4   :  { %24 = vsyncpa [#allocation14], 0 }
   0x5   :  { %25 = vsyncpa [#allocation17], 0 }
   0x6   :  { %26 = vsyncpa [#allocation20], 0  ;;  %s5451_s18 = smov [#allocation4]  }
   0x7   :  { %s42_s19 = sshll.u32 %s5451_s18, 4  ;;  %s43_s19 = int_to_ptr.vmem [resolvable:$true] %s42_s19 }
   0x8   :  { %s5185_s20 = scalar_lea.vmem %s43_s19, 512  ;;  %p5190_p1 = scmp.lt.s32.totalorder %s43_s19, %s43_s19 }
   0x9   :  { %p5186_p0 = scmp.ne.s32.totalorder %s43_s19, %s5185_s20  ;;  %p5191_p2 = scmp.lt.s32.totalorder %s5185_s20, %s5185_s20 }
   0xb   :  { %p5192_p3 = por %p5191_p2, %p5190_p1 }
   0xd   :  { %p5193_p4 = pnand %p5192_p3, %p5186_p0 }
   0xf   :  { %5196 = shalt.err (!%p5193_p4)
}
  0x10   :  { %s5452_s21 = smov 128   ;;  %s5453_s22 = smov 8  }
  0x11   :  { %48 = dma.hbm_to_vmem [thread:$0]  %s5899_s1, 512, %s43_s19, [#allocation5], %s5452_s21, %s5452_s21, %s5453_s22  }
  0x12   :  { %s5454_s25 = smov [#allocation7]   ;;  %s5455_s27 = smov [#allocation10]  }
  0x13   :  { %s65_s26 = sshll.u32 %s5454_s25, 4  ;;  %s84_s28 = sshll.u32 %s5455_s27, 4  ;;  %s66_s26 = int_to_ptr.vmem [resolvable:$true] %s65_s26  ;;  %s85_s28 = int_to_ptr.vmem [resolvable:$true] %s84_s28 }
  0x14   :  { %s5205_s29 = scalar_lea.vmem %s66_s26, 32  ;;  %p5210_p6 = scmp.lt.s32.totalorder %s66_s26, %s66_s26 }
  0x15   :  { %p5206_p5 = scmp.ne.s32.totalorder %s66_s26, %s5205_s29  ;;  %p5211_p7 = scmp.lt.s32.totalorder %s5205_s29, %s5205_s29 }
  0x17   :  { %p5212_p8 = por %p5211_p7, %p5210_p6 }
  0x19   :  { %p5213_p9 = pnand %p5212_p8, %p5206_p5 }
  0x1b   :  { %5216 = shalt.err (!%p5213_p9)
}
  0x1c   :  { %68 = dma.hbm_to_vmem [thread:$0]  %s5901_s3, 32, %s66_s26, [#allocation8]  }
  0x1d   :  { %s5225_s17 = scalar_lea.vmem %s85_s28, 8192  ;;  %p5230_p11 = scmp.lt.s32.totalorder %s85_s28, %s85_s28 }
  0x1e   :  { %p5226_p10 = scmp.ne.s32.totalorder %s85_s28, %s5225_s17  ;;  %p5231_p12 = scmp.lt.s32.totalorder %s5225_s17, %s5225_s17 }
  0x20   :  { %p5232_p13 = por %p5231_p12, %p5230_p11 }
  0x22   :  { %p5233_p0 = pnand %p5232_p13, %p5226_p10 }
  0x24   :  { %5236 = shalt.err (!%p5233_p0)
}
  0x25   :  { %s5456_s1 = smov 256   ;;  %s5457_s18 = smov 16  }
  0x26   :  { %90 = dma.hbm_to_vmem [thread:$0]  %s5903_s5, 8192, %s85_s28, [#allocation11], %s5456_s1, %s5456_s1, %s5457_s18  }
  0x27   :  { %s5458_s23 = smov [#allocation13]   ;;  %s5459_s25 = smov [#allocation16]  }
  0x28   :  { %s107_s24 = sshll.u32 %s5458_s23, 4  ;;  %s126_s27 = sshll.u32 %s5459_s25, 4  ;;  %s108_s24 = int_to_ptr.vmem [resolvable:$true] %s107_s24  ;;  %s127_s27 = int_to_ptr.vmem [resolvable:$true] %s126_s27 }
  0x29   :  { %s5245_s3 = scalar_lea.vmem %s108_s24, 64  ;;  %p5250_p2 = scmp.lt.s32.totalorder %s108_s24, %s108_s24 }
  0x2a   :  { %p5246_p1 = scmp.ne.s32.totalorder %s108_s24, %s5245_s3  ;;  %p5251_p3 = scmp.lt.s32.totalorder %s5245_s3, %s5245_s3 }
  0x2c   :  { %p5252_p4 = por %p5251_p3, %p5250_p2 }
  0x2e   :  { %p5253_p5 = pnand %p5252_p4, %p5246_p1 }
  0x30   :  { %5256 = shalt.err (!%p5253_p5)
}
  0x31   :  { %110 = dma.hbm_to_vmem [thread:$0]  %s5905_s7, 64, %s108_s24, [#allocation14]  }
  0x32   :  { %s5265_s30 = scalar_lea.vmem %s127_s27, 32768  ;;  %p5270_p7 = scmp.lt.s32.totalorder %s127_s27, %s127_s27 }
  0x33   :  { %p5266_p6 = scmp.ne.s32.totalorder %s127_s27, %s5265_s30  ;;  %p5271_p8 = scmp.lt.s32.totalorder %s5265_s30, %s5265_s30 }
  0x35   :  { %p5272_p9 = por %p5271_p8, %p5270_p7 }
  0x37   :  { %p5273_p10 = pnand %p5272_p9, %p5266_p6 }
  0x39   :  { %5276 = shalt.err (!%p5273_p10)
}
  0x3a   :  { %s5460_s5 = smov 512   ;;  %s5461_s28 = smov 32  }
  0x3b   :  { %132 = dma.hbm_to_vmem [thread:$0]  %s5907_s9, 32768, %s127_s27, [#allocation17], %s5460_s5, %s5460_s5, %s5461_s28  }
  0x3c   :  { %s5462_s1 = smov [#allocation19]   ;;  %s5463_s19 = smov [#allocation2]  }
  0x3d   :  { %s152_s18 = sshll.u32 %s5462_s1, 4  ;;  %s33_s20 = sshll.u32 %s5463_s19, 4  ;;  %s153_s18 = int_to_ptr.vmem [resolvable:$true] %s152_s18  ;;  %s34_s20 = int_to_ptr.vmem [resolvable:$true] %s33_s20 }
  0x3e   :  { %s5285_s7 = scalar_lea.vmem %s153_s18, 16384  ;;  %p5290_p12 = scmp.lt.s32.totalorder %s153_s18, %s153_s18 }
  0x3f   :  { %p5286_p11 = scmp.ne.s32.totalorder %s153_s18, %s5285_s7  ;;  %p5291_p13 = scmp.lt.s32.totalorder %s5285_s7, %s5285_s7 }
  0x41   :  { %p5292_p0 = por %p5291_p13, %p5290_p12 }
  0x43   :  { %p5293_p1 = pnand %p5292_p0, %p5286_p11 }
  0x45   :  { %5296 = shalt.err (!%p5293_p1)
}
  0x46   :  { %158 = dma.hbm_to_vmem [thread:$0]  %s5911_s13, 16384, %s153_s18, [#allocation20], %s5452_s21, %s5452_s21, %s5453_s22  }
  0x47   :  { %s5305_s9 = scalar_lea.vmem %s34_s20, 128  ;;  %p5310_p3 = scmp.lt.s32.totalorder %s34_s20, %s34_s20 }
  0x48   :  { %p5306_p2 = scmp.ne.s32.totalorder %s34_s20, %s5305_s9  ;;  %p5311_p4 = scmp.lt.s32.totalorder %s5305_s9, %s5305_s9 }
  0x4a   :  { %p5312_p5 = por %p5311_p4, %p5310_p3 }
  0x4c   :  { %p5313_p6 = pnand %p5312_p5, %p5306_p2 }
  0x4e   :  { %5316 = shalt.err (!%p5313_p6)
}
  0x4f   :  { %36 = dma.hbm_to_vmem [thread:$0]  %s5898_s0, 128, %s34_s20, [#allocation3]  }
  0x50   :  { %s5464_s3 = smov [#allocation6]   ;;  %s5465_s29 = smov [#allocation9]  }
  0x51   :  { %s55_s26 = sshll.u32 %s5464_s3, 4  ;;  %s75_s30 = sshll.u32 %s5465_s29, 4  ;;  %s56_s26 = int_to_ptr.vmem [resolvable:$true] %s55_s26  ;;  %s76_s30 = int_to_ptr.vmem [resolvable:$true] %s75_s30 }
  0x52   :  { %s5325_s5 = scalar_lea.vmem %s56_s26, 32  ;;  %p5330_p8 = scmp.lt.s32.totalorder %s56_s26, %s56_s26 }
  0x53   :  { %p5326_p7 = scmp.ne.s32.totalorder %s56_s26, %s5325_s5  ;;  %p5331_p9 = scmp.lt.s32.totalorder %s5325_s5, %s5325_s5 }
  0x55   :  { %p5332_p10 = por %p5331_p9, %p5330_p8 }
  0x57   :  { %p5333_p11 = pnand %p5332_p10, %p5326_p7 }
  0x59   :  { %5336 = shalt.err (!%p5333_p11)
}
  0x5a   :  { %58 = dma.hbm_to_vmem [thread:$0]  %s5900_s2, 32, %s56_s26, [#allocation5]  }
  0x5b   :  { %s5345_s22 = scalar_lea.vmem %s76_s30, 32  ;;  %p5350_p13 = scmp.lt.s32.totalorder %s76_s30, %s76_s30 }
  0x5c   :  { %p5346_p12 = scmp.ne.s32.totalorder %s76_s30, %s5345_s22  ;;  %p5351_p0 = scmp.lt.s32.totalorder %s5345_s22, %s5345_s22 }
  0x5e   :  { %p5352_p1 = por %p5351_p0, %p5350_p13 }
  0x60   :  { %p5353_p2 = pnand %p5352_p1, %p5346_p12 }
  0x62   :  { %5356 = shalt.err (!%p5353_p2)
}
  0x63   :  { %78 = dma.hbm_to_vmem [thread:$0]  %s5902_s4, 32, %s76_s30, [#allocation8]  }
  0x64   :  { %s5466_s16 = smov [#allocation12]   ;;  %s5467_s1 = smov [#allocation15]  }
  0x65   :  { %s97_s17 = sshll.u32 %s5466_s16, 4  ;;  %s117_s18 = sshll.u32 %s5467_s1, 4  ;;  %s98_s17 = int_to_ptr.vmem [resolvable:$true] %s97_s17  ;;  %s118_s18 = int_to_ptr.vmem [resolvable:$true] %s117_s18 }
  0x66   :  { %s5365_s19 = scalar_lea.vmem %s98_s17, 64  ;;  %p5370_p4 = scmp.lt.s32.totalorder %s98_s17, %s98_s17 }
  0x67   :  { %p5366_p3 = scmp.ne.s32.totalorder %s98_s17, %s5365_s19  ;;  %p5371_p5 = scmp.lt.s32.totalorder %s5365_s19, %s5365_s19 }
  0x69   :  { %p5372_p6 = por %p5371_p5, %p5370_p4 }
  0x6b   :  { %p5373_p7 = pnand %p5372_p6, %p5366_p3 }
  0x6d   :  { %5376 = shalt.err (!%p5373_p7)
}
  0x6e   :  { %100 = dma.hbm_to_vmem [thread:$0]  %s5904_s6, 64, %s98_s17, [#allocation11]  }
  0x6f   :  { %s5385_s7 = scalar_lea.vmem %s118_s18, 64  ;;  %p5390_p9 = scmp.lt.s32.totalorder %s118_s18, %s118_s18 }
  0x70   :  { %p5386_p8 = scmp.ne.s32.totalorder %s118_s18, %s5385_s7  ;;  %p5391_p10 = scmp.lt.s32.totalorder %s5385_s7, %s5385_s7 }
  0x72   :  { %p5392_p11 = por %p5391_p10, %p5390_p9 }
  0x74   :  { %p5393_p12 = pnand %p5392_p11, %p5386_p8 }
  0x76   :  { %5396 = shalt.err (!%p5393_p12)
}
  0x77   :  { %120 = dma.hbm_to_vmem [thread:$0]  %s5906_s8, 64, %s118_s18, [#allocation14]  }
  0x78   :  { %s5468_s24 = smov [#allocation18]   ;;  %s5469_s25 = smov [#allocation21]  }
  0x79   :  { %s139_s9 = sshll.u32 %s5468_s24, 4  ;;  %s165_s27 = sshll.u32 %s5469_s25, 4  ;;  %s140_s9 = int_to_ptr.vmem [resolvable:$true] %s139_s9  ;;  %s166_s27 = int_to_ptr.vmem [resolvable:$true] %s165_s27 }
  0x7a   :  { %s5405_s3 = scalar_lea.vmem %s140_s9, 128  ;;  %p5410_p0 = scmp.lt.s32.totalorder %s140_s9, %s140_s9 }
  0x7b   :  { %p5406_p13 = scmp.ne.s32.totalorder %s140_s9, %s5405_s3  ;;  %p5411_p1 = scmp.lt.s32.totalorder %s5405_s3, %s5405_s3 }
  0x7d   :  { %p5412_p2 = por %p5411_p1, %p5410_p0 }
  0x7f   :  { %p5413_p3 = pnand %p5412_p2, %p5406_p13 }
  0x81   :  { %5416 = shalt.err (!%p5413_p3)
}
  0x82   :  { %142 = dma.hbm_to_vmem [thread:$0]  %s5908_s10, 128, %s140_s9, [#allocation17]  }
  0x83   :  { %s5425_s29 = scalar_lea.vmem %s166_s27, 32  ;;  %p5430_p5 = scmp.lt.s32.totalorder %s166_s27, %s166_s27 }
  0x84   :  { %p5426_p4 = scmp.ne.s32.totalorder %s166_s27, %s5425_s29  ;;  %p5431_p6 = scmp.lt.s32.totalorder %s5425_s29, %s5425_s29 }
  0x86   :  { %p5432_p7 = por %p5431_p6, %p5430_p5 }
  0x88   :  { %p5433_p8 = pnand %p5432_p7, %p5426_p4 }
  0x8a   :  { %5436 = shalt.err (!%p5433_p8)
}
  0x8b   :  { %168 = dma.hbm_to_vmem [thread:$0]  %s5912_s14, 32, %s166_s27, [#allocation20]  }
  0x8c   :  { %5437 = dma.done.wait [#allocation3], 128  }
  0x8d   :  { %5438 = vsyncadd [#allocation3], 4294967168 }
  0x8e   :  { %5439 = dma.done.wait [#allocation5], 544  }
  0x8f   :  { %5440 = vsyncadd [#allocation5], 4294966752 }
  0x90   :  { %5441 = dma.done.wait [#allocation8], 64  }
  0x91   :  { %5442 = vsyncadd [#allocation8], 4294967232 }
  0x92   :  { %5443 = dma.done.wait [#allocation11], 8256  }
  0x93   :  { %5444 = vsyncadd [#allocation11], 4294959040 }
  0x94   :  { %5445 = dma.done.wait [#allocation14], 128  }
  0x95   :  { %5446 = vsyncadd [#allocation14], 4294967168 }
  0x96   :  { %5447 = dma.done.wait [#allocation17], 32896  }
  0x97   :  { %5448 = vsyncadd [#allocation17], 4294934400 }
  0x98   :  { %5449 = dma.done.wait [#allocation20], 16416  }
  0x99   :  { %5450 = vsyncadd [#allocation20], 4294950880  ;;  %v5470_v0 = vmov 0   ;;  %v4851_v1 = vld [vmem:[#allocation4 + $0x14] ss:$8 sps:$4 sm:$0xff]   ;;  %vm247_vm0 = vcmask 261120  }
  0x9a   :  { %283 = vmatprep.mubr.bf16.mxu0 %v5470_v0  ;;  %v4853_v2 = vld [vmem:[#allocation4 + $0x10] ss:$8 sps:$4 sm:$0xff]   ;;  %263 = vmatprep.subr.bf16.mxu0 %v4851_v1  ;;  %v4854_v3 = vld [vmem:[#allocation4 + $0x4] ss:$8 sps:$4 sm:$0xff]   ;;  %v4856_v4 = vld [vmem:[#allocation4] ss:$8 sps:$4 sm:$0xff]  }
  0x9b   :  { %264 = vmatpush1.bf16.msra.mxu0 %v4853_v2  ;;  %v209_v5 = vld [vmem:[#allocation2] sm:$0xff]  ;;  %v4861_v8 = vld [vmem:[#allocation10 + $0xec] ss:$16 sps:$4 sm:$0xff]  }
  0x9c   :  { %265 = vmatprep.subr.bf16.mxu0 %v4854_v3  ;;  %v210_v6 = vpack.c.bf16 %v209_v5, %v209_v5  ;;  %v4857_v7 = vld [vmem:[#allocation10 + $0xe4] ss:$16 sps:$4 sm:$0xff]   ;;  %v4859_v9 = vld [vmem:[#allocation10 + $0xe8] ss:$16 sps:$4 sm:$0xff]   ;;  %v4862_v10 = vld [vmem:[#allocation10 + $0xe0] ss:$16 sps:$4 sm:$0xff]  }
  0x9d   :  { %812 = vmatprep.subr.bf16.mxu1 %v4857_v7  ;;  %v4863_v11 = vld [vmem:[#allocation10 + $0xc4] ss:$16 sps:$4 sm:$0xff]   ;;  %v4867_v12 = vld [vmem:[#allocation10 + $0xcc] ss:$16 sps:$4 sm:$0xff]   ;;  %v4865_v13 = vld [vmem:[#allocation10 + $0xc8] ss:$16 sps:$4 sm:$0xff]   ;;  %v217_v7 = vlaneseq }
  0x9e   :  { %813 = vmatpush1.bf16.msra.mxu1 %v4862_v10  ;;  %v4868_v14 = vld [vmem:[#allocation10 + $0xc0] ss:$16 sps:$4 sm:$0xff]   ;;  %v4869_v15 = vld [vmem:[#allocation10 + $0xa4] ss:$16 sps:$4 sm:$0xff]   ;;  %v4873_v16 = vld [vmem:[#allocation10 + $0xac] ss:$16 sps:$4 sm:$0xff]  }
  0x9f   :  { %266 = vmatpush1.bf16.msra.mxu0 %v4856_v4  ;;  %814 = vmatprep.subr.bf16.mxu1 %v4863_v11  ;;  %v4871_v17 = vld [vmem:[#allocation10 + $0xa8] ss:$16 sps:$4 sm:$0xff]   ;;  %v4874_v18 = vld [vmem:[#allocation10 + $0xa0] ss:$16 sps:$4 sm:$0xff]   ;;  %v4875_v19 = vld [vmem:[#allocation10 + $0x84] ss:$16 sps:$4 sm:$0xff]  }
  0xa0   :  { %853 = vmatprep.subr.bf16.mxu0 %v4861_v8  ;;  %v4879_v20 = vld [vmem:[#allocation10 + $0x8c] ss:$16 sps:$4 sm:$0xff]   ;;  %v4877_v21 = vld [vmem:[#allocation10 + $0x88] ss:$16 sps:$4 sm:$0xff]   ;;  %v4880_v22 = vld [vmem:[#allocation10 + $0x80] ss:$16 sps:$4 sm:$0xff]  }
  0xa1   :  { %v4881_v23 = vld [vmem:[#allocation10 + $0x64] ss:$16 sps:$4 sm:$0xff]   ;;  %v4883_v24 = vld [vmem:[#allocation10 + $0x68] ss:$16 sps:$4 sm:$0xff]   ;;  %v4885_v25 = vld [vmem:[#allocation10 + $0x6c] ss:$16 sps:$4 sm:$0xff]  }
  0xa2   :  { %4381 = vmatmul.mubr.msk.bf16.vlgmr.msra.gmra.mxu0 %vm247_vm0, %v210_v6  ;;  %815 = vmatpush1.bf16.msra.mxu1 %v4868_v14  ;;  %v4886_v26 = vld [vmem:[#allocation10 + $0x60] ss:$16 sps:$4 sm:$0xff]   ;;  %v4887_v27 = vld [vmem:[#allocation10 + $0x44] ss:$16 sps:$4 sm:$0xff]   ;;  %v4891_v28 = vld [vmem:[#allocation10 + $0x4c] ss:$16 sps:$4 sm:$0xff]  }
  0xa3   :  { %854 = vmatpush1.bf16.msra.mxu0 %v4859_v9  ;;  %816 = vmatprep.subr.bf16.mxu1 %v4869_v15  ;;  %v4889_v29 = vld [vmem:[#allocation10 + $0x48] ss:$16 sps:$4 sm:$0xff]   ;;  %v4892_v30 = vld [vmem:[#allocation10 + $0x40] ss:$16 sps:$4 sm:$0xff]   ;;  %v4893_v31 = vld [vmem:[#allocation10 + $0x24] ss:$16 sps:$4 sm:$0xff]  }
  0xa4   :  { %855 = vmatprep.subr.bf16.mxu0 %v4867_v12  ;;  %v4897_v32 = vld [vmem:[#allocation10 + $0x2c] ss:$16 sps:$4 sm:$0xff]   ;;  %v4895_v33 = vld [vmem:[#allocation10 + $0x28] ss:$16 sps:$4 sm:$0xff]   ;;  %v4898_v34 = vld [vmem:[#allocation10 + $0x20] ss:$16 sps:$4 sm:$0xff]  }
  0xa5   :  { %v4899_v35 = vld [vmem:[#allocation10 + $0x4] ss:$16 sps:$4 sm:$0xff]   ;;  %v4903_v36 = vld [vmem:[#allocation10 + $0xc] ss:$16 sps:$4 sm:$0xff]   ;;  %v4901_v37 = vld [vmem:[#allocation10 + $0x8] ss:$16 sps:$4 sm:$0xff]  }
  0xa6   :  { %817 = vmatpush1.bf16.msra.mxu1 %v4874_v18  ;;  %v4904_v38 = vld [vmem:[#allocation10] ss:$16 sps:$4 sm:$0xff]   ;;  %v4905_v39 = vld [vmem:[#allocation10 + $0x1e4] ss:$16 sps:$4 sm:$0xff]   ;;  %v4909_v40 = vld [vmem:[#allocation10 + $0x1ec] ss:$16 sps:$4 sm:$0xff]  }
  0xa7   :  { %856 = vmatpush1.bf16.msra.mxu0 %v4865_v13  ;;  %818 = vmatprep.subr.bf16.mxu1 %v4875_v19  ;;  %v4907_v41 = vld [vmem:[#allocation10 + $0x1e8] ss:$16 sps:$4 sm:$0xff]   ;;  %v4910_v42 = vld [vmem:[#allocation10 + $0x1e0] ss:$16 sps:$4 sm:$0xff]   ;;  %v4911_v43 = vld [vmem:[#allocation10 + $0x1c4] ss:$16 sps:$4 sm:$0xff]  }
  0xa8   :  { %857 = vmatprep.subr.bf16.mxu0 %v4873_v16  ;;  %v4915_v44 = vld [vmem:[#allocation10 + $0x1cc] ss:$16 sps:$4 sm:$0xff]   ;;  %v4913_v45 = vld [vmem:[#allocation10 + $0x1c8] ss:$16 sps:$4 sm:$0xff]   ;;  %v4916_v46 = vld [vmem:[#allocation10 + $0x1c0] ss:$16 sps:$4 sm:$0xff]  }
  0xa9   :  { %v4917_v47 = vld [vmem:[#allocation10 + $0x1a4] ss:$16 sps:$4 sm:$0xff]   ;;  %v4921_v48 = vld [vmem:[#allocation10 + $0x1ac] ss:$16 sps:$4 sm:$0xff]   ;;  %v4919_v49 = vld [vmem:[#allocation10 + $0x1a8] ss:$16 sps:$4 sm:$0xff]  }
  0xaa   :  { %819 = vmatpush1.bf16.msra.mxu1 %v4880_v22  ;;  %v4922_v50 = vld [vmem:[#allocation10 + $0x1a0] ss:$16 sps:$4 sm:$0xff]   ;;  %v4923_v51 = vld [vmem:[#allocation10 + $0x184] ss:$16 sps:$4 sm:$0xff]   ;;  %v4927_v52 = vld [vmem:[#allocation10 + $0x18c] ss:$16 sps:$4 sm:$0xff]  }
  0xab   :  { %858 = vmatpush1.bf16.msra.mxu0 %v4871_v17  ;;  %820 = vmatprep.subr.bf16.mxu1 %v4881_v23  ;;  %v4925_v53 = vld [vmem:[#allocation10 + $0x188] ss:$16 sps:$4 sm:$0xff]   ;;  %v4928_v54 = vld [vmem:[#allocation10 + $0x180] ss:$16 sps:$4 sm:$0xff]   ;;  %v4929_v55 = vld [vmem:[#allocation10 + $0x164] ss:$16 sps:$4 sm:$0xff]  }
  0xac   :  { %859 = vmatprep.subr.bf16.mxu0 %v4879_v20  ;;  %v4933_v56 = vld [vmem:[#allocation10 + $0x16c] ss:$16 sps:$4 sm:$0xff]   ;;  %v4931_v57 = vld [vmem:[#allocation10 + $0x168] ss:$16 sps:$4 sm:$0xff]   ;;  %v4934_v58 = vld [vmem:[#allocation10 + $0x160] ss:$16 sps:$4 sm:$0xff]  }
  0xad   :  { %v4935_v59 = vld [vmem:[#allocation10 + $0x144] ss:$16 sps:$4 sm:$0xff]   ;;  %v4939_v60 = vld [vmem:[#allocation10 + $0x14c] ss:$16 sps:$4 sm:$0xff]   ;;  %v4937_v61 = vld [vmem:[#allocation10 + $0x148] ss:$16 sps:$4 sm:$0xff]  }
  0xae   :  { %821 = vmatpush1.bf16.msra.mxu1 %v4886_v26  ;;  %v4940_v62 = vld [vmem:[#allocation10 + $0x140] ss:$16 sps:$4 sm:$0xff]   ;;  %v4941_v63 = vld [vmem:[#allocation10 + $0x124] ss:$16 sps:$4 sm:$0xff]   ;;  %v4945_v0 = vld [vmem:[#allocation10 + $0x12c] ss:$16 sps:$4 sm:$0xff]  }
  0xaf   :  { %860 = vmatpush1.bf16.msra.mxu0 %v4877_v21  ;;  %822 = vmatprep.subr.bf16.mxu1 %v4887_v27  ;;  %v4943_v1 = vld [vmem:[#allocation10 + $0x128] ss:$16 sps:$4 sm:$0xff]   ;;  %v4946_v2 = vld [vmem:[#allocation10 + $0x120] ss:$16 sps:$4 sm:$0xff]   ;;  %v4947_v3 = vld [vmem:[#allocation10 + $0x104] ss:$16 sps:$4 sm:$0xff]  }
  0xb0   :  { %861 = vmatprep.subr.bf16.mxu0 %v4885_v25  ;;  %v4951_v4 = vld [vmem:[#allocation10 + $0x10c] ss:$16 sps:$4 sm:$0xff]   ;;  %v4949_v5 = vld [vmem:[#allocation10 + $0x108] ss:$16 sps:$4 sm:$0xff]   ;;  %v4952_v6 = vld [vmem:[#allocation10 + $0x100] ss:$16 sps:$4 sm:$0xff]  }
  0xb1   :  { %v5597_v8 = vshrl.u32 %v217_v7, 7  ;;  %v215_v10 = vld [vmem:[#allocation6] sm:$0x3] }
  0xb2   :  { %823 = vmatpush1.bf16.msra.mxu1 %v4892_v30 }
  0xb3   :  { %862 = vmatpush1.bf16.msra.mxu0 %v4883_v24  ;;  %824 = vmatprep.subr.bf16.mxu1 %v4893_v31  ;;  %v5600_v9 = vsub.s32 0, %v5597_v8  ;;  %v5603_v11 = vsub.s32 1, %v5597_v8 }
  0xb4   :  { %863 = vmatprep.subr.bf16.mxu0 %v4891_v28 }
  0xb5   :  { %v220_v12 = vrot.slane %v215_v10, %v5600_v9  ;;  %v224_v13 = vrot.slane %v215_v10, %v5603_v11 }
  0xb6   :  { %825 = vmatpush1.bf16.msra.mxu1 %v4898_v34 }
  0xb7   :  { %864 = vmatpush1.bf16.msra.mxu0 %v4889_v29  ;;  %826 = vmatprep.subr.bf16.mxu1 %v4899_v35 }
  0xb8   :  { %865 = vmatprep.subr.bf16.mxu0 %v4897_v32 }
  0xba   :  { %827 = vmatpush1.bf16.msra.mxu1 %v4904_v38 }
  0xbb   :  { %866 = vmatpush1.bf16.msra.mxu0 %v4895_v33  ;;  %828 = vmatprep.subr.bf16.mxu1 %v4905_v39 }
  0xbc   :  { %867 = vmatprep.subr.bf16.mxu0 %v4903_v36 }
  0xbe   :  { %829 = vmatpush2.bf16.msra.mxu1 %v4910_v42 }
  0xbf   :  { %868 = vmatpush1.bf16.msra.mxu0 %v4901_v37  ;;  %830 = vmatprep.subr.bf16.mxu1 %v4911_v43 }
  0xc0   :  { %869 = vmatprep.subr.bf16.mxu0 %v4909_v40 }
  0xc2   :  { %831 = vmatpush2.bf16.msra.mxu1 %v4916_v46 }
  0xc3   :  { %870 = vmatpush2.bf16.msra.mxu0 %v4907_v41  ;;  %832 = vmatprep.subr.bf16.mxu1 %v4917_v47 }
  0xc4   :  { %871 = vmatprep.subr.bf16.mxu0 %v4915_v44 }
  0xc6   :  { %833 = vmatpush2.bf16.msra.mxu1 %v4922_v50 }
  0xc7   :  { %872 = vmatpush2.bf16.msra.mxu0 %v4913_v45  ;;  %834 = vmatprep.subr.bf16.mxu1 %v4923_v51 }
  0xc8   :  { %873 = vmatprep.subr.bf16.mxu0 %v4921_v48 }
  0xca   :  { %835 = vmatpush2.bf16.msra.mxu1 %v4928_v54 }
  0xcb   :  { %874 = vmatpush2.bf16.msra.mxu0 %v4919_v49  ;;  %836 = vmatprep.subr.bf16.mxu1 %v4929_v55 }
  0xcc   :  { %875 = vmatprep.subr.bf16.mxu0 %v4927_v52 }
  0xce   :  { %837 = vmatpush2.bf16.msra.mxu1 %v4934_v58 }
  0xcf   :  { %876 = vmatpush2.bf16.msra.mxu0 %v4925_v53  ;;  %838 = vmatprep.subr.bf16.mxu1 %v4935_v59 }
  0xd0   :  { %877 = vmatprep.subr.bf16.mxu0 %v4933_v56 }
  0xd2   :  { %839 = vmatpush2.bf16.msra.mxu1 %v4940_v62  ;;  %v5471_v62 = vmov 1966171168  }
  0xd3   :  { %878 = vmatpush2.bf16.msra.mxu0 %v4931_v57  ;;  %840 = vmatprep.subr.bf16.mxu1 %v4941_v63  ;;  %v341_v63 = vunpack.c.l.s4 %v5471_v62  ;;  %v1130_v62 = vld [vmem:[#allocation16 + $0xe0] sm:$0xff] }
  0xd4   :  { %879 = vmatprep.subr.bf16.mxu0 %v4939_v60 }
  0xd6   :  { %841 = vmatpush2.bf16.msra.mxu1 %v4946_v2 }
  0xd7   :  { %880 = vmatpush2.bf16.msra.mxu0 %v4937_v61  ;;  %842 = vmatprep.subr.bf16.mxu1 %v4947_v3 }
  0xd8   :  { %881 = vmatprep.subr.bf16.mxu0 %v4945_v0  ;;  %v342_v0 = vunpack.c.0.s8 %v341_v63  ;;  %v1254_v63 = vld [vmem:[#allocation16 + $0x4c0] sm:$0xff] }
  0xda   :  { %843 = vmatpush2.bf16.msra.mxu1 %v4952_v6  ;;  %v5614_v2 = vsub.s32 %v342_v0, %v5597_v8  ;;  %v332_v6 = vld [vmem:[#allocation7] sm:$0x3] }
  0xdb   :  { %882 = vmatpush2.bf16.msra.mxu0 %v4943_v1 }
  0xdc   :  { %883 = vmatprep.subr.bf16.mxu0 %v4951_v4 }
  0xdf   :  { %884 = vmatpush2.bf16.msra.mxu0 %v4949_v5 }
 0x162   :  { %v285_v14 = vpop.f32.mrf.mxu0 }
 0x163   :  { %v286_v15 = vadd.f32 %v285_v14, %v220_v12 }
 0x164   :  { %v287_v16 = vpop.f32.mrf.mxu0 }
 0x165   :  { %v292_v17 = vmul.f32 0.2, %v286_v15  ;;  %v288_v18 = vadd.f32 %v287_v16, %v224_v13 }
 0x166   :  { %v289_v19 = vpop.f32.mrf.mxu0 }
 0x167   :  { %v5607_v20 = vmax.f32 %v286_v15, %v292_v17  ;;  %v293_v21 = vmul.f32 0.2, %v288_v18 }
 0x168   :  { %v290_v22 = vpop.f32.mrf.mxu0 }
 0x169   :  { %v296_v23 = vrot.slane %v5607_v20, 4  ;;  %v310_v24 = vmul.f32 %v5607_v20, %v5607_v20  ;;  %v295_v25 = vmax.f32 %v288_v18, %v293_v21  ;;  %v356_v18 = vld [vmem:[#allocation9] sm:$0x3] }
 0x16b   :  { %v297_v26 = vadd.f32 %v296_v23, %v5607_v20  ;;  %v312_v27 = vrot.slane %v310_v24, 4  ;;  %v302_v28 = vrot.slane %v295_v25, 4  ;;  %v311_v29 = vmul.f32 %v295_v25, %v295_v25 }
 0x16d   :  { %v298_v30 = vrot.slane %v297_v26, 2  ;;  %v313_v31 = vadd.f32 %v312_v27, %v310_v24  ;;  %v303_v32 = vadd.f32 %v302_v28, %v295_v25  ;;  %v318_v33 = vrot.slane %v311_v29, 4 }
 0x16f   :  { %v299_v34 = vadd.f32 %v298_v30, %v297_v26  ;;  %v314_v35 = vrot.slane %v313_v31, 2  ;;  %v304_v36 = vrot.slane %v303_v32, 2  ;;  %v319_v37 = vadd.f32 %v318_v33, %v311_v29  ;;  %v1286_v33 = vld [vmem:[#allocation16 + $0x5c0] sm:$0xff] }
 0x171   :  { %v300_v38 = vrot.slane %v299_v34, 1  ;;  %v315_v39 = vadd.f32 %v314_v35, %v313_v31  ;;  %v320_v40 = vrot.slane %v319_v37, 2  ;;  %v305_v41 = vadd.f32 %v304_v36, %v303_v32  ;;  %v1158_v31 = vld [vmem:[#allocation16 + $0x1c0] sm:$0xff] }
 0x172   :  { %v1162_v32 = vld [vmem:[#allocation16 + $0x1e0] sm:$0xff] }
 0x173   :  { %v316_v42 = vrot.slane %v315_v39, 1  ;;  %v321_v43 = vadd.f32 %v320_v40, %v319_v37  ;;  %v301_v44 = vadd.f32 %v300_v38, %v299_v34  ;;  %v306_v45 = vrot.slane %v305_v41, 1  ;;  %v1290_v35 = vld [vmem:[#allocation16 + $0x5e0] sm:$0xff] }
 0x174   :  { %v4503_v34 = vcombine.high %v1158_v31, %v1162_v32  ;;  %v4630_v36 = vcombine.low %v1286_v33, %v1290_v35  ;;  %v4631_v37 = vcombine.high %v1286_v33, %v1290_v35  ;;  %v1154_v38 = vld [vmem:[#allocation16 + $0x1a0] sm:$0xff] }
 0x175   :  { %v317_v46 = vadd.f32 %v316_v42, %v315_v39  ;;  %v322_v47 = vrot.slane %v321_v43, 1  ;;  %v307_v48 = vadd.f32 %v306_v45, %v305_v41  ;;  %v308_v49 = vmul.f32 0.125, %v301_v44  ;;  %v1278_v39 = vld [vmem:[#allocation16 + $0x580] sm:$0xff] }
 0x176   :  { %2680 = vmatprep.subr.bf16.mxu1 %v4503_v34  ;;  %2721 = vmatprep.subr.bf16.mxu0 %v4631_v37  ;;  %v1282_v41 = vld [vmem:[#allocation16 + $0x5a0] sm:$0xff] }
 0x177   :  { %v324_v50 = vmul.f32 0.125, %v317_v46  ;;  %v309_v51 = vmul.f32 0.125, %v307_v48  ;;  %v323_v52 = vadd.f32 %v322_v47, %v321_v43  ;;  %v326_v53 = vmul.f32 %v308_v49, %v308_v49  ;;  %v1142_v45 = vld [vmem:[#allocation16 + $0x140] sm:$0xff] }
 0x178   :  { %v4622_v43 = vcombine.low %v1278_v39, %v1282_v41  ;;  %v4623_v44 = vcombine.high %v1278_v39, %v1282_v41  ;;  %v1146_v46 = vld [vmem:[#allocation16 + $0x160] sm:$0xff] }
 0x179   :  { %v325_v54 = vmul.f32 0.125, %v323_v52  ;;  %v327_v55 = vmul.f32 %v309_v51, %v309_v51  ;;  %v328_v56 = vsub.f32 %v324_v50, %v326_v53  ;;  %v1270_v47 = vld [vmem:[#allocation16 + $0x540] sm:$0xff]  ;;  %v4487_v48 = vcombine.high %v1142_v45, %v1146_v46 }
 0x17a   :  { %v4486_v50 = vcombine.low %v1142_v45, %v1146_v46  ;;  %v1134_v53 = vld [vmem:[#allocation16 + $0x100] sm:$0xff] }
 0x17b   :  { %v329_v57 = vsub.f32 %v325_v54, %v327_v55  ;;  %v330_v58 = vmax.f32 %v328_v56, 0.0  ;;  %v1138_v54 = vld [vmem:[#allocation16 + $0x120] sm:$0xff] }
 0x17c   :  { %v1262_v55 = vld [vmem:[#allocation16 + $0x500] sm:$0xff]  ;;  %v4479_v56 = vcombine.high %v1134_v53, %v1138_v54 }
 0x17d   :  { %v331_v59 = vmax.f32 %v329_v57, 0.0  ;;  %v333_v60 = vadd.f32 1e-05, %v330_v58  ;;  %v1266_v57 = vld [vmem:[#allocation16 + $0x520] sm:$0xff]  ;;  %v4478_v58 = vcombine.low %v1134_v53, %v1138_v54 }
 0x17e   :  { %v1222_v35 = vld [vmem:[#allocation16 + $0x3c0] sm:$0xff] }
 0x17f   :  { %v334_v61 = vadd.f32 1e-05, %v331_v59  ;;  %5145 = vrsqrt.f32 %v333_v60  ;;  %v4606_v59 = vcombine.low %v1262_v55, %v1266_v57  ;;  %v4607_v60 = vcombine.high %v1262_v55, %v1266_v57  ;;  %v1214_v41 = vld [vmem:[#allocation16 + $0x380] sm:$0xff] }
 0x180   :  { %v1346_v45 = vld [vmem:[#allocation16 + $0x7a0] sm:$0xff] }
 0x181   :  { %5147 = vrsqrt.f32 %v334_v61  ;;  %v1126_v61 = vld [vmem:[#allocation16 + $0xc0] sm:$0xff] }
 0x182   :  { %v4471_v0 = vcombine.high %v1126_v61, %v1130_v62  ;;  %v1338_v53 = vld [vmem:[#allocation16 + $0x760] sm:$0xff] }
 0x183   :  { %v1198_v57 = vld [vmem:[#allocation16 + $0x300] sm:$0xff] }
 0x18c   :  { %v5146_v1 = vpop.eup %5145 }
 0x18e   :  { %v5148_v3 = vpop.eup %5147 }
 0x18f   :  { %v339_v4 = vcombine.low %v5146_v1, %v5148_v3  ;;  %v1258_v1 = vld [vmem:[#allocation16 + $0x4e0] sm:$0xff]  ;;  %v4470_v3 = vcombine.low %v1126_v61, %v1130_v62 }
 0x190   :  { %v1330_v61 = vld [vmem:[#allocation16 + $0x720] sm:$0xff] }
 0x191   :  { %v346_v5 = vrot.slane %v339_v4, %v5614_v2  ;;  %v4598_v4 = vcombine.low %v1254_v63, %v1258_v1 }
 0x193   :  { %v353_v7 = vrot.slane %v346_v5, %v5614_v2  ;;  %v4599_v5 = vcombine.high %v1254_v63, %v1258_v1  ;;  %v1190_v1 = vld [vmem:[#allocation16 + $0x2c0] sm:$0xff] }
 0x195   :  { %v355_v10 = vmul.f32 %v353_v7, %v332_v6  ;;  %v1118_v6 = vld [vmem:[#allocation16 + $0x80] sm:$0xff] }
 0x196   :  { %v1122_v7 = vld [vmem:[#allocation16 + $0xa0] sm:$0xff] }
 0x197   :  { %v361_v12 = vrot.slane %v355_v10, %v5600_v9  ;;  %v365_v13 = vrot.slane %v355_v10, %v5603_v11  ;;  %v1246_v10 = vld [vmem:[#allocation16 + $0x480] sm:$0xff] }
 0x199   :  { %v368_v14 = vmul.f32 %v361_v12, %v308_v49  ;;  %v369_v15 = vmul.f32 %v365_v13, %v309_v51  ;;  %v390_v22 = vmul.f32 %v365_v13, %v295_v25  ;;  %v389_v24 = vmul.f32 %v361_v12, %v5607_v20  ;;  %v1150_v20 = vld [vmem:[#allocation16 + $0x180] sm:$0xff] }
 0x19a   :  { %v4502_v25 = vcombine.low %v1158_v31, %v1162_v32  ;;  %v4495_v40 = vcombine.high %v1150_v20, %v1154_v38  ;;  %v4494_v42 = vcombine.low %v1150_v20, %v1154_v38  ;;  %v1274_v49 = vld [vmem:[#allocation16 + $0x560] sm:$0xff]  ;;  %v4463_v12 = vcombine.high %v1118_v6, %v1122_v7 }
 0x19b   :  { %v372_v16 = vcombine.low %v368_v14, %v369_v15  ;;  %v4614_v51 = vcombine.low %v1270_v47, %v1274_v49  ;;  %v4615_v52 = vcombine.high %v1270_v47, %v1274_v49  ;;  %v1250_v13 = vld [vmem:[#allocation16 + $0x4a0] sm:$0xff]  ;;  %v4462_v14 = vcombine.low %v1118_v6, %v1122_v7 }
 0x19c   :  { %v4590_v15 = vcombine.low %v1246_v10, %v1250_v13  ;;  %v1234_v31 = vld [vmem:[#allocation16 + $0x420] sm:$0xff] }
 0x19d   :  { %v379_v17 = vrot.slane %v372_v16, %v5614_v2  ;;  %v4591_v16 = vcombine.high %v1246_v10, %v1250_v13  ;;  %v1354_v20 = vld [vmem:[#allocation16 + $0x7e0] sm:$0xff] }
 0x19e   :  { %v1206_v49 = vld [vmem:[#allocation16 + $0x340] sm:$0xff] }
 0x19f   :  { %v386_v19 = vrot.slane %v379_v17, %v5614_v2  ;;  %v1110_v17 = vld [vmem:[#allocation16 + $0x40] sm:$0xff] }
 0x1a0   :  { %v1322_v6 = vld [vmem:[#allocation16 + $0x6e0] sm:$0xff] }
 0x1a1   :  { %v388_v21 = vsub.f32 %v356_v18, %v386_v19  ;;  %v1114_v18 = vld [vmem:[#allocation16 + $0x60] sm:$0xff] }
 0x1a2   :  { %v1238_v19 = vld [vmem:[#allocation16 + $0x440] sm:$0xff] }
 0x1a3   :  { %v399_v23 = vrot.slane %v388_v21, %v5603_v11  ;;  %v395_v26 = vrot.slane %v388_v21, %v5600_v9  ;;  %v4455_v21 = vcombine.high %v1110_v17, %v1114_v18  ;;  %v1182_v13 = vld [vmem:[#allocation16 + $0x280] sm:$0xff] }
 0x1a5   :  { %v403_v27 = vadd.f32 %v399_v23, %v390_v22  ;;  %v402_v28 = vadd.f32 %v395_v26, %v389_v24  ;;  %v1242_v22 = vld [vmem:[#allocation16 + $0x460] sm:$0xff]  ;;  %v4454_v23 = vcombine.low %v1110_v17, %v1114_v18 }
 0x1a6   :  { %v4582_v24 = vcombine.low %v1238_v19, %v1242_v22  ;;  %v4583_v26 = vcombine.high %v1238_v19, %v1242_v22  ;;  %v1314_v18 = vld [vmem:[#allocation16 + $0x6a0] sm:$0xff] }
 0x1a7   :  { %v405_v29 = vpack.c.bf16 %v403_v27, %v403_v27  ;;  %v404_v30 = vpack.c.bf16 %v402_v28, %v402_v28  ;;  %v1102_v27 = vld [vmem:[#allocation16] sm:$0xff] }
 0x1a8   :  { %v1106_v28 = vld [vmem:[#allocation16 + $0x20] sm:$0xff] }
 0x1a9   :  { %844 = vmatprep.mubr.bf16.mxu1 %v405_v29  ;;  %885 = vmatprep.mubr.bf16.mxu0 %v405_v29  ;;  %v1230_v29 = vld [vmem:[#allocation16 + $0x400] sm:$0xff]  ;;  %v4446_v32 = vcombine.low %v1102_v27, %v1106_v28 }
 0x1aa   :  { %845 = vmatmul.mubr.bf16.vlgmr.msra.gmra.mxu1 %v404_v30  ;;  %886 = vmatmul.mubr.bf16.vlgmr.msra.gmra.mxu0 %v404_v30  ;;  %v4447_v30 = vcombine.high %v1102_v27, %v1106_v28  ;;  %v4574_v33 = vcombine.low %v1230_v29, %v1234_v31  ;;  %v4575_v34 = vcombine.high %v1230_v29, %v1234_v31  ;;  %v1174_v19 = vld [vmem:[#allocation16 + $0x240] sm:$0xff] }
 0x1ab   :  { %2681 = vmatpush1.bf16.msra.mxu1 %v4502_v25  ;;  %2722 = vmatpush1.bf16.msra.mxu0 %v4630_v36  ;;  %v1226_v25 = vld [vmem:[#allocation16 + $0x3e0] sm:$0xff] }
 0x1ac   :  { %2682 = vmatprep.subr.bf16.mxu1 %v4495_v40  ;;  %2723 = vmatprep.subr.bf16.mxu0 %v4623_v44  ;;  %v1350_v36 = vld [vmem:[#allocation16 + $0x7c0] sm:$0xff]  ;;  %v4567_v37 = vcombine.high %v1222_v35, %v1226_v25  ;;  %v4566_v38 = vcombine.low %v1222_v35, %v1226_v25 }
 0x1ad   :  { %v4694_v39 = vcombine.low %v1350_v36, %v1354_v20  ;;  %v4695_v40 = vcombine.high %v1350_v36, %v1354_v20  ;;  %v1342_v44 = vld [vmem:[#allocation16 + $0x780] sm:$0xff]  ;;  %v5625_v20 = vld [vmem:[#allocation16 + $0x1c8] sm:$0xff] }
 0x1ae   :  { %v4686_v47 = vcombine.low %v1342_v44, %v1346_v45  ;;  %v1306_v27 = vld [vmem:[#allocation16 + $0x660] sm:$0xff] }
 0x1af   :  { %2683 = vmatpush1.bf16.msra.mxu1 %v4494_v42  ;;  %2724 = vmatpush1.bf16.msra.mxu0 %v4622_v43  ;;  %v1218_v42 = vld [vmem:[#allocation16 + $0x3a0] sm:$0xff] }
 0x1b0   :  { %2684 = vmatprep.subr.bf16.mxu1 %v4487_v48  ;;  %2725 = vmatprep.subr.bf16.mxu0 %v4615_v52  ;;  %v4559_v43 = vcombine.high %v1214_v41, %v1218_v42  ;;  %v4558_v46 = vcombine.low %v1214_v41, %v1218_v42  ;;  %v4687_v48 = vcombine.high %v1342_v44, %v1346_v45  ;;  %v1166_v28 = vld [vmem:[#allocation16 + $0x200] sm:$0xff]  ;;  %v5633_v41 = vld [vmem:[#allocation16 + $0x5e8] sm:$0xff]  ;;  %v5642_v45 = vsub.s32 2, %v5597_v8 }
 0x1b1   :  { %v1294_v31 = vld [vmem:[#allocation16 + $0x600] sm:$0xff] }
 0x1b3   :  { %2685 = vmatpush1.bf16.msra.mxu1 %v4486_v50  ;;  %2726 = vmatpush1.bf16.msra.mxu0 %v4614_v51  ;;  %v1210_v50 = vld [vmem:[#allocation16 + $0x360] sm:$0xff] }
 0x1b4   :  { %2686 = vmatprep.subr.bf16.mxu1 %v4479_v56  ;;  %2727 = vmatprep.subr.bf16.mxu0 %v4607_v60  ;;  %v1334_v51 = vld [vmem:[#allocation16 + $0x740] sm:$0xff]  ;;  %v4551_v52 = vcombine.high %v1206_v49, %v1210_v50  ;;  %v4550_v54 = vcombine.low %v1206_v49, %v1210_v50 }
 0x1b5   :  { %v4678_v55 = vcombine.low %v1334_v51, %v1338_v53  ;;  %v4679_v56 = vcombine.high %v1334_v51, %v1338_v53 }
 0x1b7   :  { %2687 = vmatpush1.bf16.msra.mxu1 %v4478_v58  ;;  %2728 = vmatpush1.bf16.msra.mxu0 %v4606_v59  ;;  %v1202_v58 = vld [vmem:[#allocation16 + $0x320] sm:$0xff] }
 0x1b8   :  { %2688 = vmatprep.subr.bf16.mxu1 %v4471_v0  ;;  %2729 = vmatprep.subr.bf16.mxu0 %v4599_v5  ;;  %v1326_v59 = vld [vmem:[#allocation16 + $0x700] sm:$0xff]  ;;  %v4543_v60 = vcombine.high %v1198_v57, %v1202_v58  ;;  %v4542_v62 = vcombine.low %v1198_v57, %v1202_v58 }
 0x1b9   :  { %v4670_v63 = vcombine.low %v1326_v59, %v1330_v61  ;;  %v4671_v0 = vcombine.high %v1326_v59, %v1330_v61 }
 0x1bb   :  { %2689 = vmatpush1.bf16.msra.mxu1 %v4470_v3  ;;  %2730 = vmatpush1.bf16.msra.mxu0 %v4598_v4  ;;  %v1194_v3 = vld [vmem:[#allocation16 + $0x2e0] sm:$0xff] }
 0x1bc   :  { %2690 = vmatprep.subr.bf16.mxu1 %v4463_v12  ;;  %2731 = vmatprep.subr.bf16.mxu0 %v4591_v16  ;;  %v1318_v4 = vld [vmem:[#allocation16 + $0x6c0] sm:$0xff]  ;;  %v4535_v5 = vcombine.high %v1190_v1, %v1194_v3  ;;  %v4534_v7 = vcombine.low %v1190_v1, %v1194_v3 }
 0x1bd   :  { %v4662_v10 = vcombine.low %v1318_v4, %v1322_v6  ;;  %v4663_v12 = vcombine.high %v1318_v4, %v1322_v6 }
 0x1bf   :  { %2691 = vmatpush1.bf16.msra.mxu1 %v4462_v14  ;;  %2732 = vmatpush1.bf16.msra.mxu0 %v4590_v15  ;;  %v1186_v14 = vld [vmem:[#allocation16 + $0x2a0] sm:$0xff] }
 0x1c0   :  { %2692 = vmatprep.subr.bf16.mxu1 %v4455_v21  ;;  %2733 = vmatprep.subr.bf16.mxu0 %v4583_v26  ;;  %v1310_v15 = vld [vmem:[#allocation16 + $0x680] sm:$0xff]  ;;  %v4526_v16 = vcombine.low %v1182_v13, %v1186_v14  ;;  %v4527_v17 = vcombine.high %v1182_v13, %v1186_v14 }
 0x1c1   :  { %v1178_v21 = vld [vmem:[#allocation16 + $0x260] sm:$0xff]  ;;  %v4654_v22 = vcombine.low %v1310_v15, %v1314_v18 }
 0x1c2   :  { %v1302_v26 = vld [vmem:[#allocation16 + $0x640] sm:$0xff] }
 0x1c3   :  { %2693 = vmatpush1.bf16.msra.mxu1 %v4454_v23  ;;  %2734 = vmatpush1.bf16.msra.mxu0 %v4582_v24  ;;  %v4655_v23 = vcombine.high %v1310_v15, %v1314_v18  ;;  %v4519_v24 = vcombine.high %v1174_v19, %v1178_v21  ;;  %v4647_v29 = vcombine.high %v1302_v26, %v1306_v27 }
 0x1c4   :  { %2694 = vmatprep.subr.bf16.mxu1 %v4447_v30  ;;  %2735 = vmatprep.subr.bf16.mxu0 %v4575_v34  ;;  %v1170_v30 = vld [vmem:[#allocation16 + $0x220] sm:$0xff]  ;;  %v4646_v34 = vcombine.low %v1302_v26, %v1306_v27 }
 0x1c5   :  { %v4511_v35 = vcombine.high %v1166_v28, %v1170_v30  ;;  %v4510_v36 = vcombine.low %v1166_v28, %v1170_v30 }
 0x1c7   :  { %2695 = vmatpush1.bf16.msra.mxu1 %v4446_v32  ;;  %2736 = vmatpush1.bf16.msra.mxu0 %v4574_v33  ;;  %v1298_v32 = vld [vmem:[#allocation16 + $0x620] sm:$0xff]  ;;  %v4518_v33 = vcombine.low %v1174_v19, %v1178_v21 }
 0x1c8   :  { %2696 = vmatprep.subr.bf16.mxu1 %v4567_v37  ;;  %2737 = vmatprep.subr.bf16.mxu0 %v4695_v40  ;;  %v4639_v25 = vcombine.high %v1294_v31, %v1298_v32  ;;  %v4638_v37 = vcombine.low %v1294_v31, %v1298_v32 }
 0x1cb   :  { %2697 = vmatpush2.bf16.msra.mxu1 %v4566_v38  ;;  %2738 = vmatpush2.bf16.msra.mxu0 %v4694_v39  ;;  %v5627_v38 = vld [vmem:[#allocation16 + $0x1e8] sm:$0xff] }
 0x1cc   :  { %2698 = vmatprep.subr.bf16.mxu1 %v4559_v43  ;;  %2739 = vmatprep.subr.bf16.mxu0 %v4687_v48  ;;  %v5629_v39 = vld [vmem:[#allocation16 + $0x5c8] sm:$0xff]  ;;  %v4505_v40 = vcombine.high %v5625_v20, %v5627_v38  ;;  %v4504_v42 = vcombine.low %v5625_v20, %v5627_v38 }
 0x1cd   :  { %v4632_v43 = vcombine.low %v5629_v39, %v5633_v41  ;;  %v4633_v44 = vcombine.high %v5629_v39, %v5633_v41 }
 0x1cf   :  { %2699 = vmatpush2.bf16.msra.mxu1 %v4558_v46  ;;  %2740 = vmatpush2.bf16.msra.mxu0 %v4686_v47  ;;  %v470_v46 = vld [vmem:[#allocation12] sm:$0xf]  ;;  %v5645_v47 = vsub.s32 3, %v5597_v8 }
 0x1d0   :  { %2700 = vmatprep.subr.bf16.mxu1 %v4551_v52  ;;  %2741 = vmatprep.subr.bf16.mxu0 %v4679_v56  ;;  %v475_v48 = vrot.slane %v470_v46, %v5600_v9  ;;  %v483_v49 = vrot.slane %v470_v46, %v5642_v45  ;;  %v479_v50 = vrot.slane %v470_v46, %v5603_v11 }
 0x1d1   :  { %v487_v51 = vrot.slane %v470_v46, %v5645_v47 }
 0x1d3   :  { %2701 = vmatpush2.bf16.msra.mxu1 %v4550_v54  ;;  %2742 = vmatpush2.bf16.msra.mxu0 %v4678_v55 }
 0x1d4   :  { %2702 = vmatprep.subr.bf16.mxu1 %v4543_v60  ;;  %2743 = vmatprep.subr.bf16.mxu0 %v4671_v0 }
 0x1d7   :  { %2703 = vmatpush2.bf16.msra.mxu1 %v4542_v62  ;;  %2744 = vmatpush2.bf16.msra.mxu0 %v4670_v63 }
 0x1d8   :  { %2704 = vmatprep.subr.bf16.mxu1 %v4535_v5  ;;  %2745 = vmatprep.subr.bf16.mxu0 %v4663_v12 }
 0x1db   :  { %2705 = vmatpush2.bf16.msra.mxu1 %v4534_v7  ;;  %2746 = vmatpush2.bf16.msra.mxu0 %v4662_v10 }
 0x1dc   :  { %2706 = vmatprep.subr.bf16.mxu1 %v4527_v17  ;;  %2747 = vmatprep.subr.bf16.mxu0 %v4655_v23 }
 0x1df   :  { %2707 = vmatpush2.bf16.msra.mxu1 %v4526_v16  ;;  %2748 = vmatpush2.bf16.msra.mxu0 %v4654_v22 }
 0x1e0   :  { %2708 = vmatprep.subr.bf16.mxu1 %v4519_v24  ;;  %2749 = vmatprep.subr.bf16.mxu0 %v4647_v29 }
 0x1e3   :  { %2709 = vmatpush2.bf16.msra.mxu1 %v4518_v33  ;;  %2750 = vmatpush2.bf16.msra.mxu0 %v4646_v34 }
 0x1e4   :  { %2710 = vmatprep.subr.bf16.mxu1 %v4511_v35  ;;  %2751 = vmatprep.subr.bf16.mxu0 %v4639_v25 }
 0x1e7   :  { %2711 = vmatpush2.bf16.msra.mxu1 %v4510_v36  ;;  %2752 = vmatpush2.bf16.msra.mxu0 %v4638_v37 }
 0x1e8   :  { %2762 = vmatprep.subr.bf16.mxu1 %v4505_v40  ;;  %2803 = vmatprep.subr.bf16.mxu0 %v4633_v44 }
 0x26a   :  { %v846_v52 = vpop.f32.mrf.mxu1  ;;  %v887_v53 = vpop.f32.mrf.mxu0 }
 0x26b   :  { %v847_v54 = vadd.f32 %v846_v52, %v475_v48  ;;  %v888_v55 = vadd.f32 %v887_v53, %v483_v49 }
 0x26c   :  { %v848_v56 = vpop.f32.mrf.mxu1  ;;  %v889_v57 = vpop.f32.mrf.mxu0 }
 0x26d   :  { %v894_v58 = vmul.f32 0.2, %v847_v54  ;;  %v896_v59 = vmul.f32 0.2, %v888_v55  ;;  %v849_v60 = vadd.f32 %v848_v56, %v479_v50  ;;  %v890_v61 = vadd.f32 %v889_v57, %v487_v51 }
 0x26e   :  { %v850_v62 = vpop.f32.mrf.mxu1  ;;  %v891_v63 = vpop.f32.mrf.mxu0 }
 0x26f   :  { %v5651_v0 = vmax.f32 %v847_v54, %v894_v58  ;;  %v5653_v1 = vmax.f32 %v888_v55, %v896_v59  ;;  %v895_v3 = vmul.f32 0.2, %v849_v60  ;;  %v897_v4 = vmul.f32 0.2, %v890_v61 }
 0x270   :  { %v851_v5 = vpop.f32.mrf.mxu1  ;;  %v892_v6 = vpop.f32.mrf.mxu0 }
 0x271   :  { %v902_v7 = vrot.slane %v5651_v0, 4  ;;  %v930_v10 = vmul.f32 %v5651_v0, %v5651_v0  ;;  %v914_v12 = vrot.slane %v5653_v1, 4  ;;  %v932_v13 = vmul.f32 %v5653_v1, %v5653_v1 }
 0x272   :  { %v5661_v14 = vmax.f32 %v849_v60, %v895_v3  ;;  %v5663_v15 = vmax.f32 %v890_v61, %v897_v4 }
 0x273   :  { %v903_v16 = vadd.f32 %v902_v7, %v5651_v0  ;;  %v934_v17 = vrot.slane %v930_v10, 4  ;;  %v915_v18 = vadd.f32 %v914_v12, %v5653_v1  ;;  %v946_v19 = vrot.slane %v932_v13, 4 }
 0x274   :  { %v908_v21 = vrot.slane %v5661_v14, 4  ;;  %v931_v22 = vmul.f32 %v5661_v14, %v5661_v14  ;;  %v920_v23 = vrot.slane %v5663_v15, 4  ;;  %v933_v24 = vmul.f32 %v5663_v15, %v5663_v15 }
 0x275   :  { %v904_v26 = vrot.slane %v903_v16, 2  ;;  %v935_v27 = vadd.f32 %v934_v17, %v930_v10  ;;  %v916_v28 = vrot.slane %v915_v18, 2  ;;  %v947_v29 = vadd.f32 %v946_v19, %v932_v13 }
 0x276   :  { %v909_v30 = vadd.f32 %v908_v21, %v5661_v14  ;;  %v940_v31 = vrot.slane %v931_v22, 4  ;;  %v921_v32 = vadd.f32 %v920_v23, %v5663_v15  ;;  %v952_v33 = vrot.slane %v933_v24, 4 }
 0x277   :  { %v905_v34 = vadd.f32 %v904_v26, %v903_v16  ;;  %v936_v35 = vrot.slane %v935_v27, 2  ;;  %v917_v25 = vadd.f32 %v916_v28, %v915_v18  ;;  %v948_v36 = vrot.slane %v947_v29, 2 }
 0x278   :  { %v910_v37 = vrot.slane %v909_v30, 2  ;;  %v941_v40 = vadd.f32 %v940_v31, %v931_v22  ;;  %v922_v44 = vrot.slane %v921_v32, 2  ;;  %v953_v46 = vadd.f32 %v952_v33, %v933_v24 }
 0x279   :  { %v906_v48 = vrot.slane %v905_v34, 1  ;;  %v937_v49 = vadd.f32 %v936_v35, %v935_v27  ;;  %v918_v50 = vrot.slane %v917_v25, 1  ;;  %v949_v51 = vadd.f32 %v948_v36, %v947_v29 }
 0x27a   :  { %v911_v52 = vadd.f32 %v910_v37, %v909_v30  ;;  %v942_v53 = vrot.slane %v941_v40, 2  ;;  %v923_v54 = vadd.f32 %v922_v44, %v921_v32  ;;  %v954_v55 = vrot.slane %v953_v46, 2 }
 0x27b   :  { %v907_v56 = vadd.f32 %v906_v48, %v905_v34  ;;  %v938_v57 = vrot.slane %v937_v49, 1  ;;  %v919_v58 = vadd.f32 %v918_v50, %v917_v25  ;;  %v950_v59 = vrot.slane %v949_v51, 1 }
 0x27c   :  { %v912_v60 = vrot.slane %v911_v52, 1  ;;  %v943_v61 = vadd.f32 %v942_v53, %v941_v40  ;;  %v924_v62 = vrot.slane %v923_v54, 1  ;;  %v955_v63 = vadd.f32 %v954_v55, %v953_v46 }
 0x27d   :  { %v926_v3 = vmul.f32 0.125, %v907_v56  ;;  %v939_v4 = vadd.f32 %v938_v57, %v937_v49  ;;  %v928_v5 = vmul.f32 0.125, %v919_v58  ;;  %v951_v6 = vadd.f32 %v950_v59, %v949_v51  ;;  %v974_v57 = vld [vmem:[#allocation13] sm:$0xf] }
 0x27e   :  { %v913_v7 = vadd.f32 %v912_v60, %v911_v52  ;;  %v944_v10 = vrot.slane %v943_v61, 1  ;;  %v925_v12 = vadd.f32 %v924_v62, %v923_v54  ;;  %v956_v13 = vrot.slane %v955_v63, 1 }
 0x27f   :  { %v958_v16 = vmul.f32 0.125, %v939_v4  ;;  %v962_v17 = vmul.f32 %v926_v3, %v926_v3  ;;  %v960_v18 = vmul.f32 0.125, %v951_v6  ;;  %v964_v19 = vmul.f32 %v928_v5, %v928_v5 }
 0x280   :  { %v927_v21 = vmul.f32 0.125, %v913_v7  ;;  %v945_v22 = vadd.f32 %v944_v10, %v943_v61  ;;  %v929_v23 = vmul.f32 0.125, %v925_v12  ;;  %v957_v24 = vadd.f32 %v956_v13, %v955_v63 }
 0x281   :  { %v966_v26 = vsub.f32 %v958_v16, %v962_v17  ;;  %v968_v27 = vsub.f32 %v960_v18, %v964_v19  ;;  %v1013_v19 = vld [vmem:[#allocation15] sm:$0xf] }
 0x282   :  { %v959_v28 = vmul.f32 0.125, %v945_v22  ;;  %v963_v29 = vmul.f32 %v927_v21, %v927_v21  ;;  %v961_v30 = vmul.f32 0.125, %v957_v24  ;;  %v965_v31 = vmul.f32 %v929_v23, %v929_v23 }
 0x283   :  { %v970_v32 = vmax.f32 %v966_v26, 0.0  ;;  %v972_v33 = vmax.f32 %v968_v27, 0.0 }
 0x284   :  { %v967_v34 = vsub.f32 %v959_v28, %v963_v29  ;;  %v969_v35 = vsub.f32 %v961_v30, %v965_v31 }
 0x285   :  { %v975_v25 = vadd.f32 1e-05, %v970_v32  ;;  %v977_v36 = vadd.f32 1e-05, %v972_v33 }
 0x286   :  { %v971_v37 = vmax.f32 %v967_v34, 0.0  ;;  %v973_v40 = vmax.f32 %v969_v35, 0.0  ;;  %v1151_v34 = vld [vmem:[#allocation16 + $0x188] sm:$0xff] }
 0x287   :  { %5149 = vrsqrt.f32 %v975_v25  ;;  %v1279_v35 = vld [vmem:[#allocation16 + $0x588] sm:$0xff] }
 0x288   :  { %v976_v44 = vadd.f32 1e-05, %v971_v37  ;;  %v978_v46 = vadd.f32 1e-05, %v973_v40  ;;  %5151 = vrsqrt.f32 %v977_v36  ;;  %v1143_v37 = vld [vmem:[#allocation16 + $0x148] sm:$0xff] }
 0x28a   :  { %5153 = vrsqrt.f32 %v976_v44 }
 0x28b   :  { %5155 = vrsqrt.f32 %v978_v46  ;;  %v1147_v46 = vld [vmem:[#allocation16 + $0x168] sm:$0xff] }
 0x28c   :  { %v4488_v20 = vcombine.low %v1143_v37, %v1147_v46 }
 0x294   :  { %v5150_v48 = vpop.eup %5149 }
 0x295   :  { %v5152_v49 = vpop.eup %5151 }
 0x297   :  { %v5154_v50 = vpop.eup %5153 }
 0x298   :  { %v5156_v51 = vpop.eup %5155  ;;  %v987_v52 = vcombine.low %v5150_v48, %v5154_v50  ;;  %v1271_v48 = vld [vmem:[#allocation16 + $0x548] sm:$0xff] }
 0x299   :  { %v988_v53 = vcombine.low %v5152_v49, %v5156_v51  ;;  %v1275_v49 = vld [vmem:[#allocation16 + $0x568] sm:$0xff] }
 0x29a   :  { %v995_v54 = vrot.slane %v987_v52, %v5614_v2  ;;  %v4489_v52 = vcombine.high %v1143_v37, %v1147_v46  ;;  %v4616_v38 = vcombine.low %v1271_v48, %v1275_v49 }
 0x29b   :  { %v1002_v55 = vrot.slane %v988_v53, %v5614_v2  ;;  %v4617_v53 = vcombine.high %v1271_v48, %v1275_v49  ;;  %v1215_v48 = vld [vmem:[#allocation16 + $0x388] sm:$0xff] }
 0x29c   :  { %v1219_v49 = vld [vmem:[#allocation16 + $0x3a8] sm:$0xff] }
 0x29d   :  { %v1003_v56 = vcombine.low %v995_v54, %v1002_v55  ;;  %v1135_v54 = vld [vmem:[#allocation16 + $0x108] sm:$0xff] }
 0x29e   :  { %v1139_v55 = vld [vmem:[#allocation16 + $0x128] sm:$0xff] }
 0x29f   :  { %v1010_v58 = vrot.slane %v1003_v56, %v5614_v2  ;;  %v1263_v56 = vld [vmem:[#allocation16 + $0x508] sm:$0xff]  ;;  %v4481_v39 = vcombine.high %v1135_v54, %v1139_v55 }
 0x2a1   :  { %v1012_v59 = vmul.f32 %v1010_v58, %v974_v57  ;;  %v1267_v57 = vld [vmem:[#allocation16 + $0x528] sm:$0xff] }
 0x2a2   :  { %v4609_v41 = vcombine.high %v1263_v56, %v1267_v57  ;;  %v1255_v58 = vld [vmem:[#allocation16 + $0x4c8] sm:$0xff] }
 0x2a3   :  { %v1026_v60 = vrot.slane %v1012_v59, %v5642_v45  ;;  %v1030_v61 = vrot.slane %v1012_v59, %v5645_v47  ;;  %v1018_v62 = vrot.slane %v1012_v59, %v5600_v9  ;;  %v1022_v63 = vrot.slane %v1012_v59, %v5603_v11  ;;  %v1259_v59 = vld [vmem:[#allocation16 + $0x4e8] sm:$0xff] }
 0x2a5   :  { %v1037_v4 = vmul.f32 %v1026_v60, %v928_v5  ;;  %v1038_v6 = vmul.f32 %v1030_v61, %v929_v23  ;;  %v1035_v7 = vmul.f32 %v1018_v62, %v926_v3  ;;  %v1036_v10 = vmul.f32 %v1022_v63, %v927_v21 }
 0x2a6   :  { %v1070_v26 = vmul.f32 %v1022_v63, %v5661_v14  ;;  %v1072_v27 = vmul.f32 %v1030_v61, %v5663_v15  ;;  %v1069_v5 = vmul.f32 %v1018_v62, %v5651_v0  ;;  %v1071_v3 = vmul.f32 %v1026_v60, %v5653_v1  ;;  %v1155_v14 = vld [vmem:[#allocation16 + $0x1a8] sm:$0xff] }
 0x2a7   :  { %v1044_v12 = vcombine.low %v1037_v4, %v1038_v6  ;;  %v1043_v13 = vcombine.low %v1035_v7, %v1036_v10  ;;  %v1283_v15 = vld [vmem:[#allocation16 + $0x5a8] sm:$0xff]  ;;  %v4497_v40 = vcombine.high %v1151_v34, %v1155_v14  ;;  %v4496_v50 = vcombine.low %v1151_v34, %v1155_v14 }
 0x2a8   :  { %v4625_v44 = vcombine.high %v1279_v35, %v1283_v15  ;;  %v4624_v51 = vcombine.low %v1279_v35, %v1283_v15  ;;  %v4480_v60 = vcombine.low %v1135_v54, %v1139_v55  ;;  %v4608_v61 = vcombine.low %v1263_v56, %v1267_v57  ;;  %v1119_v4 = vld [vmem:[#allocation16 + $0x88] sm:$0xff] }
 0x2a9   :  { %v1058_v16 = vrot.slane %v1044_v12, %v5614_v2  ;;  %v1051_v17 = vrot.slane %v1043_v13, %v5614_v2  ;;  %v4601_v63 = vcombine.high %v1255_v58, %v1259_v59  ;;  %v1123_v6 = vld [vmem:[#allocation16 + $0xa8] sm:$0xff]  ;;  %v4600_v13 = vcombine.low %v1255_v58, %v1259_v59 }
 0x2aa   :  { %v1247_v7 = vld [vmem:[#allocation16 + $0x488] sm:$0xff]  ;;  %v4561_v54 = vcombine.high %v1215_v48, %v1219_v49 }
 0x2ab   :  { %v1059_v18 = vcombine.low %v1051_v17, %v1058_v16  ;;  %v1251_v10 = vld [vmem:[#allocation16 + $0x4a8] sm:$0xff]  ;;  %v4465_v16 = vcombine.high %v1119_v4, %v1123_v6 }
 0x2ac   :  { %v4593_v17 = vcombine.high %v1247_v7, %v1251_v10  ;;  %v1223_v34 = vld [vmem:[#allocation16 + $0x3c8] sm:$0xff] }
 0x2ad   :  { %v1066_v22 = vrot.slane %v1059_v18, %v5614_v2  ;;  %v1111_v18 = vld [vmem:[#allocation16 + $0x48] sm:$0xff] }
 0x2ae   :  { %v1227_v14 = vld [vmem:[#allocation16 + $0x3e8] sm:$0xff] }
 0x2af   :  { %v1068_v24 = vsub.f32 %v1013_v19, %v1066_v22  ;;  %v1115_v19 = vld [vmem:[#allocation16 + $0x68] sm:$0xff] }
 0x2b0   :  { %v1239_v22 = vld [vmem:[#allocation16 + $0x448] sm:$0xff] }
 0x2b1   :  { %v1081_v21 = vrot.slane %v1068_v24, %v5603_v11  ;;  %v1089_v23 = vrot.slane %v1068_v24, %v5645_v47  ;;  %v1077_v28 = vrot.slane %v1068_v24, %v5600_v9  ;;  %v1085_v29 = vrot.slane %v1068_v24, %v5642_v45  ;;  %v1243_v24 = vld [vmem:[#allocation16 + $0x468] sm:$0xff] }
 0x2b2   :  { %v1351_v35 = vld [vmem:[#allocation16 + $0x7c8] sm:$0xff] }
 0x2b3   :  { %v1095_v30 = vadd.f32 %v1081_v21, %v1070_v26  ;;  %v1097_v31 = vadd.f32 %v1089_v23, %v1072_v27  ;;  %v1094_v32 = vadd.f32 %v1077_v28, %v1069_v5  ;;  %v1096_v33 = vadd.f32 %v1085_v29, %v1071_v3  ;;  %v1103_v21 = vld [vmem:[#allocation16 + $0x8] sm:$0xff] }
 0x2b4   :  { %v4464_v26 = vcombine.low %v1119_v4, %v1123_v6  ;;  %v4592_v27 = vcombine.low %v1247_v7, %v1251_v10  ;;  %v4457_v5 = vcombine.high %v1111_v18, %v1115_v19  ;;  %v4585_v3 = vcombine.high %v1239_v22, %v1243_v24  ;;  %v1107_v23 = vld [vmem:[#allocation16 + $0x28] sm:$0xff] }
 0x2b5   :  { %v5693_v25 = vpack.c.bf16 %v1095_v30, %v1095_v30  ;;  %v5695_v0 = vpack.c.bf16 %v1097_v31, %v1097_v31  ;;  %v5697_v1 = vpack.c.bf16 %v1094_v32, %v1094_v32  ;;  %v5699_v36 = vpack.c.bf16 %v1096_v33, %v1096_v33  ;;  %v1231_v28 = vld [vmem:[#allocation16 + $0x408] sm:$0xff] }
 0x2b6   :  { %v1235_v29 = vld [vmem:[#allocation16 + $0x428] sm:$0xff]  ;;  %v4456_v30 = vcombine.low %v1111_v18, %v1115_v19  ;;  %v4584_v31 = vcombine.low %v1239_v22, %v1243_v24  ;;  %v4449_v32 = vcombine.high %v1103_v21, %v1107_v23  ;;  %v4448_v37 = vcombine.low %v1103_v21, %v1107_v23 }
 0x2b7   :  { %2712 = vmatprep.mubr.bf16.mxu1 %v5693_v25  ;;  %2753 = vmatprep.mubr.bf16.mxu0 %v5695_v0  ;;  %v4577_v33 = vcombine.high %v1231_v28, %v1235_v29  ;;  %v1355_v15 = vld [vmem:[#allocation16 + $0x7e8] sm:$0xff] }
 0x2b8   :  { %2713 = vmatmul.mubr.bf16.vlgmr.msra.gmra.mxu1 %v5697_v1  ;;  %2754 = vmatmul.mubr.bf16.vlgmr.msra.gmra.mxu0 %v5699_v36  ;;  %v4697_v46 = vcombine.high %v1351_v35, %v1355_v15  ;;  %v1207_v56 = vld [vmem:[#allocation16 + $0x348] sm:$0xff] }
 0x2b9   :  { %2763 = vmatpush1.bf16.msra.mxu1 %v4504_v42  ;;  %2804 = vmatpush1.bf16.msra.mxu0 %v4632_v43  ;;  %v1127_v42 = vld [vmem:[#allocation16 + $0xc8] sm:$0xff] }
 0x2ba   :  { %2794 = vmatprep.mubr.bf16.mxu1 %v5693_v25  ;;  %2835 = vmatprep.mubr.bf16.mxu0 %v5695_v0  ;;  %v1131_v43 = vld [vmem:[#allocation16 + $0xe8] sm:$0xff] }
 0x2bb   :  { %2764 = vmatprep.subr.bf16.mxu1 %v4497_v40  ;;  %2805 = vmatprep.subr.bf16.mxu0 %v4625_v44  ;;  %v4473_v62 = vcombine.high %v1127_v42, %v1131_v43  ;;  %v4472_v12 = vcombine.low %v1127_v42, %v1131_v43  ;;  %v4576_v40 = vcombine.low %v1231_v28, %v1235_v29  ;;  %v1211_v57 = vld [vmem:[#allocation16 + $0x368] sm:$0xff] }
 0x2bc   :  { %v4569_v44 = vcombine.high %v1223_v34, %v1227_v14  ;;  %v4553_v42 = vcombine.high %v1207_v56, %v1211_v57  ;;  %v1199_v58 = vld [vmem:[#allocation16 + $0x308] sm:$0xff] }
 0x2bd   :  { %2765 = vmatpush1.bf16.msra.mxu1 %v4496_v50  ;;  %2806 = vmatpush1.bf16.msra.mxu0 %v4624_v51  ;;  %v1343_v50 = vld [vmem:[#allocation16 + $0x788] sm:$0xff] }
 0x2be   :  { %2766 = vmatprep.subr.bf16.mxu1 %v4489_v52  ;;  %2807 = vmatprep.subr.bf16.mxu0 %v4617_v53  ;;  %v1347_v51 = vld [vmem:[#allocation16 + $0x7a8] sm:$0xff]  ;;  %v4568_v52 = vcombine.low %v1223_v34, %v1227_v14  ;;  %v4696_v53 = vcombine.low %v1351_v35, %v1355_v15 }
 0x2bf   :  { %v4689_v55 = vcombine.high %v1343_v50, %v1347_v51  ;;  %v1203_v59 = vld [vmem:[#allocation16 + $0x328] sm:$0xff] }
 0x2c0   :  { %v4545_v4 = vcombine.high %v1199_v58, %v1203_v59  ;;  %v1191_v7 = vld [vmem:[#allocation16 + $0x2c8] sm:$0xff] }
 0x2c1   :  { %2767 = vmatpush1.bf16.msra.mxu1 %v4488_v20  ;;  %2808 = vmatpush1.bf16.msra.mxu0 %v4616_v38  ;;  %v1335_v20 = vld [vmem:[#allocation16 + $0x748] sm:$0xff] }
 0x2c2   :  { %2768 = vmatprep.subr.bf16.mxu1 %v4481_v39  ;;  %2809 = vmatprep.subr.bf16.mxu0 %v4609_v41  ;;  %v1339_v38 = vld [vmem:[#allocation16 + $0x768] sm:$0xff]  ;;  %v4560_v39 = vcombine.low %v1215_v48, %v1219_v49  ;;  %v4688_v41 = vcombine.low %v1343_v50, %v1347_v51  ;;  %v1160_v50 = vld [vmem:[#allocation16 + $0x1d0] sm:$0xff] }
 0x2c3   :  { %v4681_v43 = vcombine.high %v1335_v20, %v1339_v38  ;;  %v1195_v10 = vld [vmem:[#allocation16 + $0x2e8] sm:$0xff]  ;;  %v1164_v51 = vld [vmem:[#allocation16 + $0x1f0] sm:$0xff] }
 0x2c4   :  { %v4537_v18 = vcombine.high %v1191_v7, %v1195_v10  ;;  %v1183_v22 = vld [vmem:[#allocation16 + $0x288] sm:$0xff] }
 0x2c5   :  { %2769 = vmatpush1.bf16.msra.mxu1 %v4480_v60  ;;  %2810 = vmatpush1.bf16.msra.mxu0 %v4608_v61  ;;  %v1327_v60 = vld [vmem:[#allocation16 + $0x708] sm:$0xff] }
 0x2c6   :  { %2770 = vmatprep.subr.bf16.mxu1 %v4473_v62  ;;  %2811 = vmatprep.subr.bf16.mxu0 %v4601_v63  ;;  %v1331_v61 = vld [vmem:[#allocation16 + $0x728] sm:$0xff]  ;;  %v4552_v62 = vcombine.low %v1207_v56, %v1211_v57  ;;  %v4680_v63 = vcombine.low %v1335_v20, %v1339_v38  ;;  %v4507_v56 = vcombine.high %v1160_v50, %v1164_v51  ;;  %v1152_v20 = vld [vmem:[#allocation16 + $0x190] sm:$0xff] }
 0x2c7   :  { %v4673_v6 = vcombine.high %v1327_v60, %v1331_v61  ;;  %v1187_v24 = vld [vmem:[#allocation16 + $0x2a8] sm:$0xff]  ;;  %v1156_v38 = vld [vmem:[#allocation16 + $0x1b0] sm:$0xff] }
 0x2c8   :  { %v4529_v21 = vcombine.high %v1183_v22, %v1187_v24  ;;  %v1175_v28 = vld [vmem:[#allocation16 + $0x248] sm:$0xff] }
 0x2c9   :  { %2771 = vmatpush1.bf16.msra.mxu1 %v4472_v12  ;;  %2812 = vmatpush1.bf16.msra.mxu0 %v4600_v13  ;;  %v1319_v12 = vld [vmem:[#allocation16 + $0x6c8] sm:$0xff] }
 0x2ca   :  { %2772 = vmatprep.subr.bf16.mxu1 %v4465_v16  ;;  %2813 = vmatprep.subr.bf16.mxu0 %v4593_v17  ;;  %v1323_v13 = vld [vmem:[#allocation16 + $0x6e8] sm:$0xff]  ;;  %v4544_v16 = vcombine.low %v1199_v58, %v1203_v59  ;;  %v4672_v17 = vcombine.low %v1327_v60, %v1331_v61  ;;  %v4499_v58 = vcombine.high %v1152_v20, %v1156_v38  ;;  %v1144_v60 = vld [vmem:[#allocation16 + $0x150] sm:$0xff] }
 0x2cb   :  { %v4665_v19 = vcombine.high %v1319_v12, %v1323_v13  ;;  %v1179_v29 = vld [vmem:[#allocation16 + $0x268] sm:$0xff]  ;;  %v1148_v61 = vld [vmem:[#allocation16 + $0x170] sm:$0xff] }
 0x2cc   :  { %v4521_v34 = vcombine.high %v1175_v28, %v1179_v29  ;;  %v1167_v35 = vld [vmem:[#allocation16 + $0x208] sm:$0xff] }
 0x2cd   :  { %2773 = vmatpush1.bf16.msra.mxu1 %v4464_v26  ;;  %2814 = vmatpush1.bf16.msra.mxu0 %v4592_v27  ;;  %v1311_v26 = vld [vmem:[#allocation16 + $0x688] sm:$0xff] }
 0x2ce   :  { %2774 = vmatprep.subr.bf16.mxu1 %v4457_v5  ;;  %2815 = vmatprep.subr.bf16.mxu0 %v4585_v3  ;;  %v1315_v27 = vld [vmem:[#allocation16 + $0x6a8] sm:$0xff]  ;;  %v4536_v5 = vcombine.low %v1191_v7, %v1195_v10  ;;  %v4664_v3 = vcombine.low %v1319_v12, %v1323_v13  ;;  %v4491_v7 = vcombine.high %v1144_v60, %v1148_v61  ;;  %v1136_v12 = vld [vmem:[#allocation16 + $0x110] sm:$0xff] }
 0x2cf   :  { %v4657_v23 = vcombine.high %v1311_v26, %v1315_v27  ;;  %v1171_v15 = vld [vmem:[#allocation16 + $0x228] sm:$0xff]  ;;  %v1140_v13 = vld [vmem:[#allocation16 + $0x130] sm:$0xff] }
 0x2d0   :  { %v4513_v48 = vcombine.high %v1167_v35, %v1171_v15 }
 0x2d1   :  { %2775 = vmatpush1.bf16.msra.mxu1 %v4456_v30  ;;  %2816 = vmatpush1.bf16.msra.mxu0 %v4584_v31  ;;  %v1303_v30 = vld [vmem:[#allocation16 + $0x648] sm:$0xff] }
 0x2d2   :  { %2776 = vmatprep.subr.bf16.mxu1 %v4449_v32  ;;  %2817 = vmatprep.subr.bf16.mxu0 %v4577_v33  ;;  %v1307_v31 = vld [vmem:[#allocation16 + $0x668] sm:$0xff]  ;;  %v4528_v32 = vcombine.low %v1183_v22, %v1187_v24  ;;  %v4656_v33 = vcombine.low %v1311_v26, %v1315_v27  ;;  %v4483_v22 = vcombine.high %v1136_v12, %v1140_v13  ;;  %v1128_v26 = vld [vmem:[#allocation16 + $0xd0] sm:$0xff] }
 0x2d3   :  { %v4649_v14 = vcombine.high %v1303_v30, %v1307_v31  ;;  %v1132_v27 = vld [vmem:[#allocation16 + $0xf0] sm:$0xff] }
 0x2d5   :  { %2777 = vmatpush1.bf16.msra.mxu1 %v4448_v37  ;;  %2818 = vmatpush1.bf16.msra.mxu0 %v4576_v40  ;;  %v1295_v37 = vld [vmem:[#allocation16 + $0x608] sm:$0xff] }
 0x2d6   :  { %2778 = vmatprep.subr.bf16.mxu1 %v4569_v44  ;;  %2819 = vmatprep.subr.bf16.mxu0 %v4697_v46  ;;  %v1299_v40 = vld [vmem:[#allocation16 + $0x628] sm:$0xff]  ;;  %v4520_v44 = vcombine.low %v1175_v28, %v1179_v29  ;;  %v4648_v46 = vcombine.low %v1303_v30, %v1307_v31  ;;  %v4475_v28 = vcombine.high %v1128_v26, %v1132_v27  ;;  %v1120_v30 = vld [vmem:[#allocation16 + $0x90] sm:$0xff] }
 0x2d7   :  { %v4641_v49 = vcombine.high %v1295_v37, %v1299_v40  ;;  %v1124_v31 = vld [vmem:[#allocation16 + $0xb0] sm:$0xff] }
 0x2d9   :  { %2779 = vmatpush2.bf16.msra.mxu1 %v4568_v52  ;;  %2820 = vmatpush2.bf16.msra.mxu0 %v4696_v53  ;;  %v1288_v52 = vld [vmem:[#allocation16 + $0x5d0] sm:$0xff] }
 0x2da   :  { %2780 = vmatprep.subr.bf16.mxu1 %v4561_v54  ;;  %2821 = vmatprep.subr.bf16.mxu0 %v4689_v55  ;;  %v1292_v53 = vld [vmem:[#allocation16 + $0x5f0] sm:$0xff]  ;;  %v4512_v54 = vcombine.low %v1167_v35, %v1171_v15  ;;  %v4640_v55 = vcombine.low %v1295_v37, %v1299_v40  ;;  %v4467_v35 = vcombine.high %v1120_v30, %v1124_v31 }
 0x2db   :  { %v4635_v57 = vcombine.high %v1288_v52, %v1292_v53  ;;  %v1112_v37 = vld [vmem:[#allocation16 + $0x50] sm:$0xff] }
 0x2dc   :  { %v1116_v40 = vld [vmem:[#allocation16 + $0x70] sm:$0xff] }
 0x2dd   :  { %2781 = vmatpush2.bf16.msra.mxu1 %v4560_v39  ;;  %2822 = vmatpush2.bf16.msra.mxu0 %v4688_v41  ;;  %v1280_v39 = vld [vmem:[#allocation16 + $0x590] sm:$0xff] }
 0x2de   :  { %2782 = vmatprep.subr.bf16.mxu1 %v4553_v42  ;;  %2823 = vmatprep.subr.bf16.mxu0 %v4681_v43  ;;  %v1284_v41 = vld [vmem:[#allocation16 + $0x5b0] sm:$0xff]  ;;  %v4506_v42 = vcombine.low %v1160_v50, %v1164_v51  ;;  %v4634_v43 = vcombine.low %v1288_v52, %v1292_v53  ;;  %v4459_v50 = vcombine.high %v1112_v37, %v1116_v40 }
 0x2df   :  { %v4627_v59 = vcombine.high %v1280_v39, %v1284_v41  ;;  %v1104_v52 = vld [vmem:[#allocation16 + $0x10] sm:$0xff] }
 0x2e0   :  { %v1108_v53 = vld [vmem:[#allocation16 + $0x30] sm:$0xff] }
 0x2e1   :  { %2783 = vmatpush2.bf16.msra.mxu1 %v4552_v62  ;;  %2824 = vmatpush2.bf16.msra.mxu0 %v4680_v63  ;;  %v1272_v62 = vld [vmem:[#allocation16 + $0x550] sm:$0xff] }
 0x2e2   :  { %2784 = vmatprep.subr.bf16.mxu1 %v4545_v4  ;;  %2825 = vmatprep.subr.bf16.mxu0 %v4673_v6  ;;  %v1276_v63 = vld [vmem:[#allocation16 + $0x570] sm:$0xff]  ;;  %v4498_v4 = vcombine.low %v1152_v20, %v1156_v38  ;;  %v4626_v6 = vcombine.low %v1280_v39, %v1284_v41  ;;  %v4451_v20 = vcombine.high %v1104_v52, %v1108_v53 }
 0x2e3   :  { %v4619_v10 = vcombine.high %v1272_v62, %v1276_v63  ;;  %v1224_v39 = vld [vmem:[#allocation16 + $0x3d0] sm:$0xff] }
 0x2e4   :  { %v1228_v41 = vld [vmem:[#allocation16 + $0x3f0] sm:$0xff] }
 0x2e5   :  { %2785 = vmatpush2.bf16.msra.mxu1 %v4544_v16  ;;  %2826 = vmatpush2.bf16.msra.mxu0 %v4672_v17  ;;  %v1264_v16 = vld [vmem:[#allocation16 + $0x510] sm:$0xff] }
 0x2e6   :  { %2786 = vmatprep.subr.bf16.mxu1 %v4537_v18  ;;  %2827 = vmatprep.subr.bf16.mxu0 %v4665_v19  ;;  %v1268_v17 = vld [vmem:[#allocation16 + $0x530] sm:$0xff]  ;;  %v4490_v18 = vcombine.low %v1144_v60, %v1148_v61  ;;  %v4618_v19 = vcombine.low %v1272_v62, %v1276_v63  ;;  %v4571_v60 = vcombine.high %v1224_v39, %v1228_v41 }
 0x2e7   :  { %v4611_v24 = vcombine.high %v1264_v16, %v1268_v17  ;;  %v1216_v62 = vld [vmem:[#allocation16 + $0x390] sm:$0xff] }
 0x2e8   :  { %v1220_v63 = vld [vmem:[#allocation16 + $0x3b0] sm:$0xff] }
 0x2e9   :  { %2787 = vmatpush2.bf16.msra.mxu1 %v4536_v5  ;;  %2828 = vmatpush2.bf16.msra.mxu0 %v4664_v3  ;;  %v1256_v5 = vld [vmem:[#allocation16 + $0x4d0] sm:$0xff] }
 0x2ea   :  { %2788 = vmatprep.subr.bf16.mxu1 %v4529_v21  ;;  %2829 = vmatprep.subr.bf16.mxu0 %v4657_v23  ;;  %v1260_v3 = vld [vmem:[#allocation16 + $0x4f0] sm:$0xff]  ;;  %v4482_v21 = vcombine.low %v1136_v12, %v1140_v13  ;;  %v4610_v23 = vcombine.low %v1264_v16, %v1268_v17  ;;  %v4563_v12 = vcombine.high %v1216_v62, %v1220_v63 }
 0x2eb   :  { %v4603_v29 = vcombine.high %v1256_v5, %v1260_v3  ;;  %v1208_v16 = vld [vmem:[#allocation16 + $0x350] sm:$0xff] }
 0x2ec   :  { %v1212_v17 = vld [vmem:[#allocation16 + $0x370] sm:$0xff] }
 0x2ed   :  { %2789 = vmatpush2.bf16.msra.mxu1 %v4528_v32  ;;  %2830 = vmatpush2.bf16.msra.mxu0 %v4656_v33  ;;  %v1248_v32 = vld [vmem:[#allocation16 + $0x490] sm:$0xff] }
 0x2ee   :  { %2790 = vmatprep.subr.bf16.mxu1 %v4521_v34  ;;  %2831 = vmatprep.subr.bf16.mxu0 %v4649_v14  ;;  %v1252_v33 = vld [vmem:[#allocation16 + $0x4b0] sm:$0xff]  ;;  %v4474_v34 = vcombine.low %v1128_v26, %v1132_v27  ;;  %v4602_v14 = vcombine.low %v1256_v5, %v1260_v3  ;;  %v4555_v26 = vcombine.high %v1208_v16, %v1212_v17 }
 0x2ef   :  { %v4595_v15 = vcombine.high %v1248_v32, %v1252_v33  ;;  %v1200_v5 = vld [vmem:[#allocation16 + $0x310] sm:$0xff] }
 0x2f0   :  { %v1204_v3 = vld [vmem:[#allocation16 + $0x330] sm:$0xff] }
 0x2f1   :  { %2791 = vmatpush2.bf16.msra.mxu1 %v4520_v44  ;;  %2832 = vmatpush2.bf16.msra.mxu0 %v4648_v46  ;;  %v1240_v44 = vld [vmem:[#allocation16 + $0x450] sm:$0xff] }
 0x2f2   :  { %2792 = vmatprep.subr.bf16.mxu1 %v4513_v48  ;;  %2833 = vmatprep.subr.bf16.mxu0 %v4641_v49  ;;  %v1244_v46 = vld [vmem:[#allocation16 + $0x470] sm:$0xff]  ;;  %v4466_v48 = vcombine.low %v1120_v30, %v1124_v31  ;;  %v4594_v49 = vcombine.low %v1248_v32, %v1252_v33  ;;  %v4547_v30 = vcombine.high %v1200_v5, %v1204_v3 }
 0x2f3   :  { %v4587_v51 = vcombine.high %v1240_v44, %v1244_v46  ;;  %v1192_v32 = vld [vmem:[#allocation16 + $0x2d0] sm:$0xff] }
 0x2f4   :  { %v1196_v33 = vld [vmem:[#allocation16 + $0x2f0] sm:$0xff] }
 0x2f5   :  { %2793 = vmatpush2.bf16.msra.mxu1 %v4512_v54  ;;  %2834 = vmatpush2.bf16.msra.mxu0 %v4640_v55  ;;  %v1232_v54 = vld [vmem:[#allocation16 + $0x410] sm:$0xff] }
 0x2f6   :  { %2844 = vmatprep.subr.bf16.mxu1 %v4507_v56  ;;  %2885 = vmatprep.subr.bf16.mxu0 %v4635_v57  ;;  %v1236_v55 = vld [vmem:[#allocation16 + $0x430] sm:$0xff]  ;;  %v4458_v56 = vcombine.low %v1112_v37, %v1116_v40  ;;  %v4586_v57 = vcombine.low %v1240_v44, %v1244_v46  ;;  %v4539_v37 = vcombine.high %v1192_v32, %v1196_v33 }
 0x2f7   :  { %v4579_v38 = vcombine.high %v1232_v54, %v1236_v55  ;;  %v1184_v44 = vld [vmem:[#allocation16 + $0x290] sm:$0xff] }
 0x2f8   :  { %2795 = vmatmul.mubr.bf16.vlgmr.msra.gmra.mxu1 %v5697_v1  ;;  %2836 = vmatmul.mubr.bf16.vlgmr.msra.gmra.mxu0 %v5699_v36  ;;  %v1188_v46 = vld [vmem:[#allocation16 + $0x2b0] sm:$0xff] }
 0x2f9   :  { %2845 = vmatpush1.bf16.msra.mxu1 %v4506_v42  ;;  %2876 = vmatprep.mubr.bf16.mxu1 %v5693_v25  ;;  %v1352_v42 = vld [vmem:[#allocation16 + $0x7d0] sm:$0xff] }
 0x2fa   :  { %2886 = vmatpush1.bf16.msra.mxu0 %v4634_v43  ;;  %2917 = vmatprep.mubr.bf16.mxu0 %v5695_v0  ;;  %v1356_v43 = vld [vmem:[#allocation16 + $0x7f0] sm:$0xff] }
 0x2fb   :  { %2846 = vmatprep.subr.bf16.mxu1 %v4499_v58  ;;  %2887 = vmatprep.subr.bf16.mxu0 %v4627_v59  ;;  %v4450_v58 = vcombine.low %v1104_v52, %v1108_v53  ;;  %v4578_v59 = vcombine.low %v1232_v54, %v1236_v55  ;;  %v4699_v61 = vcombine.high %v1352_v42, %v1356_v43  ;;  %v1176_v54 = vld [vmem:[#allocation16 + $0x250] sm:$0xff] }
 0x2fc   :  { %v4531_v52 = vcombine.high %v1184_v44, %v1188_v46  ;;  %v1180_v55 = vld [vmem:[#allocation16 + $0x270] sm:$0xff] }
 0x2fd   :  { %2847 = vmatpush1.bf16.msra.mxu1 %v4498_v4  ;;  %v1344_v4 = vld [vmem:[#allocation16 + $0x790] sm:$0xff] }
 0x2fe   :  { %2888 = vmatpush1.bf16.msra.mxu0 %v4626_v6  ;;  %2848 = vmatprep.subr.bf16.mxu1 %v4491_v7  ;;  %v1348_v6 = vld [vmem:[#allocation16 + $0x7b0] sm:$0xff]  ;;  %v4570_v7 = vcombine.low %v1224_v39, %v1228_v41  ;;  %v4523_v39 = vcombine.high %v1176_v54, %v1180_v55 }
 0x2ff   :  { %2889 = vmatprep.subr.bf16.mxu0 %v4619_v10  ;;  %v4698_v10 = vcombine.low %v1352_v42, %v1356_v43  ;;  %v4691_v13 = vcombine.high %v1344_v4, %v1348_v6  ;;  %v1168_v42 = vld [vmem:[#allocation16 + $0x210] sm:$0xff] }
 0x300   :  { %v1172_v43 = vld [vmem:[#allocation16 + $0x230] sm:$0xff] }
 0x301   :  { %2849 = vmatpush1.bf16.msra.mxu1 %v4490_v18  ;;  %v1336_v18 = vld [vmem:[#allocation16 + $0x750] sm:$0xff] }
 0x302   :  { %2890 = vmatpush1.bf16.msra.mxu0 %v4618_v19  ;;  %2850 = vmatprep.subr.bf16.mxu1 %v4483_v22  ;;  %v1340_v19 = vld [vmem:[#allocation16 + $0x770] sm:$0xff]  ;;  %v4562_v22 = vcombine.low %v1216_v62, %v1220_v63  ;;  %v4515_v62 = vcombine.high %v1168_v42, %v1172_v43 }
 0x303   :  { %2891 = vmatprep.subr.bf16.mxu0 %v4611_v24  ;;  %v4690_v24 = vcombine.low %v1344_v4, %v1348_v6  ;;  %v4683_v27 = vcombine.high %v1336_v18, %v1340_v19  ;;  %v1161_v4 = vld [vmem:[#allocation16 + $0x1d8] sm:$0xff] }
 0x304   :  { %v1165_v6 = vld [vmem:[#allocation16 + $0x1f8] sm:$0xff] }
 0x305   :  { %2851 = vmatpush1.bf16.msra.mxu1 %v4482_v21  ;;  %v1328_v21 = vld [vmem:[#allocation16 + $0x710] sm:$0xff] }
 0x306   :  { %2892 = vmatpush1.bf16.msra.mxu0 %v4610_v23  ;;  %2852 = vmatprep.subr.bf16.mxu1 %v4475_v28  ;;  %v1332_v23 = vld [vmem:[#allocation16 + $0x730] sm:$0xff]  ;;  %v4554_v28 = vcombine.low %v1208_v16, %v1212_v17  ;;  %v4509_v16 = vcombine.high %v1161_v4, %v1165_v6 }
 0x307   :  { %2893 = vmatprep.subr.bf16.mxu0 %v4603_v29  ;;  %v4682_v29 = vcombine.low %v1336_v18, %v1340_v19  ;;  %v4675_v31 = vcombine.high %v1328_v21, %v1332_v23  ;;  %v1153_v18 = vld [vmem:[#allocation16 + $0x198] sm:$0xff] }
 0x308   :  { %v1157_v19 = vld [vmem:[#allocation16 + $0x1b8] sm:$0xff] }
 0x309   :  { %2853 = vmatpush1.bf16.msra.mxu1 %v4474_v34  ;;  %v1320_v34 = vld [vmem:[#allocation16 + $0x6d0] sm:$0xff] }
 0x30a   :  { %2894 = vmatpush1.bf16.msra.mxu0 %v4602_v14  ;;  %2854 = vmatprep.subr.bf16.mxu1 %v4467_v35  ;;  %v1324_v14 = vld [vmem:[#allocation16 + $0x6f0] sm:$0xff]  ;;  %v4546_v35 = vcombine.low %v1200_v5, %v1204_v3  ;;  %v4501_v5 = vcombine.high %v1153_v18, %v1157_v19  ;;  %v1145_v3 = vld [vmem:[#allocation16 + $0x158] sm:$0xff] }
 0x30b   :  { %2895 = vmatprep.subr.bf16.mxu0 %v4595_v15  ;;  %v4674_v15 = vcombine.low %v1328_v21, %v1332_v23  ;;  %v4667_v40 = vcombine.high %v1320_v34, %v1324_v14  ;;  %v1149_v21 = vld [vmem:[#allocation16 + $0x178] sm:$0xff] }
 0x30d   :  { %2855 = vmatpush1.bf16.msra.mxu1 %v4466_v48  ;;  %v1312_v48 = vld [vmem:[#allocation16 + $0x690] sm:$0xff] }
 0x30e   :  { %2896 = vmatpush1.bf16.msra.mxu0 %v4594_v49  ;;  %2856 = vmatprep.subr.bf16.mxu1 %v4459_v50  ;;  %v1316_v49 = vld [vmem:[#allocation16 + $0x6b0] sm:$0xff]  ;;  %v4538_v50 = vcombine.low %v1192_v32, %v1196_v33  ;;  %v4493_v32 = vcombine.high %v1145_v3, %v1149_v21 }
 0x30f   :  { %2897 = vmatprep.subr.bf16.mxu0 %v4587_v51  ;;  %v4666_v51 = vcombine.low %v1320_v34, %v1324_v14  ;;  %v4659_v53 = vcombine.high %v1312_v48, %v1316_v49  ;;  %v1137_v34 = vld [vmem:[#allocation16 + $0x118] sm:$0xff] }
 0x310   :  { %v1141_v14 = vld [vmem:[#allocation16 + $0x138] sm:$0xff] }
 0x311   :  { %2857 = vmatpush1.bf16.msra.mxu1 %v4458_v56  ;;  %v1304_v56 = vld [vmem:[#allocation16 + $0x650] sm:$0xff] }
 0x312   :  { %2898 = vmatpush1.bf16.msra.mxu0 %v4586_v57  ;;  %2858 = vmatprep.subr.bf16.mxu1 %v4451_v20  ;;  %v1308_v57 = vld [vmem:[#allocation16 + $0x670] sm:$0xff]  ;;  %v4530_v20 = vcombine.low %v1184_v44, %v1188_v46  ;;  %v4485_v44 = vcombine.high %v1137_v34, %v1141_v14  ;;  %v1129_v46 = vld [vmem:[#allocation16 + $0xd8] sm:$0xff] }
 0x313   :  { %2899 = vmatprep.subr.bf16.mxu0 %v4579_v38  ;;  %v4658_v38 = vcombine.low %v1312_v48, %v1316_v49  ;;  %v4651_v41 = vcombine.high %v1304_v56, %v1308_v57  ;;  %v1133_v48 = vld [vmem:[#allocation16 + $0xf8] sm:$0xff] }
 0x314   :  { %v1257_v49 = vld [vmem:[#allocation16 + $0x4d8] sm:$0xff] }
 0x315   :  { %2859 = vmatpush1.bf16.msra.mxu1 %v4450_v58  ;;  %v1296_v58 = vld [vmem:[#allocation16 + $0x610] sm:$0xff] }
 0x316   :  { %2900 = vmatpush1.bf16.msra.mxu0 %v4578_v59  ;;  %2860 = vmatprep.subr.bf16.mxu1 %v4571_v60  ;;  %v1300_v59 = vld [vmem:[#allocation16 + $0x630] sm:$0xff]  ;;  %v4522_v60 = vcombine.low %v1176_v54, %v1180_v55  ;;  %v1121_v54 = vld [vmem:[#allocation16 + $0x98] sm:$0xff] }
 0x317   :  { %2901 = vmatprep.subr.bf16.mxu0 %v4699_v61  ;;  %v4650_v61 = vcombine.low %v1304_v56, %v1308_v57  ;;  %v4643_v63 = vcombine.high %v1296_v58, %v1300_v59  ;;  %v1125_v55 = vld [vmem:[#allocation16 + $0xb8] sm:$0xff] }
 0x318   :  { %v1249_v56 = vld [vmem:[#allocation16 + $0x498] sm:$0xff] }
 0x319   :  { %2861 = vmatpush2.bf16.msra.mxu1 %v4570_v7  ;;  %v1289_v7 = vld [vmem:[#allocation16 + $0x5d8] sm:$0xff] }
 0x31a   :  { %2902 = vmatpush2.bf16.msra.mxu0 %v4698_v10  ;;  %2862 = vmatprep.subr.bf16.mxu1 %v4563_v12  ;;  %v1293_v10 = vld [vmem:[#allocation16 + $0x5f8] sm:$0xff]  ;;  %v4514_v12 = vcombine.low %v1168_v42, %v1172_v43 }
 0x31b   :  { %2903 = vmatprep.subr.bf16.mxu0 %v4691_v13  ;;  %v4642_v13 = vcombine.low %v1296_v58, %v1300_v59  ;;  %v4637_v17 = vcombine.high %v1289_v7, %v1293_v10  ;;  %v1253_v57 = vld [vmem:[#allocation16 + $0x4b8] sm:$0xff] }
 0x31c   :  { %v1113_v42 = vld [vmem:[#allocation16 + $0x58] sm:$0xff] }
 0x31d   :  { %2863 = vmatpush2.bf16.msra.mxu1 %v4562_v22  ;;  %v4508_v22 = vcombine.low %v1161_v4, %v1165_v6  ;;  %v1117_v43 = vld [vmem:[#allocation16 + $0x78] sm:$0xff] }
 0x31e   :  { %2904 = vmatpush2.bf16.msra.mxu0 %v4690_v24  ;;  %2864 = vmatprep.subr.bf16.mxu1 %v4555_v26  ;;  %v1281_v24 = vld [vmem:[#allocation16 + $0x598] sm:$0xff] }
 0x31f   :  { %2905 = vmatprep.subr.bf16.mxu0 %v4683_v27  ;;  %v1285_v26 = vld [vmem:[#allocation16 + $0x5b8] sm:$0xff]  ;;  %v4636_v27 = vcombine.low %v1289_v7, %v1293_v10 }
 0x320   :  { %v4629_v23 = vcombine.high %v1281_v24, %v1285_v26  ;;  %v1241_v58 = vld [vmem:[#allocation16 + $0x458] sm:$0xff] }
 0x321   :  { %2865 = vmatpush2.bf16.msra.mxu1 %v4554_v28  ;;  %v1273_v28 = vld [vmem:[#allocation16 + $0x558] sm:$0xff] }
 0x322   :  { %2906 = vmatpush2.bf16.msra.mxu0 %v4682_v29  ;;  %2866 = vmatprep.subr.bf16.mxu1 %v4547_v30  ;;  %v1277_v29 = vld [vmem:[#allocation16 + $0x578] sm:$0xff]  ;;  %v4500_v30 = vcombine.low %v1153_v18, %v1157_v19 }
 0x323   :  { %2907 = vmatprep.subr.bf16.mxu0 %v4675_v31  ;;  %v4628_v31 = vcombine.low %v1281_v24, %v1285_v26  ;;  %v4621_v33 = vcombine.high %v1273_v28, %v1277_v29  ;;  %v1245_v59 = vld [vmem:[#allocation16 + $0x478] sm:$0xff] }
 0x324   :  { %v1105_v4 = vld [vmem:[#allocation16 + $0x18] sm:$0xff] }
 0x325   :  { %2867 = vmatpush2.bf16.msra.mxu1 %v4546_v35  ;;  %v1265_v35 = vld [vmem:[#allocation16 + $0x518] sm:$0xff] }
 0x326   :  { %2908 = vmatpush2.bf16.msra.mxu0 %v4674_v15  ;;  %2868 = vmatprep.subr.bf16.mxu1 %v4539_v37  ;;  %v1269_v15 = vld [vmem:[#allocation16 + $0x538] sm:$0xff]  ;;  %v4492_v37 = vcombine.low %v1145_v3, %v1149_v21 }
 0x327   :  { %2909 = vmatprep.subr.bf16.mxu0 %v4667_v40  ;;  %v4620_v40 = vcombine.low %v1273_v28, %v1277_v29  ;;  %v1109_v6 = vld [vmem:[#allocation16 + $0x38] sm:$0xff] }
 0x328   :  { %v1233_v7 = vld [vmem:[#allocation16 + $0x418] sm:$0xff]  ;;  %v4452_v26 = vcombine.low %v1105_v4, %v1109_v6 }
 0x329   :  { %2869 = vmatpush2.bf16.msra.mxu1 %v4538_v50  ;;  %v1261_v50 = vld [vmem:[#allocation16 + $0x4f8] sm:$0xff] }
 0x32a   :  { %2910 = vmatpush2.bf16.msra.mxu0 %v4666_v51  ;;  %2870 = vmatprep.subr.bf16.mxu1 %v4531_v52  ;;  %v4612_v51 = vcombine.low %v1265_v35, %v1269_v15  ;;  %v4477_v52 = vcombine.high %v1129_v46, %v1133_v48  ;;  %v1237_v10 = vld [vmem:[#allocation16 + $0x438] sm:$0xff] }
 0x32b   :  { %2911 = vmatprep.subr.bf16.mxu0 %v4659_v53  ;;  %v4605_v53 = vcombine.high %v1257_v49, %v1261_v50  ;;  %v1225_v18 = vld [vmem:[#allocation16 + $0x3d8] sm:$0xff] }
 0x32c   :  { %v1229_v19 = vld [vmem:[#allocation16 + $0x3f8] sm:$0xff] }
 0x32d   :  { %2871 = vmatpush2.bf16.msra.mxu1 %v4530_v20  ;;  %v4476_v20 = vcombine.low %v1129_v46, %v1133_v48  ;;  %v1357_v24 = vld [vmem:[#allocation16 + $0x7f8] sm:$0xff] }
 0x32e   :  { %2912 = vmatpush2.bf16.msra.mxu0 %v4658_v38  ;;  %2872 = vmatprep.subr.bf16.mxu1 %v4523_v39  ;;  %v4604_v38 = vcombine.low %v1257_v49, %v1261_v50  ;;  %v4469_v39 = vcombine.high %v1121_v54, %v1125_v55  ;;  %v1217_v21 = vld [vmem:[#allocation16 + $0x398] sm:$0xff] }
 0x32f   :  { %2913 = vmatprep.subr.bf16.mxu0 %v4651_v41  ;;  %v4597_v41 = vcombine.high %v1249_v56, %v1253_v57  ;;  %v1345_v28 = vld [vmem:[#allocation16 + $0x798] sm:$0xff] }
 0x330   :  { %v1349_v29 = vld [vmem:[#allocation16 + $0x7b8] sm:$0xff] }
 0x331   :  { %2873 = vmatpush2.bf16.msra.mxu1 %v4522_v60  ;;  %v4468_v60 = vcombine.low %v1121_v54, %v1125_v55  ;;  %v1201_v46 = vld [vmem:[#allocation16 + $0x318] sm:$0xff] }
 0x332   :  { %2914 = vmatpush2.bf16.msra.mxu0 %v4650_v61  ;;  %2874 = vmatprep.subr.bf16.mxu1 %v4515_v62  ;;  %v4596_v61 = vcombine.low %v1249_v56, %v1253_v57  ;;  %v4461_v62 = vcombine.high %v1113_v42, %v1117_v43  ;;  %v1205_v48 = vld [vmem:[#allocation16 + $0x338] sm:$0xff] }
 0x333   :  { %2915 = vmatprep.subr.bf16.mxu0 %v4643_v63  ;;  %v4589_v63 = vcombine.high %v1241_v58, %v1245_v59  ;;  %v1329_v49 = vld [vmem:[#allocation16 + $0x718] sm:$0xff] }
 0x334   :  { %v1333_v50 = vld [vmem:[#allocation16 + $0x738] sm:$0xff] }
 0x335   :  { %2875 = vmatpush2.bf16.msra.mxu1 %v4514_v12  ;;  %v4460_v12 = vcombine.low %v1113_v42, %v1117_v43  ;;  %v1193_v54 = vld [vmem:[#allocation16 + $0x2d8] sm:$0xff] }
 0x336   :  { %2916 = vmatpush2.bf16.msra.mxu0 %v4642_v13  ;;  %2926 = vmatprep.subr.bf16.mxu1 %v4509_v16  ;;  %v4588_v13 = vcombine.low %v1241_v58, %v1245_v59  ;;  %v4453_v16 = vcombine.high %v1105_v4, %v1109_v6  ;;  %v1197_v55 = vld [vmem:[#allocation16 + $0x2f8] sm:$0xff] }
 0x337   :  { %2967 = vmatprep.subr.bf16.mxu0 %v4637_v17  ;;  %v4581_v17 = vcombine.high %v1233_v7, %v1237_v10  ;;  %v1321_v56 = vld [vmem:[#allocation16 + $0x6d8] sm:$0xff] }
 0x338   :  { %2877 = vmatmul.mubr.bf16.vlgmr.msra.gmra.mxu1 %v5697_v1  ;;  %v1325_v57 = vld [vmem:[#allocation16 + $0x6f8] sm:$0xff] }
 0x339   :  { %2918 = vmatmul.mubr.bf16.vlgmr.msra.gmra.mxu0 %v5699_v36  ;;  %2927 = vmatpush1.bf16.msra.mxu1 %v4508_v22  ;;  %v1353_v22 = vld [vmem:[#allocation16 + $0x7d8] sm:$0xff] }
 0x33a   :  { %2958 = vmatprep.mubr.bf16.mxu1 %v5693_v25  ;;  %2968 = vmatpush1.bf16.msra.mxu0 %v4636_v27  ;;  %v4613_v25 = vcombine.high %v1265_v35, %v1269_v15  ;;  %v4580_v27 = vcombine.low %v1233_v7, %v1237_v10  ;;  %v4701_v3 = vcombine.high %v1353_v22, %v1357_v24  ;;  %v1337_v35 = vld [vmem:[#allocation16 + $0x758] sm:$0xff] }
 0x33b   :  { %2999 = vmatprep.mubr.bf16.mxu0 %v5695_v0  ;;  %2928 = vmatprep.subr.bf16.mxu1 %v4501_v5  ;;  %v4484_v0 = vcombine.low %v1137_v34, %v1141_v14  ;;  %v4573_v5 = vcombine.high %v1225_v18, %v1229_v19  ;;  %v1209_v34 = vld [vmem:[#allocation16 + $0x358] sm:$0xff] }
 0x33c   :  { %2969 = vmatprep.subr.bf16.mxu0 %v4629_v23  ;;  %v1221_v23 = vld [vmem:[#allocation16 + $0x3b8] sm:$0xff] }
 0x33d   :  { %2929 = vmatpush1.bf16.msra.mxu1 %v4500_v30  ;;  %v4572_v30 = vcombine.low %v1225_v18, %v1229_v19  ;;  %v1213_v14 = vld [vmem:[#allocation16 + $0x378] sm:$0xff] }
 0x33e   :  { %2970 = vmatpush1.bf16.msra.mxu0 %v4628_v31  ;;  %2930 = vmatprep.subr.bf16.mxu1 %v4493_v32  ;;  %v4700_v31 = vcombine.low %v1353_v22, %v1357_v24  ;;  %v4565_v32 = vcombine.high %v1217_v21, %v1221_v23  ;;  %v1341_v15 = vld [vmem:[#allocation16 + $0x778] sm:$0xff] }
 0x33f   :  { %2971 = vmatprep.subr.bf16.mxu0 %v4621_v33  ;;  %v4693_v33 = vcombine.high %v1345_v28, %v1349_v29  ;;  %v1185_v42 = vld [vmem:[#allocation16 + $0x298] sm:$0xff] }
 0x340   :  { %v1189_v43 = vld [vmem:[#allocation16 + $0x2b8] sm:$0xff] }
 0x341   :  { %2931 = vmatpush1.bf16.msra.mxu1 %v4492_v37  ;;  %v4564_v37 = vcombine.low %v1217_v21, %v1221_v23  ;;  %v1313_v58 = vld [vmem:[#allocation16 + $0x698] sm:$0xff] }
 0x342   :  { %2972 = vmatpush1.bf16.msra.mxu0 %v4620_v40  ;;  %2932 = vmatprep.subr.bf16.mxu1 %v4485_v44  ;;  %v4692_v40 = vcombine.low %v1345_v28, %v1349_v29  ;;  %v4557_v44 = vcombine.high %v1209_v34, %v1213_v14  ;;  %v1317_v59 = vld [vmem:[#allocation16 + $0x6b8] sm:$0xff]  ;;  %v5721_v28 = vld [vmem:[#allocation18] sm:$0xff] }
 0x343   :  { %2973 = vmatprep.subr.bf16.mxu0 %v4613_v25  ;;  %v4685_v25 = vcombine.high %v1337_v35, %v1341_v15  ;;  %v1177_v4 = vld [vmem:[#allocation16 + $0x258] sm:$0xff]  ;;  %v1363_v29 = vrot.slane %v5721_v28, %v5600_v9 }
 0x344   :  { %v1181_v6 = vld [vmem:[#allocation16 + $0x278] sm:$0xff] }
 0x345   :  { %2933 = vmatpush1.bf16.msra.mxu1 %v4484_v0  ;;  %v4556_v0 = vcombine.low %v1209_v34, %v1213_v14  ;;  %v1305_v7 = vld [vmem:[#allocation16 + $0x658] sm:$0xff] }
 0x346   :  { %2974 = vmatpush1.bf16.msra.mxu0 %v4612_v51  ;;  %2934 = vmatprep.subr.bf16.mxu1 %v4477_v52  ;;  %v4684_v51 = vcombine.low %v1337_v35, %v1341_v15  ;;  %v4549_v52 = vcombine.high %v1201_v46, %v1205_v48  ;;  %v1309_v10 = vld [vmem:[#allocation16 + $0x678] sm:$0xff] }
 0x347   :  { %2975 = vmatprep.subr.bf16.mxu0 %v4605_v53  ;;  %v4677_v53 = vcombine.high %v1329_v49, %v1333_v50  ;;  %v1169_v18 = vld [vmem:[#allocation16 + $0x218] sm:$0xff] }
 0x348   :  { %v1173_v19 = vld [vmem:[#allocation16 + $0x238] sm:$0xff] }
 0x349   :  { %2935 = vmatpush1.bf16.msra.mxu1 %v4476_v20  ;;  %v4548_v20 = vcombine.low %v1201_v46, %v1205_v48  ;;  %v1297_v22 = vld [vmem:[#allocation16 + $0x618] sm:$0xff]  ;;  %v4516_v21 = vcombine.low %v1169_v18, %v1173_v19 }
 0x34a   :  { %2976 = vmatpush1.bf16.msra.mxu0 %v4604_v38  ;;  %2936 = vmatprep.subr.bf16.mxu1 %v4469_v39  ;;  %v4676_v38 = vcombine.low %v1329_v49, %v1333_v50  ;;  %v4541_v39 = vcombine.high %v1193_v54, %v1197_v55  ;;  %v1301_v24 = vld [vmem:[#allocation16 + $0x638] sm:$0xff] }
 0x34b   :  { %2977 = vmatprep.subr.bf16.mxu0 %v4597_v41  ;;  %v4669_v41 = vcombine.high %v1321_v56, %v1325_v57  ;;  %v4644_v23 = vcombine.low %v1297_v22, %v1301_v24 }
 0x34d   :  { %2937 = vmatpush1.bf16.msra.mxu1 %v4468_v60  ;;  %v4540_v60 = vcombine.low %v1193_v54, %v1197_v55 }
 0x34e   :  { %2978 = vmatpush1.bf16.msra.mxu0 %v4596_v61  ;;  %2938 = vmatprep.subr.bf16.mxu1 %v4461_v62  ;;  %v4668_v61 = vcombine.low %v1321_v56, %v1325_v57  ;;  %v4533_v62 = vcombine.high %v1185_v42, %v1189_v43 }
 0x34f   :  { %2979 = vmatprep.subr.bf16.mxu0 %v4589_v63  ;;  %v4661_v63 = vcombine.high %v1313_v58, %v1317_v59 }
 0x351   :  { %2939 = vmatpush1.bf16.msra.mxu1 %v4460_v12  ;;  %v4532_v12 = vcombine.low %v1185_v42, %v1189_v43  ;;  %v1371_v43 = vrot.slane %v5721_v28, %v5642_v45 }
 0x352   :  { %2980 = vmatpush1.bf16.msra.mxu0 %v4588_v13  ;;  %2940 = vmatprep.subr.bf16.mxu1 %v4453_v16  ;;  %v4660_v13 = vcombine.low %v1313_v58, %v1317_v59  ;;  %v4525_v16 = vcombine.high %v1177_v4, %v1181_v6 }
 0x353   :  { %2981 = vmatprep.subr.bf16.mxu0 %v4581_v17  ;;  %v4653_v17 = vcombine.high %v1305_v7, %v1309_v10 }
 0x355   :  { %2941 = vmatpush1.bf16.msra.mxu1 %v4452_v26  ;;  %v4524_v26 = vcombine.low %v1177_v4, %v1181_v6 }
 0x356   :  { %2982 = vmatpush1.bf16.msra.mxu0 %v4580_v27  ;;  %2942 = vmatprep.subr.bf16.mxu1 %v4573_v5  ;;  %v4652_v27 = vcombine.low %v1305_v7, %v1309_v10  ;;  %v4517_v5 = vcombine.high %v1169_v18, %v1173_v19 }
 0x357   :  { %2983 = vmatprep.subr.bf16.mxu0 %v4701_v3  ;;  %v4645_v3 = vcombine.high %v1297_v22, %v1301_v24 }
 0x359   :  { %2943 = vmatpush2.bf16.msra.mxu1 %v4572_v30  ;;  %v1367_v30 = vrot.slane %v5721_v28, %v5603_v11 }
 0x35a   :  { %2984 = vmatpush2.bf16.msra.mxu0 %v4700_v31  ;;  %2944 = vmatprep.subr.bf16.mxu1 %v4565_v32 }
 0x35b   :  { %2985 = vmatprep.subr.bf16.mxu0 %v4693_v33 }
 0x35d   :  { %2945 = vmatpush2.bf16.msra.mxu1 %v4564_v37 }
 0x35e   :  { %2986 = vmatpush2.bf16.msra.mxu0 %v4692_v40  ;;  %2946 = vmatprep.subr.bf16.mxu1 %v4557_v44 }
 0x35f   :  { %2987 = vmatprep.subr.bf16.mxu0 %v4685_v25 }
 0x361   :  { %2947 = vmatpush2.bf16.msra.mxu1 %v4556_v0 }
 0x362   :  { %2988 = vmatpush2.bf16.msra.mxu0 %v4684_v51  ;;  %2948 = vmatprep.subr.bf16.mxu1 %v4549_v52 }
 0x363   :  { %2989 = vmatprep.subr.bf16.mxu0 %v4677_v53 }
 0x365   :  { %2949 = vmatpush2.bf16.msra.mxu1 %v4548_v20 }
 0x366   :  { %2990 = vmatpush2.bf16.msra.mxu0 %v4676_v38  ;;  %2950 = vmatprep.subr.bf16.mxu1 %v4541_v39 }
 0x367   :  { %2991 = vmatprep.subr.bf16.mxu0 %v4669_v41 }
 0x369   :  { %2951 = vmatpush2.bf16.msra.mxu1 %v4540_v60  ;;  %v1375_v60 = vrot.slane %v5721_v28, %v5645_v47 }
 0x36a   :  { %2992 = vmatpush2.bf16.msra.mxu0 %v4668_v61  ;;  %2952 = vmatprep.subr.bf16.mxu1 %v4533_v62 }
 0x36b   :  { %2993 = vmatprep.subr.bf16.mxu0 %v4661_v63 }
 0x36d   :  { %2953 = vmatpush2.bf16.msra.mxu1 %v4532_v12 }
 0x36e   :  { %2994 = vmatpush2.bf16.msra.mxu0 %v4660_v13  ;;  %2954 = vmatprep.subr.bf16.mxu1 %v4525_v16 }
 0x36f   :  { %2995 = vmatprep.subr.bf16.mxu0 %v4653_v17 }
 0x371   :  { %2955 = vmatpush2.bf16.msra.mxu1 %v4524_v26 }
 0x372   :  { %2996 = vmatpush2.bf16.msra.mxu0 %v4652_v27  ;;  %2956 = vmatprep.subr.bf16.mxu1 %v4517_v5 }
 0x373   :  { %2997 = vmatprep.subr.bf16.mxu0 %v4645_v3 }
 0x375   :  { %2957 = vmatpush2.bf16.msra.mxu1 %v4516_v21 }
 0x376   :  { %2998 = vmatpush2.bf16.msra.mxu0 %v4644_v23 }
 0x378   :  { %2959 = vmatmul.mubr.bf16.vlgmr.msra.gmra.mxu1 %v5697_v1  ;;  %v2714_v31 = vpop.f32.mrf.mxu1  ;;  %v2755_v32 = vpop.f32.mrf.mxu0 }
 0x379   :  { %3000 = vmatmul.mubr.bf16.vlgmr.msra.gmra.mxu0 %v5699_v36  ;;  %v2715_v33 = vadd.f32 %v2714_v31, %v1363_v29 }
 0x37a   :  { %v2716_v34 = vpop.f32.mrf.mxu1  ;;  %v2757_v14 = vpop.f32.mrf.mxu0 }
 0x37b   :  { %v2756_v35 = vadd.f32 %v2755_v32, %v2715_v33  ;;  %v2717_v15 = vadd.f32 %v2716_v34, %v1367_v30 }
 0x37c   :  { %v2718_v37 = vpop.f32.mrf.mxu1  ;;  %v2759_v40 = vpop.f32.mrf.mxu0 }
 0x37d   :  { %v2758_v44 = vadd.f32 %v2757_v14, %v2717_v15  ;;  %v3008_v49 = vmul.f32 0.2, %v2756_v35 }
 0x37e   :  { %v2719_v25 = vpop.f32.mrf.mxu1  ;;  %v2760_v46 = vpop.f32.mrf.mxu0 }
 0x37f   :  { %v3009_v48 = vmul.f32 0.2, %v2758_v44  ;;  %v5731_v0 = vmax.f32 %v2756_v35, %v3008_v49 }
 0x381   :  { %v5729_v50 = vmax.f32 %v2758_v44, %v3009_v48  ;;  %v3024_v51 = vrot.slane %v5731_v0, 4  ;;  %v3080_v52 = vmul.f32 %v5731_v0, %v5731_v0 }
 0x383   :  { %v3030_v1 = vrot.slane %v5729_v50, 4  ;;  %v3081_v36 = vmul.f32 %v5729_v50, %v5729_v50  ;;  %v3025_v55 = vadd.f32 %v3024_v51, %v5731_v0  ;;  %v3088_v56 = vrot.slane %v3080_v52, 4 }
 0x385   :  { %v3031_v53 = vadd.f32 %v3030_v1, %v5729_v50  ;;  %v3094_v54 = vrot.slane %v3081_v36, 4  ;;  %v3026_v38 = vrot.slane %v3025_v55, 2  ;;  %v3089_v39 = vadd.f32 %v3088_v56, %v3080_v52 }
 0x387   :  { %v3032_v57 = vrot.slane %v3031_v53, 2  ;;  %v3095_v20 = vadd.f32 %v3094_v54, %v3081_v36  ;;  %v3027_v58 = vadd.f32 %v3026_v38, %v3025_v55  ;;  %v3090_v59 = vrot.slane %v3089_v39, 2 }
 0x389   :  { %v3033_v41 = vadd.f32 %v3032_v57, %v3031_v53  ;;  %v3096_v42 = vrot.slane %v3095_v20, 2  ;;  %v3028_v7 = vrot.slane %v3027_v58, 1  ;;  %v3091_v10 = vadd.f32 %v3090_v59, %v3089_v39 }
 0x38b   :  { %v3034_v61 = vrot.slane %v3033_v41, 1  ;;  %v3097_v62 = vadd.f32 %v3096_v42, %v3095_v20  ;;  %v3029_v5 = vadd.f32 %v3028_v7, %v3027_v58  ;;  %v3092_v3 = vrot.slane %v3091_v10, 1  ;;  %v4958_v58 = vld [vmem:[#allocation19 + $0x174] ss:$8 sps:$4 sm:$0xff]  }
 0x38c   :  { %4239 = vmatprep.subr.bf16.mxu0 %v4958_v58  ;;  %v4989_v58 = vld [vmem:[#allocation19 + $0x10] ss:$8 sps:$4 sm:$0xff]  }
 0x38d   :  { %v3098_v18 = vrot.slane %v3097_v62, 1  ;;  %v3035_v24 = vadd.f32 %v3034_v61, %v3033_v41  ;;  %v5754_v35 = vmul.f32 0.125, %v3029_v5  ;;  %v3093_v15 = vadd.f32 %v3092_v3, %v3091_v10  ;;  %v4956_v61 = vld [vmem:[#allocation19 + $0x170] ss:$8 sps:$4 sm:$0xff]  }
 0x38e   :  { %4240 = vmatpush1.bf16.msra.mxu0 %v4956_v61 }
 0x38f   :  { %v3099_v31 = vadd.f32 %v3098_v18, %v3097_v62  ;;  %v5747_v32 = vmul.f32 0.125, %v3035_v24  ;;  %v3136_v52 = vmul.f32 0.125, %v3093_v15  ;;  %v3144_v53 = vmul.f32 %v5754_v35, %v5754_v35  ;;  %v4964_v18 = vld [vmem:[#allocation19 + $0x164] ss:$8 sps:$4 sm:$0xff]   ;;  %v4962_v24 = vld [vmem:[#allocation19 + $0x160] ss:$8 sps:$4 sm:$0xff]  }
 0x390   :  { %4241 = vmatprep.subr.bf16.mxu0 %v4964_v18  ;;  %v4965_v15 = vld [vmem:[#allocation19 + $0x50] ss:$8 sps:$4 sm:$0xff]   ;;  %v5006_v18 = vld [vmem:[#allocation19 + $0x1f4] ss:$8 sps:$4 sm:$0xff]  }
 0x391   :  { %v3137_v46 = vmul.f32 0.125, %v3099_v31  ;;  %v3145_v48 = vmul.f32 %v5747_v32, %v5747_v32  ;;  %v3152_v59 = vsub.f32 %v3136_v52, %v3144_v53  ;;  %v4979_v53 = vld [vmem:[#allocation19 + $0x34] ss:$8 sps:$4 sm:$0xff]  }
 0x392   :  { %4242 = vmatpush1.bf16.msra.mxu0 %v4962_v24  ;;  %v5004_v24 = vld [vmem:[#allocation19 + $0x1f0] ss:$8 sps:$4 sm:$0xff]  }
 0x393   :  { %v3153_v20 = vsub.f32 %v3137_v46, %v3145_v48 }
 0x395   :  { %v3161_v7 = vmax.f32 %v3153_v20, 0.0  ;;  %v4988_v20 = vld [vmem:[#allocation19 + $0x124] ss:$8 sps:$4 sm:$0xff]  }
 0x3b8   :  { %v2796_v63 = vpop.f32.mrf.mxu1  ;;  %v2837_v4 = vpop.f32.mrf.mxu0 }
 0x3b9   :  { %v2797_v6 = vadd.f32 %v2796_v63, %v1371_v43  ;;  %v4955_v43 = vld [vmem:[#allocation19 + $0x74] ss:$8 sps:$4 sm:$0xff]  }
 0x3ba   :  { %v2798_v12 = vpop.f32.mrf.mxu1  ;;  %v2839_v13 = vpop.f32.mrf.mxu0  ;;  %4198 = vmatprep.subr.bf16.mxu1 %v4955_v43 }
 0x3bb   :  { %v2838_v16 = vadd.f32 %v2837_v4, %v2797_v6  ;;  %v2799_v17 = vadd.f32 %v2798_v12, %v1375_v60  ;;  %v4953_v60 = vld [vmem:[#allocation19 + $0x70] ss:$8 sps:$4 sm:$0xff]  }
 0x3bc   :  { %v2800_v19 = vpop.f32.mrf.mxu1  ;;  %v2841_v22 = vpop.f32.mrf.mxu0  ;;  %4199 = vmatpush1.bf16.msra.mxu1 %v4953_v60 }
 0x3bd   :  { %v3010_v26 = vmul.f32 0.2, %v2838_v16  ;;  %v2840_v27 = vadd.f32 %v2839_v13, %v2799_v17  ;;  %v4961_v17 = vld [vmem:[#allocation19 + $0x64] ss:$8 sps:$4 sm:$0xff]   ;;  %v3160_v19 = vmax.f32 %v3152_v59, 0.0 }
 0x3be   :  { %v2801_v21 = vpop.f32.mrf.mxu1  ;;  %v2842_v23 = vpop.f32.mrf.mxu0  ;;  %v4959_v22 = vld [vmem:[#allocation19 + $0x60] ss:$8 sps:$4 sm:$0xff]   ;;  %4200 = vmatprep.subr.bf16.mxu1 %v4961_v17  ;;  %v4992_v59 = vld [vmem:[#allocation19 + $0x110] ss:$8 sps:$4 sm:$0xff]   ;;  %v5003_v17 = vld [vmem:[#allocation19 + $0xf4] ss:$8 sps:$4 sm:$0xff]  }
 0x3bf   :  { %v5745_v29 = vmax.f32 %v2838_v16, %v3010_v26  ;;  %v3011_v30 = vmul.f32 0.2, %v2840_v27  ;;  %v3170_v21 = vadd.f32 1e-05, %v3161_v7  ;;  %v4995_v7 = vld [vmem:[#allocation19] ss:$8 sps:$4 sm:$0xff]  }
 0x3c0   :  { %4201 = vmatpush1.bf16.msra.mxu1 %v4959_v22  ;;  %v5001_v22 = vld [vmem:[#allocation19 + $0xf0] ss:$8 sps:$4 sm:$0xff]  }
 0x3c1   :  { %v3036_v33 = vrot.slane %v5745_v29, 4  ;;  %v3082_v34 = vmul.f32 %v5745_v29, %v5745_v29  ;;  %v5752_v14 = vmax.f32 %v2840_v27, %v3011_v30  ;;  %5157 = vrsqrt.f32 %v3170_v21  ;;  %v5010_v21 = vld [vmem:[#allocation19 + $0x1e0] ss:$8 sps:$4 sm:$0xff]  }
 0x3c3   :  { %v3037_v37 = vadd.f32 %v3036_v33, %v5745_v29  ;;  %v3100_v40 = vrot.slane %v3082_v34, 4  ;;  %v3042_v44 = vrot.slane %v5752_v14, 4  ;;  %v3083_v25 = vmul.f32 %v5752_v14, %v5752_v14  ;;  %v4967_v33 = vld [vmem:[#allocation19 + $0x54] ss:$8 sps:$4 sm:$0xff]  }
 0x3c4   :  { %4202 = vmatprep.subr.bf16.mxu1 %v4967_v33  ;;  %v5013_v33 = vld [vmem:[#allocation19 + $0xd0] ss:$8 sps:$4 sm:$0xff]  }
 0x3c5   :  { %v3038_v49 = vrot.slane %v3037_v37, 2  ;;  %v3101_v1 = vadd.f32 %v3100_v40, %v3082_v34  ;;  %v3043_v36 = vadd.f32 %v3042_v44, %v5752_v14  ;;  %v3106_v51 = vrot.slane %v3083_v25, 4  ;;  %v4970_v34 = vld [vmem:[#allocation19 + $0x154] ss:$8 sps:$4 sm:$0xff]   ;;  %4203 = vmatpush1.bf16.msra.mxu1 %v4965_v15  ;;  %v5016_v15 = vld [vmem:[#allocation19 + $0x1d0] ss:$8 sps:$4 sm:$0xff]  }
 0x3c6   :  { %v3169_v40 = vadd.f32 1e-05, %v3160_v19  ;;  %4243 = vmatprep.subr.bf16.mxu0 %v4970_v34  ;;  %v5782_v34 = vsub.s32 4, %v5597_v8 }
 0x3c7   :  { %v3039_v54 = vadd.f32 %v3038_v49, %v3037_v37  ;;  %v3102_v55 = vrot.slane %v3101_v1, 2  ;;  %v3044_v56 = vrot.slane %v3043_v36, 2  ;;  %v3107_v57 = vadd.f32 %v3106_v51, %v3083_v25  ;;  %v4968_v37 = vld [vmem:[#allocation19 + $0x150] ss:$8 sps:$4 sm:$0xff]   ;;  %v4973_v49 = vld [vmem:[#allocation19 + $0x44] ss:$8 sps:$4 sm:$0xff]  }
 0x3c8   :  { %4244 = vmatpush1.bf16.msra.mxu0 %v4968_v37  ;;  %v4976_v51 = vld [vmem:[#allocation19 + $0x144] ss:$8 sps:$4 sm:$0xff]   ;;  %5159 = vrsqrt.f32 %v3169_v40  ;;  %4204 = vmatprep.subr.bf16.mxu1 %v4973_v49  ;;  %v5027_v49 = vld [vmem:[#allocation19 + $0xb4] ss:$8 sps:$4 sm:$0xff]  }
 0x3c9   :  { %v3040_v38 = vrot.slane %v3039_v54, 1  ;;  %v3103_v39 = vadd.f32 %v3102_v55, %v3101_v1  ;;  %v3045_v41 = vadd.f32 %v3044_v56, %v3043_v36  ;;  %v3108_v42 = vrot.slane %v3107_v57, 2  ;;  %v4971_v1 = vld [vmem:[#allocation19 + $0x40] ss:$8 sps:$4 sm:$0xff]   ;;  %4245 = vmatprep.subr.bf16.mxu0 %v4976_v51  ;;  %v4977_v55 = vld [vmem:[#allocation19 + $0x30] ss:$8 sps:$4 sm:$0xff]  }
 0x3ca   :  { %v4974_v36 = vld [vmem:[#allocation19 + $0x140] ss:$8 sps:$4 sm:$0xff]   ;;  %4205 = vmatpush1.bf16.msra.mxu1 %v4971_v1  ;;  %v4980_v56 = vld [vmem:[#allocation19 + $0x130] ss:$8 sps:$4 sm:$0xff]   ;;  %v5021_v37 = vld [vmem:[#allocation19 + $0xc4] ss:$8 sps:$4 sm:$0xff]  }
 0x3cb   :  { %v3041_v62 = vadd.f32 %v3040_v38, %v3039_v54  ;;  %v3104_v63 = vrot.slane %v3103_v39, 1  ;;  %v3046_v4 = vrot.slane %v3045_v41, 1  ;;  %v3109_v6 = vadd.f32 %v3108_v42, %v3107_v57  ;;  %v4982_v54 = vld [vmem:[#allocation19 + $0x134] ss:$8 sps:$4 sm:$0xff]   ;;  %4206 = vmatprep.subr.bf16.mxu1 %v4979_v53  ;;  %v4985_v57 = vld [vmem:[#allocation19 + $0x24] ss:$8 sps:$4 sm:$0xff]  }
 0x3cc   :  { %4246 = vmatpush1.bf16.msra.mxu0 %v4974_v36  ;;  %v4983_v38 = vld [vmem:[#allocation19 + $0x20] ss:$8 sps:$4 sm:$0xff]   ;;  %v4994_v42 = vld [vmem:[#allocation19 + $0x114] ss:$8 sps:$4 sm:$0xff]   ;;  %v5024_v40 = vld [vmem:[#allocation19 + $0x1c4] ss:$8 sps:$4 sm:$0xff]  }
 0x3cd   :  { %v5765_v10 = vmul.f32 0.125, %v3041_v62  ;;  %v3105_v12 = vadd.f32 %v3104_v63, %v3103_v39  ;;  %v3047_v13 = vadd.f32 %v3046_v4, %v3045_v41  ;;  %v3110_v16 = vrot.slane %v3109_v6, 1  ;;  %4247 = vmatprep.subr.bf16.mxu0 %v4982_v54  ;;  %v4986_v39 = vld [vmem:[#allocation19 + $0x120] ss:$8 sps:$4 sm:$0xff]   ;;  %v4991_v41 = vld [vmem:[#allocation19 + $0x14] ss:$8 sps:$4 sm:$0xff]  }
 0x3ce   :  { %4207 = vmatpush1.bf16.msra.mxu1 %v4977_v55  ;;  %v5158_v43 = vpop.eup %5157  ;;  %v4997_v62 = vld [vmem:[#allocation19 + $0x4] ss:$8 sps:$4 sm:$0xff]   ;;  %v5030_v1 = vld [vmem:[#allocation19 + $0x1b4] ss:$8 sps:$4 sm:$0xff]   ;;  %v5028_v55 = vld [vmem:[#allocation19 + $0x1b0] ss:$8 sps:$4 sm:$0xff]  }
 0x3cf   :  { %v3138_v26 = vmul.f32 0.125, %v3105_v12  ;;  %v3146_v27 = vmul.f32 %v5765_v10, %v5765_v10  ;;  %v5769_v5 = vmul.f32 0.125, %v3047_v13  ;;  %v3111_v3 = vadd.f32 %v3110_v16, %v3109_v6  ;;  %4208 = vmatprep.subr.bf16.mxu1 %v4985_v57  ;;  %v5000_v63 = vld [vmem:[#allocation19 + $0x104] ss:$8 sps:$4 sm:$0xff]   ;;  %v4998_v12 = vld [vmem:[#allocation19 + $0x100] ss:$8 sps:$4 sm:$0xff]  }
 0x3d0   :  { %4248 = vmatpush1.bf16.msra.mxu0 %v4980_v56  ;;  %v5033_v56 = vld [vmem:[#allocation19 + $0xa4] ss:$8 sps:$4 sm:$0xff]  }
 0x3d1   :  { %v3154_v23 = vsub.f32 %v3138_v26, %v3146_v27  ;;  %v3139_v30 = vmul.f32 0.125, %v3111_v3  ;;  %v3147_v31 = vmul.f32 %v5769_v5, %v5769_v5  ;;  %4249 = vmatprep.subr.bf16.mxu0 %v4988_v20  ;;  %v5007_v27 = vld [vmem:[#allocation19 + $0xe0] ss:$8 sps:$4 sm:$0xff]   ;;  %v5009_v3 = vld [vmem:[#allocation19 + $0xe4] ss:$8 sps:$4 sm:$0xff]  }
 0x3d2   :  { %4209 = vmatpush1.bf16.msra.mxu1 %v4983_v38  ;;  %v5036_v20 = vld [vmem:[#allocation19 + $0x1a4] ss:$8 sps:$4 sm:$0xff]  }
 0x3d3   :  { %v3162_v44 = vmax.f32 %v3154_v23, 0.0  ;;  %v3155_v25 = vsub.f32 %v3139_v30, %v3147_v31  ;;  %4210 = vmatprep.subr.bf16.mxu1 %v4991_v41  ;;  %v5012_v23 = vld [vmem:[#allocation19 + $0x1e4] ss:$8 sps:$4 sm:$0xff]   ;;  %v5015_v30 = vld [vmem:[#allocation19 + $0xd4] ss:$8 sps:$4 sm:$0xff]  }
 0x3d4   :  { %4250 = vmatpush1.bf16.msra.mxu0 %v4986_v39  ;;  %v5018_v31 = vld [vmem:[#allocation19 + $0x1d4] ss:$8 sps:$4 sm:$0xff]  }
 0x3d5   :  { %v3171_v46 = vadd.f32 1e-05, %v3162_v44  ;;  %v3163_v48 = vmax.f32 %v3155_v25, 0.0  ;;  %4251 = vmatprep.subr.bf16.mxu0 %v4994_v42  ;;  %v5160_v60 = vpop.eup %5159  ;;  %v5785_v44 = vsub.s32 5, %v5597_v8  ;;  %v5019_v25 = vld [vmem:[#allocation19 + $0xc0] ss:$8 sps:$4 sm:$0xff]  }
 0x3d6   :  { %4211 = vmatpush1.bf16.msra.mxu1 %v4989_v58  ;;  %v3193_v4 = vcombine.low %v5160_v60, %v5158_v43  ;;  %v5031_v43 = vld [vmem:[#allocation19 + $0xa0] ss:$8 sps:$4 sm:$0xff]  }
 0x3d7   :  { %v3172_v52 = vadd.f32 1e-05, %v3163_v48  ;;  %5161 = vrsqrt.f32 %v3171_v46  ;;  %4212 = vmatprep.subr.bf16.mxu1 %v4997_v62  ;;  %v1379_v46 = vrot.slane %v5721_v28, %v5782_v34  ;;  %v5022_v48 = vld [vmem:[#allocation19 + $0x1c0] ss:$8 sps:$4 sm:$0xff]   ;;  %v1383_v36 = vrot.slane %v5721_v28, %v5785_v44 }
 0x3d8   :  { %4252 = vmatpush1.bf16.msra.mxu0 %v4992_v59  ;;  %v5777_v19 = vrot.slane %v3193_v4, %v5614_v2  ;;  %v5034_v60 = vld [vmem:[#allocation19 + $0x1a0] ss:$8 sps:$4 sm:$0xff]  }
 0x3d9   :  { %5163 = vrsqrt.f32 %v3172_v52  ;;  %4253 = vmatprep.subr.bf16.mxu0 %v5000_v63  ;;  %v5025_v52 = vld [vmem:[#allocation19 + $0xb0] ss:$8 sps:$4 sm:$0xff]   ;;  %v5042_v63 = vld [vmem:[#allocation19 + $0x194] ss:$8 sps:$4 sm:$0xff]  }
 0x3da   :  { %4213 = vmatpush1.bf16.msra.mxu1 %v4995_v7  ;;  %v5040_v7 = vld [vmem:[#allocation19 + $0x190] ss:$8 sps:$4 sm:$0xff]  }
 0x3db   :  { %4214 = vmatprep.subr.bf16.mxu1 %v5003_v17  ;;  %v5043_v17 = vld [vmem:[#allocation19 + $0x80] ss:$8 sps:$4 sm:$0xff]  }
 0x3dc   :  { %4254 = vmatpush1.bf16.msra.mxu0 %v4998_v12  ;;  %v5045_v12 = vld [vmem:[#allocation19 + $0x84] ss:$8 sps:$4 sm:$0xff]  }
 0x3dd   :  { %4255 = vmatprep.subr.bf16.mxu0 %v5006_v18  ;;  %v5046_v18 = vld [vmem:[#allocation19 + $0x180] ss:$8 sps:$4 sm:$0xff]  }
 0x3de   :  { %4215 = vmatpush2.bf16.msra.mxu1 %v5001_v22  ;;  %v5051_v22 = vld [vmem:[#allocation19 + $0x274] ss:$8 sps:$4 sm:$0xff]  }
 0x3df   :  { %4216 = vmatprep.subr.bf16.mxu1 %v5009_v3 }
 0x3e0   :  { %4256 = vmatpush2.bf16.msra.mxu0 %v5004_v24  ;;  %v5054_v24 = vld [vmem:[#allocation19 + $0x374] ss:$8 sps:$4 sm:$0xff]  }
 0x3e1   :  { %4257 = vmatprep.subr.bf16.mxu0 %v5012_v23 }
 0x3e2   :  { %4217 = vmatpush2.bf16.msra.mxu1 %v5007_v27 }
 0x3e3   :  { %4218 = vmatprep.subr.bf16.mxu1 %v5015_v30 }
 0x3e4   :  { %v5162_v61 = vpop.eup %5161  ;;  %4258 = vmatpush2.bf16.msra.mxu0 %v5010_v21 }
 0x3e5   :  { %4259 = vmatprep.subr.bf16.mxu0 %v5018_v31 }
 0x3e6   :  { %v5164_v6 = vpop.eup %5163  ;;  %4219 = vmatpush2.bf16.msra.mxu1 %v5013_v33 }
 0x3e7   :  { %v3194_v13 = vcombine.low %v5162_v61, %v5164_v6  ;;  %4220 = vmatprep.subr.bf16.mxu1 %v5021_v37  ;;  %v5039_v61 = vld [vmem:[#allocation19 + $0x94] ss:$8 sps:$4 sm:$0xff]   ;;  %v5037_v6 = vld [vmem:[#allocation19 + $0x90] ss:$8 sps:$4 sm:$0xff]  }
 0x3e8   :  { %4260 = vmatpush2.bf16.msra.mxu0 %v5016_v15 }
 0x3e9   :  { %v5774_v16 = vrot.slane %v3194_v13, %v5614_v2  ;;  %4261 = vmatprep.subr.bf16.mxu0 %v5024_v40  ;;  %v5048_v13 = vld [vmem:[#allocation19 + $0x184] ss:$8 sps:$4 sm:$0xff]  }
 0x3ea   :  { %4221 = vmatpush2.bf16.msra.mxu1 %v5019_v25 }
 0x3eb   :  { %v3225_v26 = vcombine.low %v5777_v19, %v5774_v16  ;;  %4222 = vmatprep.subr.bf16.mxu1 %v5027_v49 }
 0x3ec   :  { %4262 = vmatpush2.bf16.msra.mxu0 %v5022_v48 }
 0x3ed   :  { %4263 = vmatprep.subr.bf16.mxu0 %v5030_v1  ;;  %v5804_v1 = vsub.s32 6, %v5597_v8 }
 0x3ee   :  { %4223 = vmatpush2.bf16.msra.mxu1 %v5025_v52  ;;  %v5807_v52 = vsub.s32 7, %v5597_v8 }
 0x3ef   :  { %4224 = vmatprep.subr.bf16.mxu1 %v5033_v56 }
 0x3f0   :  { %4264 = vmatpush2.bf16.msra.mxu0 %v5028_v55  ;;  %v1387_v55 = vrot.slane %v5721_v28, %v5804_v1 }
 0x3f1   :  { %4265 = vmatprep.subr.bf16.mxu0 %v5036_v20  ;;  %v1391_v20 = vrot.slane %v5721_v28, %v5807_v52 }
 0x3f2   :  { %4225 = vmatpush2.bf16.msra.mxu1 %v5031_v43 }
 0x3f3   :  { %4226 = vmatprep.subr.bf16.mxu1 %v5039_v61 }
 0x3f4   :  { %4266 = vmatpush2.bf16.msra.mxu0 %v5034_v60 }
 0x3f5   :  { %4267 = vmatprep.subr.bf16.mxu0 %v5042_v63 }
 0x3f6   :  { %4227 = vmatpush2.bf16.msra.mxu1 %v5037_v6 }
 0x3f7   :  { %4228 = vmatprep.subr.bf16.mxu1 %v5045_v12 }
 0x3f8   :  { %v2878_v51 = vpop.f32.mrf.mxu1  ;;  %4268 = vmatpush2.bf16.msra.mxu0 %v5040_v7 }
 0x3f9   :  { %v2879_v53 = vadd.f32 %v2878_v51, %v1379_v46  ;;  %v2919_v54 = vpop.f32.mrf.mxu0  ;;  %4269 = vmatprep.subr.bf16.mxu0 %v5048_v13 }
 0x3fa   :  { %v2880_v57 = vpop.f32.mrf.mxu1  ;;  %4229 = vmatpush2.bf16.msra.mxu1 %v5043_v17 }
 0x3fb   :  { %v2920_v38 = vadd.f32 %v2919_v54, %v2879_v53  ;;  %v2881_v39 = vadd.f32 %v2880_v57, %v1383_v36  ;;  %v2921_v41 = vpop.f32.mrf.mxu0  ;;  %4280 = vmatprep.subr.bf16.mxu1 %v5051_v22 }
 0x3fc   :  { %v2882_v42 = vpop.f32.mrf.mxu1  ;;  %4270 = vmatpush2.bf16.msra.mxu0 %v5046_v18 }
 0x3fd   :  { %v2922_v58 = vadd.f32 %v2921_v41, %v2881_v39  ;;  %v2923_v59 = vpop.f32.mrf.mxu0  ;;  %4321 = vmatprep.subr.bf16.mxu0 %v5054_v24  ;;  %v3012_v3 = vmul.f32 0.2, %v2920_v38 }
 0x3fe   :  { %v2883_v62 = vpop.f32.mrf.mxu1 }
 0x3ff   :  { %v2924_v4 = vpop.f32.mrf.mxu0  ;;  %v3013_v27 = vmul.f32 0.2, %v2922_v58  ;;  %v5793_v23 = vmax.f32 %v2920_v38, %v3012_v3 }
 0x401   :  { %v5791_v21 = vmax.f32 %v2922_v58, %v3013_v27  ;;  %v3048_v33 = vrot.slane %v5793_v23, 4  ;;  %v3084_v15 = vmul.f32 %v5793_v23, %v5793_v23 }
 0x403   :  { %v3054_v30 = vrot.slane %v5791_v21, 4  ;;  %v3085_v31 = vmul.f32 %v5791_v21, %v5791_v21  ;;  %v3049_v25 = vadd.f32 %v3048_v33, %v5793_v23  ;;  %v3112_v46 = vrot.slane %v3084_v15, 4 }
 0x405   :  { %v3055_v37 = vadd.f32 %v3054_v30, %v5791_v21  ;;  %v3118_v40 = vrot.slane %v3085_v31, 4  ;;  %v3050_v36 = vrot.slane %v3049_v25, 2  ;;  %v3113_v51 = vadd.f32 %v3112_v46, %v3084_v15 }
 0x407   :  { %v3056_v48 = vrot.slane %v3055_v37, 2  ;;  %v3119_v49 = vadd.f32 %v3118_v40, %v3085_v31  ;;  %v3051_v56 = vadd.f32 %v3050_v36, %v3049_v25  ;;  %v3114_v57 = vrot.slane %v3113_v51, 2 }
 0x409   :  { %v3057_v53 = vadd.f32 %v3056_v48, %v3055_v37  ;;  %v3120_v54 = vrot.slane %v3119_v49, 2  ;;  %v3052_v58 = vrot.slane %v3051_v56, 1  ;;  %v3115_v59 = vadd.f32 %v3114_v57, %v3113_v51 }
 0x40b   :  { %v3058_v38 = vrot.slane %v3057_v53, 1  ;;  %v3121_v39 = vadd.f32 %v3120_v54, %v3119_v49  ;;  %v3053_v17 = vadd.f32 %v3052_v58, %v3051_v56  ;;  %v3116_v18 = vrot.slane %v3115_v59, 1 }
 0x40d   :  { %v3059_v63 = vadd.f32 %v3058_v38, %v3057_v53  ;;  %v3122_v4 = vrot.slane %v3121_v39, 1  ;;  %v5822_v37 = vmul.f32 0.125, %v3053_v17  ;;  %v3117_v40 = vadd.f32 %v3116_v18, %v3115_v59 }
 0x40f   :  { %v5815_v3 = vmul.f32 0.125, %v3059_v63  ;;  %v3123_v30 = vadd.f32 %v3122_v4, %v3121_v39  ;;  %v3140_v57 = vmul.f32 0.125, %v3117_v40 }
 0x411   :  { %v3141_v36 = vmul.f32 0.125, %v3123_v30  ;;  %v3149_v51 = vmul.f32 %v5815_v3, %v5815_v3 }
 0x438   :  { %v2960_v41 = vpop.f32.mrf.mxu1 }
 0x439   :  { %v2961_v42 = vadd.f32 %v2960_v41, %v1387_v55  ;;  %v3001_v43 = vpop.f32.mrf.mxu0 }
 0x43a   :  { %v2962_v60 = vpop.f32.mrf.mxu1 }
 0x43b   :  { %v3002_v8 = vadd.f32 %v3001_v43, %v2961_v42  ;;  %v2963_v61 = vadd.f32 %v2962_v60, %v1391_v20  ;;  %v3003_v62 = vpop.f32.mrf.mxu0  ;;  %v3148_v20 = vmul.f32 %v5822_v37, %v5822_v37  ;;  %v3157_v43 = vsub.f32 %v3141_v36, %v3149_v51 }
 0x43c   :  { %v2964_v6 = vpop.f32.mrf.mxu1 }
 0x43d   :  { %v3014_v7 = vmul.f32 0.2, %v3002_v8  ;;  %v3004_v12 = vadd.f32 %v3003_v62, %v2963_v61  ;;  %v3005_v13 = vpop.f32.mrf.mxu0  ;;  %v3156_v61 = vsub.f32 %v3140_v57, %v3148_v20 }
 0x43e   :  { %v2965_v28 = vpop.f32.mrf.mxu1 }
 0x43f   :  { %v5813_v22 = vmax.f32 %v3002_v8, %v3014_v7  ;;  %v3015_v24 = vmul.f32 0.2, %v3004_v12  ;;  %v3006_v27 = vpop.f32.mrf.mxu0  ;;  %v3165_v7 = vmax.f32 %v3157_v43, 0.0  ;;  %v3164_v28 = vmax.f32 %v3156_v61, 0.0 }
 0x441   :  { %v3060_v31 = vrot.slane %v5813_v22, 4  ;;  %v3086_v33 = vmul.f32 %v5813_v22, %v5813_v22  ;;  %v5820_v15 = vmax.f32 %v3004_v12, %v3015_v24 }
 0x443   :  { %v3061_v25 = vadd.f32 %v3060_v31, %v5813_v22  ;;  %v3124_v46 = vrot.slane %v3086_v33, 4  ;;  %v3066_v48 = vrot.slane %v5820_v15, 4  ;;  %v3087_v49 = vmul.f32 %v5820_v15, %v5820_v15 }
 0x445   :  { %v3062_v53 = vrot.slane %v3061_v25, 2  ;;  %v3125_v54 = vadd.f32 %v3124_v46, %v3086_v33  ;;  %v3067_v55 = vadd.f32 %v3066_v48, %v5820_v15  ;;  %v3130_v56 = vrot.slane %v3087_v49, 4 }
 0x446   :  { %v3174_v33 = vadd.f32 1e-05, %v3165_v7  ;;  %v3173_v48 = vadd.f32 1e-05, %v3164_v28 }
 0x447   :  { %v3063_v38 = vadd.f32 %v3062_v53, %v3061_v25  ;;  %v3126_v39 = vrot.slane %v3125_v54, 2  ;;  %v3068_v41 = vrot.slane %v3067_v55, 2  ;;  %v3131_v42 = vadd.f32 %v3130_v56, %v3087_v49 }
 0x448   :  { %5165 = vrsqrt.f32 %v3174_v33 }
 0x449   :  { %v3064_v58 = vrot.slane %v3063_v38, 1  ;;  %v3127_v59 = vadd.f32 %v3126_v39, %v3125_v54  ;;  %v3069_v60 = vadd.f32 %v3068_v41, %v3067_v55  ;;  %v3132_v8 = vrot.slane %v3131_v42, 2 }
 0x44a   :  { %5167 = vrsqrt.f32 %v3173_v48 }
 0x44b   :  { %v3065_v62 = vadd.f32 %v3064_v58, %v3063_v38  ;;  %v3128_v63 = vrot.slane %v3127_v59, 1  ;;  %v3070_v4 = vrot.slane %v3069_v60, 1  ;;  %v3133_v6 = vadd.f32 %v3132_v8, %v3131_v42 }
 0x44d   :  { %v3078_v12 = vmul.f32 0.125, %v3065_v62  ;;  %v3129_v13 = vadd.f32 %v3128_v63, %v3127_v59  ;;  %v3071_v17 = vadd.f32 %v3070_v4, %v3069_v60  ;;  %v3134_v18 = vrot.slane %v3133_v6, 1  ;;  %v3168_v60 = vld [vmem:[%s5909_s11] sm:$0xff] }
 0x44e   :  { %v3233_v59 = vrot.slane %v3225_v26, %v5614_v2 }
 0x44f   :  { %v3142_v24 = vmul.f32 0.125, %v3129_v13  ;;  %v3150_v27 = vmul.f32 %v3078_v12, %v3078_v12  ;;  %v3079_v30 = vmul.f32 0.125, %v3071_v17  ;;  %v3135_v31 = vadd.f32 %v3134_v18, %v3133_v6 }
 0x451   :  { %v3158_v40 = vsub.f32 %v3142_v24, %v3150_v27  ;;  %v3143_v25 = vmul.f32 0.125, %v3135_v31  ;;  %v3151_v46 = vmul.f32 %v3079_v30, %v3079_v30 }
 0x453   :  { %v3166_v49 = vmax.f32 %v3158_v40, 0.0  ;;  %v3159_v36 = vsub.f32 %v3143_v25, %v3151_v46 }
 0x455   :  { %v3175_v51 = vadd.f32 1e-05, %v3166_v49  ;;  %v3167_v53 = vmax.f32 %v3159_v36, 0.0  ;;  %v5166_v55 = vpop.eup %5165 }
 0x457   :  { %v3176_v54 = vadd.f32 1e-05, %v3167_v53  ;;  %5169 = vrsqrt.f32 %v3175_v51  ;;  %v5168_v56 = vpop.eup %5167  ;;  %v3244_v51 = vld [vmem:[%s5910_s12] sm:$0xff] }
 0x458   :  { %v3195_v20 = vcombine.low %v5168_v56, %v5166_v55 }
 0x459   :  { %5171 = vrsqrt.f32 %v3176_v54 }
 0x45a   :  { %v3217_v41 = vrot.slane %v3195_v20, %v5614_v2 }
 0x464   :  { %v5170_v57 = vpop.eup %5169 }
 0x466   :  { %v5172_v38 = vpop.eup %5171 }
 0x467   :  { %v3196_v39 = vcombine.low %v5170_v57, %v5172_v38 }
 0x469   :  { %v3224_v42 = vrot.slane %v3196_v39, %v5614_v2 }
 0x46b   :  { %v3226_v43 = vcombine.low %v3217_v41, %v3224_v42 }
 0x46d   :  { %v3240_v58 = vrot.slane %v3226_v43, %v5614_v2 }
 0x46f   :  { %v3241_v8 = vcombine.low %v3233_v59, %v3240_v58 }
 0x471   :  { %v3243_v61 = vmul.f32 %v3241_v8, %v3168_v60 }
 0x473   :  { %v3249_v62 = vrot.slane %v3243_v61, %v5600_v9  ;;  %v3253_v63 = vrot.slane %v3243_v61, %v5603_v11  ;;  %v3257_v4 = vrot.slane %v3243_v61, %v5642_v45  ;;  %v3261_v6 = vrot.slane %v3243_v61, %v5645_v47 }
 0x474   :  { %v3265_v7 = vrot.slane %v3243_v61, %v5782_v34  ;;  %v3269_v13 = vrot.slane %v3243_v61, %v5785_v44  ;;  %v3273_v16 = vrot.slane %v3243_v61, %v5804_v1  ;;  %v3277_v19 = vrot.slane %v3243_v61, %v5807_v52  ;;  %v5049_v61 = vld [vmem:[#allocation19 + $0x270] ss:$8 sps:$4 sm:$0xff]  }
 0x475   :  { %v3286_v26 = vmul.f32 %v3249_v62, %v5754_v35  ;;  %v3287_v17 = vmul.f32 %v3253_v63, %v5747_v32  ;;  %v3288_v18 = vmul.f32 %v3257_v4, %v5765_v10  ;;  %v3289_v28 = vmul.f32 %v3261_v6, %v5769_v5 }
 0x476   :  { %v3290_v24 = vmul.f32 %v3265_v7, %v5822_v37  ;;  %v3291_v27 = vmul.f32 %v3269_v13, %v5815_v3  ;;  %v3292_v31 = vmul.f32 %v3273_v16, %v3078_v12  ;;  %v3293_v33 = vmul.f32 %v3277_v19, %v3079_v30 }
 0x477   :  { %v3302_v40 = vcombine.low %v3286_v26, %v3287_v17  ;;  %v3303_v25 = vcombine.low %v3288_v18, %v3289_v28  ;;  %v3354_v46 = vmul.f32 %v3253_v63, %v5729_v50  ;;  %v3356_v48 = vmul.f32 %v3261_v6, %v5752_v14  ;;  %v5055_v6 = vld [vmem:[#allocation19 + $0x260] ss:$8 sps:$4 sm:$0xff]   ;;  %v5064_v26 = vld [vmem:[#allocation19 + $0x350] ss:$8 sps:$4 sm:$0xff]   ;;  %v5069_v17 = vld [vmem:[#allocation19 + $0x244] ss:$8 sps:$4 sm:$0xff]  }
 0x478   :  { %v3304_v49 = vcombine.low %v3290_v24, %v3291_v27  ;;  %v3305_v35 = vcombine.low %v3292_v31, %v3293_v33  ;;  %v3360_v5 = vmul.f32 %v3277_v19, %v5820_v15  ;;  %v3359_v12 = vmul.f32 %v3273_v16, %v5813_v22  ;;  %v5066_v16 = vld [vmem:[#allocation19 + $0x354] ss:$8 sps:$4 sm:$0xff]   ;;  %v5061_v19 = vld [vmem:[#allocation19 + $0x250] ss:$8 sps:$4 sm:$0xff]   ;;  %v5072_v18 = vld [vmem:[#allocation19 + $0x344] ss:$8 sps:$4 sm:$0xff]  }
 0x479   :  { %v3312_v32 = vrot.slane %v3302_v40, %v5614_v2  ;;  %v3319_v10 = vrot.slane %v3303_v25, %v5614_v2  ;;  %v3353_v15 = vmul.f32 %v3249_v62, %v5731_v0  ;;  %v3355_v55 = vmul.f32 %v3257_v4, %v5745_v29  ;;  %v5067_v28 = vld [vmem:[#allocation19 + $0x240] ss:$8 sps:$4 sm:$0xff]   ;;  %v5075_v27 = vld [vmem:[#allocation19 + $0x234] ss:$8 sps:$4 sm:$0xff]   ;;  %v5073_v33 = vld [vmem:[#allocation19 + $0x230] ss:$8 sps:$4 sm:$0xff]  }
 0x47a   :  { %v3326_v37 = vrot.slane %v3304_v49, %v5614_v2  ;;  %v3333_v3 = vrot.slane %v3305_v35, %v5614_v2  ;;  %v3358_v56 = vmul.f32 %v3269_v13, %v5791_v21  ;;  %v3357_v22 = vmul.f32 %v3265_v7, %v5793_v23  ;;  %v5058_v7 = vld [vmem:[#allocation19 + $0x360] ss:$8 sps:$4 sm:$0xff]   ;;  %v5063_v13 = vld [vmem:[#allocation19 + $0x254] ss:$8 sps:$4 sm:$0xff]   ;;  %v5076_v40 = vld [vmem:[#allocation19 + $0x330] ss:$8 sps:$4 sm:$0xff]  }
 0x47b   :  { %v3334_v30 = vcombine.low %v3312_v32, %v3319_v10  ;;  %v5070_v24 = vld [vmem:[#allocation19 + $0x340] ss:$8 sps:$4 sm:$0xff]   ;;  %v5078_v31 = vld [vmem:[#allocation19 + $0x334] ss:$8 sps:$4 sm:$0xff]   ;;  %v5081_v25 = vld [vmem:[#allocation19 + $0x224] ss:$8 sps:$4 sm:$0xff]  }
 0x47c   :  { %v3335_v36 = vcombine.low %v3326_v37, %v3333_v3  ;;  %v5082_v49 = vld [vmem:[#allocation19 + $0x320] ss:$8 sps:$4 sm:$0xff]   ;;  %v5087_v35 = vld [vmem:[#allocation19 + $0x214] ss:$8 sps:$4 sm:$0xff]   ;;  %v5085_v10 = vld [vmem:[#allocation19 + $0x210] ss:$8 sps:$4 sm:$0xff]  }
 0x47d   :  { %v3342_v50 = vrot.slane %v3334_v30, %v5614_v2  ;;  %v5090_v32 = vld [vmem:[#allocation19 + $0x314] ss:$8 sps:$4 sm:$0xff]   ;;  %v5093_v37 = vld [vmem:[#allocation19 + $0x204] ss:$8 sps:$4 sm:$0xff]   ;;  %v5094_v30 = vld [vmem:[#allocation19 + $0x300] ss:$8 sps:$4 sm:$0xff]  }
 0x47e   :  { %v3349_v14 = vrot.slane %v3335_v36, %v5614_v2  ;;  %v5096_v3 = vld [vmem:[#allocation19 + $0x304] ss:$8 sps:$4 sm:$0xff]   ;;  %v5099_v36 = vld [vmem:[#allocation19 + $0x2f4] ss:$8 sps:$4 sm:$0xff]  }
 0x480   :  { %v3350_v53 = vcombine.low %v3342_v50, %v3349_v14  ;;  %v5102_v50 = vld [vmem:[#allocation19 + $0x3f4] ss:$8 sps:$4 sm:$0xff]   ;;  %v5097_v14 = vld [vmem:[#allocation19 + $0x2f0] ss:$8 sps:$4 sm:$0xff]  }
 0x482   :  { %v3352_v54 = vsub.f32 %v3244_v51, %v3350_v53  ;;  %v5100_v51 = vld [vmem:[#allocation19 + $0x3f0] ss:$8 sps:$4 sm:$0xff]   ;;  %v5105_v53 = vld [vmem:[#allocation19 + $0x2e4] ss:$8 sps:$4 sm:$0xff]  }
 0x484   :  { %v3369_v57 = vrot.slane %v3352_v54, %v5603_v11  ;;  %v3377_v20 = vrot.slane %v3352_v54, %v5645_v47  ;;  %v3365_v2 = vrot.slane %v3352_v54, %v5600_v9  ;;  %v3373_v38 = vrot.slane %v3352_v54, %v5642_v45 }
 0x485   :  { %v3385_v39 = vrot.slane %v3352_v54, %v5785_v44  ;;  %v3393_v41 = vrot.slane %v3352_v54, %v5807_v52  ;;  %v3381_v0 = vrot.slane %v3352_v54, %v5782_v34  ;;  %v3389_v29 = vrot.slane %v3352_v54, %v5804_v1  ;;  %v5052_v44 = vld [vmem:[#allocation19 + $0x370] ss:$8 sps:$4 sm:$0xff]   ;;  %v5057_v34 = vld [vmem:[#allocation19 + $0x264] ss:$8 sps:$4 sm:$0xff]  }
 0x486   :  { %v3403_v42 = vadd.f32 %v3369_v57, %v3354_v46  ;;  %v3405_v21 = vadd.f32 %v3377_v20, %v3356_v48  ;;  %v3402_v43 = vadd.f32 %v3365_v2, %v3353_v15  ;;  %v3404_v23 = vadd.f32 %v3373_v38, %v3355_v55  ;;  %v5060_v1 = vld [vmem:[#allocation19 + $0x364] ss:$8 sps:$4 sm:$0xff]   ;;  %v5079_v48 = vld [vmem:[#allocation19 + $0x220] ss:$8 sps:$4 sm:$0xff]   ;;  %v5109_v57 = vld [vmem:[#allocation19 + $0x2d0] ss:$8 sps:$4 sm:$0xff]  }
 0x487   :  { %v3407_v58 = vadd.f32 %v3385_v39, %v3358_v56  ;;  %v3409_v59 = vadd.f32 %v3393_v41, %v3360_v5  ;;  %v5882_v60 = vadd.f32 %v3381_v0, %v3357_v22  ;;  %v5884_v47 = vadd.f32 %v3389_v29, %v3359_v12  ;;  %v5084_v46 = vld [vmem:[#allocation19 + $0x324] ss:$8 sps:$4 sm:$0xff]   ;;  %v5088_v5 = vld [vmem:[#allocation19 + $0x310] ss:$8 sps:$4 sm:$0xff]   ;;  %v5091_v12 = vld [vmem:[#allocation19 + $0x200] ss:$8 sps:$4 sm:$0xff]  }
 0x488   :  { %v3411_v8 = vpack.c.bf16 %v3403_v42, %v3403_v42  ;;  %v3413_v45 = vpack.c.bf16 %v3405_v21, %v3405_v21  ;;  %v3410_v62 = vpack.c.bf16 %v3402_v43, %v3402_v43  ;;  %v3412_v52 = vpack.c.bf16 %v3404_v23, %v3404_v23  ;;  %v5108_v54 = vld [vmem:[#allocation19 + $0x3e4] ss:$8 sps:$4 sm:$0xff]   ;;  %v5103_v15 = vld [vmem:[#allocation19 + $0x2e0] ss:$8 sps:$4 sm:$0xff]   ;;  %v5111_v56 = vld [vmem:[#allocation19 + $0x2d4] ss:$8 sps:$4 sm:$0xff]  }
 0x489   :  { %v3415_v63 = vpack.c.bf16 %v3407_v58, %v3407_v58  ;;  %v3417_v4 = vpack.c.bf16 %v3409_v59, %v3409_v59  ;;  %v5106_v55 = vld [vmem:[#allocation19 + $0x3e0] ss:$8 sps:$4 sm:$0xff]   ;;  %v5114_v22 = vld [vmem:[#allocation19 + $0x3d4] ss:$8 sps:$4 sm:$0xff]   ;;  %v5112_v20 = vld [vmem:[#allocation19 + $0x3d0] ss:$8 sps:$4 sm:$0xff]  }
 0x48a   :  { %4230 = vmatprep.mubr.bf16.mxu1 %v3411_v8  ;;  %4271 = vmatprep.mubr.bf16.mxu0 %v3413_v45  ;;  %v5117_v2 = vld [vmem:[#allocation19 + $0x2c4] ss:$8 sps:$4 sm:$0xff]   ;;  %v5115_v39 = vld [vmem:[#allocation19 + $0x2c0] ss:$8 sps:$4 sm:$0xff]   ;;  %v5123_v0 = vld [vmem:[#allocation19 + $0x2b4] ss:$8 sps:$4 sm:$0xff]  }
 0x48b   :  { %4231 = vmatmul.mubr.bf16.vlgmr.msra.gmra.mxu1 %v3410_v62  ;;  %4272 = vmatmul.mubr.bf16.vlgmr.msra.gmra.mxu0 %v3412_v52  ;;  %v5120_v38 = vld [vmem:[#allocation19 + $0x3c4] ss:$8 sps:$4 sm:$0xff]   ;;  %v5118_v41 = vld [vmem:[#allocation19 + $0x3c0] ss:$8 sps:$4 sm:$0xff]   ;;  %v5126_v29 = vld [vmem:[#allocation19 + $0x3b4] ss:$8 sps:$4 sm:$0xff]  }
 0x48c   :  { %4281 = vmatpush1.bf16.msra.mxu1 %v5049_v61  ;;  %4322 = vmatpush1.bf16.msra.mxu0 %v5052_v44  ;;  %v5121_v42 = vld [vmem:[#allocation19 + $0x2b0] ss:$8 sps:$4 sm:$0xff]   ;;  %v5129_v43 = vld [vmem:[#allocation19 + $0x2a4] ss:$8 sps:$4 sm:$0xff]   ;;  %v5127_v58 = vld [vmem:[#allocation19 + $0x2a0] ss:$8 sps:$4 sm:$0xff]  }
 0x48d   :  { %4312 = vmatprep.mubr.bf16.mxu1 %v3415_v63  ;;  %4353 = vmatprep.mubr.bf16.mxu0 %v3417_v4  ;;  %v5124_v21 = vld [vmem:[#allocation19 + $0x3b0] ss:$8 sps:$4 sm:$0xff]   ;;  %v5132_v23 = vld [vmem:[#allocation19 + $0x3a4] ss:$8 sps:$4 sm:$0xff]   ;;  %v5130_v59 = vld [vmem:[#allocation19 + $0x3a0] ss:$8 sps:$4 sm:$0xff]   ;;  %v3414_v63 = vpack.c.bf16 %v5882_v60, %v5882_v60  ;;  %v3416_v4 = vpack.c.bf16 %v5884_v47, %v5884_v47 }
 0x48e   :  { %4282 = vmatprep.subr.bf16.mxu1 %v5057_v34  ;;  %4323 = vmatprep.subr.bf16.mxu0 %v5060_v1  ;;  %v5135_v8 = vld [vmem:[#allocation19 + $0x294] ss:$8 sps:$4 sm:$0xff]   ;;  %v5133_v61 = vld [vmem:[#allocation19 + $0x290] ss:$8 sps:$4 sm:$0xff]   ;;  %v5141_v62 = vld [vmem:[#allocation19 + $0x284] ss:$8 sps:$4 sm:$0xff]  }
 0x48f   :  { %v5138_v45 = vld [vmem:[#allocation19 + $0x394] ss:$8 sps:$4 sm:$0xff]   ;;  %v5136_v44 = vld [vmem:[#allocation19 + $0x390] ss:$8 sps:$4 sm:$0xff]   ;;  %v5144_v52 = vld [vmem:[#allocation19 + $0x384] ss:$8 sps:$4 sm:$0xff]  }
 0x490   :  { %4283 = vmatpush1.bf16.msra.mxu1 %v5055_v6  ;;  %4324 = vmatpush1.bf16.msra.mxu0 %v5058_v7  ;;  %v5139_v34 = vld [vmem:[#allocation19 + $0x280] ss:$8 sps:$4 sm:$0xff]  }
 0x491   :  { %4284 = vmatprep.subr.bf16.mxu1 %v5063_v13  ;;  %4325 = vmatprep.subr.bf16.mxu0 %v5066_v16  ;;  %v5142_v1 = vld [vmem:[#allocation19 + $0x380] ss:$8 sps:$4 sm:$0xff]  }
 0x494   :  { %4285 = vmatpush1.bf16.msra.mxu1 %v5061_v19  ;;  %4326 = vmatpush1.bf16.msra.mxu0 %v5064_v26 }
 0x495   :  { %4286 = vmatprep.subr.bf16.mxu1 %v5069_v17  ;;  %4327 = vmatprep.subr.bf16.mxu0 %v5072_v18 }
 0x498   :  { %4287 = vmatpush1.bf16.msra.mxu1 %v5067_v28  ;;  %4328 = vmatpush1.bf16.msra.mxu0 %v5070_v24  ;;  %v3546_v28 = vld [vmem:[#allocation21] sm:$0x3] }
 0x499   :  { %4288 = vmatprep.subr.bf16.mxu1 %v5075_v27  ;;  %4329 = vmatprep.subr.bf16.mxu0 %v5078_v31  ;;  %v3551_v24 = vrot.slane %v3546_v28, %v5600_v9  ;;  %v3555_v27 = vrot.slane %v3546_v28, %v5603_v11 }
 0x49c   :  { %4289 = vmatpush1.bf16.msra.mxu1 %v5073_v33  ;;  %4330 = vmatpush1.bf16.msra.mxu0 %v5076_v40 }
 0x49d   :  { %4290 = vmatprep.subr.bf16.mxu1 %v5081_v25  ;;  %4331 = vmatprep.subr.bf16.mxu0 %v5084_v46 }
 0x4a0   :  { %4291 = vmatpush1.bf16.msra.mxu1 %v5079_v48  ;;  %4332 = vmatpush1.bf16.msra.mxu0 %v5082_v49 }
 0x4a1   :  { %4292 = vmatprep.subr.bf16.mxu1 %v5087_v35  ;;  %4333 = vmatprep.subr.bf16.mxu0 %v5090_v32 }
 0x4a4   :  { %4293 = vmatpush1.bf16.msra.mxu1 %v5085_v10  ;;  %4334 = vmatpush1.bf16.msra.mxu0 %v5088_v5 }
 0x4a5   :  { %4294 = vmatprep.subr.bf16.mxu1 %v5093_v37  ;;  %4335 = vmatprep.subr.bf16.mxu0 %v5096_v3 }
 0x4a8   :  { %4295 = vmatpush1.bf16.msra.mxu1 %v5091_v12  ;;  %4336 = vmatpush1.bf16.msra.mxu0 %v5094_v30 }
 0x4a9   :  { %4296 = vmatprep.subr.bf16.mxu1 %v5099_v36  ;;  %4337 = vmatprep.subr.bf16.mxu0 %v5102_v50 }
 0x4ac   :  { %4297 = vmatpush2.bf16.msra.mxu1 %v5097_v14  ;;  %4338 = vmatpush2.bf16.msra.mxu0 %v5100_v51 }
 0x4ad   :  { %4298 = vmatprep.subr.bf16.mxu1 %v5105_v53  ;;  %4339 = vmatprep.subr.bf16.mxu0 %v5108_v54 }
 0x4b0   :  { %4299 = vmatpush2.bf16.msra.mxu1 %v5103_v15  ;;  %4340 = vmatpush2.bf16.msra.mxu0 %v5106_v55 }
 0x4b1   :  { %4300 = vmatprep.subr.bf16.mxu1 %v5111_v56  ;;  %4341 = vmatprep.subr.bf16.mxu0 %v5114_v22 }
 0x4b4   :  { %4301 = vmatpush2.bf16.msra.mxu1 %v5109_v57  ;;  %4342 = vmatpush2.bf16.msra.mxu0 %v5112_v20 }
 0x4b5   :  { %4302 = vmatprep.subr.bf16.mxu1 %v5117_v2  ;;  %4343 = vmatprep.subr.bf16.mxu0 %v5120_v38 }
 0x4b8   :  { %4303 = vmatpush2.bf16.msra.mxu1 %v5115_v39  ;;  %4344 = vmatpush2.bf16.msra.mxu0 %v5118_v41 }
 0x4b9   :  { %4304 = vmatprep.subr.bf16.mxu1 %v5123_v0  ;;  %4345 = vmatprep.subr.bf16.mxu0 %v5126_v29 }
 0x4bc   :  { %4305 = vmatpush2.bf16.msra.mxu1 %v5121_v42  ;;  %4346 = vmatpush2.bf16.msra.mxu0 %v5124_v21 }
 0x4bd   :  { %4306 = vmatprep.subr.bf16.mxu1 %v5129_v43  ;;  %4347 = vmatprep.subr.bf16.mxu0 %v5132_v23 }
 0x4c0   :  { %4307 = vmatpush2.bf16.msra.mxu1 %v5127_v58  ;;  %4348 = vmatpush2.bf16.msra.mxu0 %v5130_v59 }
 0x4c1   :  { %4308 = vmatprep.subr.bf16.mxu1 %v5135_v8  ;;  %4349 = vmatprep.subr.bf16.mxu0 %v5138_v45 }
 0x4c4   :  { %4309 = vmatpush2.bf16.msra.mxu1 %v5133_v61  ;;  %4350 = vmatpush2.bf16.msra.mxu0 %v5136_v44 }
 0x4c5   :  { %4310 = vmatprep.subr.bf16.mxu1 %v5141_v62  ;;  %4351 = vmatprep.subr.bf16.mxu0 %v5144_v52 }
 0x4c8   :  { %4311 = vmatpush2.bf16.msra.mxu1 %v5139_v34  ;;  %4352 = vmatpush2.bf16.msra.mxu0 %v5142_v1 }
 0x4cb   :  { %4313 = vmatmul.mubr.bf16.vlgmr.msra.gmra.mxu1 %v3414_v63  ;;  %4354 = vmatmul.mubr.bf16.vlgmr.msra.gmra.mxu0 %v3416_v4 }
 0x54b   :  { %v4232_v6 = vpop.f32.mrf.mxu1  ;;  %v4273_v7 = vpop.f32.mrf.mxu0 }
 0x54c   :  { %v4233_v31 = vadd.f32 %v4232_v6, %v3551_v24 }
 0x54d   :  { %v4234_v13 = vpop.f32.mrf.mxu1  ;;  %v4275_v16 = vpop.f32.mrf.mxu0 }
 0x54e   :  { %v4235_v60 = vadd.f32 %v4234_v13, %v3555_v27  ;;  %v4274_v33 = vadd.f32 %v4273_v7, %v4233_v31 }
 0x54f   :  { %v4236_v19 = vpop.f32.mrf.mxu1  ;;  %v4277_v26 = vpop.f32.mrf.mxu0 }
 0x550   :  { %v4276_v25 = vadd.f32 %v4275_v16, %v4235_v60 }
 0x551   :  { %v4237_v17 = vpop.f32.mrf.mxu1  ;;  %v4278_v18 = vpop.f32.mrf.mxu0 }
 0x58b   :  { %v4314_v40 = vpop.f32.mrf.mxu1  ;;  %v4355_v47 = vpop.f32.mrf.mxu0 }
 0x58c   :  { %v4315_v46 = vadd.f32 %v4314_v40, %v4274_v33 }
 0x58d   :  { %v4316_v48 = vpop.f32.mrf.mxu1  ;;  %v4357_v49 = vpop.f32.mrf.mxu0 }
 0x58e   :  { %v4356_v35 = vadd.f32 %v4355_v47, %v4315_v46  ;;  %v4317_v32 = vadd.f32 %v4316_v48, %v4276_v25 }
 0x58f   :  { %v4318_v10 = vpop.f32.mrf.mxu1  ;;  %v4359_v5 = vpop.f32.mrf.mxu0 }
 0x590   :  { %5173 = vtanh.f32 %v4356_v35  ;;  %v4358_v37 = vadd.f32 %v4357_v49, %v4317_v32 }
 0x591   :  { %v4319_v3 = vpop.f32.mrf.mxu1  ;;  %v4360_v12 = vpop.f32.mrf.mxu0 }
 0x592   :  { %5175 = vtanh.f32 %v4358_v37 }
 0x59d   :  { %v5174_v9 = vpop.eup %5173 }
 0x59e   :  { %4364 = vst [vmem:[%s5913_s15] sm:$0xff] %v5174_v9 }
 0x59f   :  { %v5176_v11 = vpop.eup %5175 }
 0x5a0   :  { %4365 = vst [vmem:[%s5913_s15 + $0x8] sm:$0xff] %v5176_v11 }
 0x5a1   :  { %4370 = vsyncpa [#allocation3], 1 }
 0x5a2   :  { %4371 = vsyncpa [#allocation5], 1 }
 0x5a3   :  { %4372 = vsyncpa [#allocation8], 1 }
 0x5a4   :  { %4373 = vsyncpa [#allocation11], 1 }
 0x5a5   :  { %4374 = vsyncpa [#allocation14], 1 }
 0x5a6   :  { %4375 = vsyncpa [#allocation17], 1 }
 0x5a7   :  { %4376 = vsyncpa [#allocation20], 1 }

</bundles_post_ra>
